<compile_context>
chip_gen: v6e
topology: v6e:2x2x1
jax: 0.10.0
libtpu: 0.0.40
codegen_flags: <defaults>
</compile_context>

<pallas_src>
import math

import jax
import jax.numpy as jnp
from jax.experimental import pallas as pl
from jax.experimental.pallas import tpu as pltpu


_VMEM = pl.BlockSpec(memory_space=pltpu.MemorySpace.VMEM)
_COMPILER_PARAMS = pltpu.CompilerParams(vmem_limit_bytes=32 * 1024 * 1024)


def _rows_at_t(x, t):
    """x: (R, T, D) -> (R, D), the rows of time step t.

    Implemented as a length-1 sum over the time axis (an exact copy) rather than
    slice + squeeze: middle-axis reductions of 3-D arrays are a well-supported Mosaic
    lowering path (same machinery as images.mean(axis=1)), whereas (R, 1, D) -> (R, D)
    shape-casts are not guaranteed on every toolchain.
    """
    return jnp.sum(x[:, t:t + 1, :], axis=1)


# --------------------------------------------------------------------------------------
# The single fused kernel
# --------------------------------------------------------------------------------------
def acc_model_kernel(q_ref, a_ref, img_ref,
                     mlp_w_ref, mlp_b_ref, ln_g_ref, ln_b_ref,
                     wf_q_ref, wf_i_ref, bf_ref,
                     wih_e_ref, whh_e_ref, bi_e_ref, bhn_e_ref,
                     wih_d_ref, whh_d_ref, bi_d_ref, bhn_d_ref,
                     wout_ref, bout_ref, o_ref):
    """Whole AccModel forward in one launch.

    q_ref   : (B, Tq, D)  f32   question embeddings
    a_ref   : (N, Ta, D)  f32   answer embeddings, N = B * Na (row = b*Na + n)
    img_ref : (B, Ni, C)  f32   raw image features
    mlp_*   : image MLP Linear(C, C) + LayerNorm(C)
    wf_q/wf_i/bf : Fuser Linear(D + C -> D) split into question / image halves, (in, out) layout
    wih_e   : (L, 2, 2H, 3H) bf16 fused input->gate weights, cols [r|z|n] (layer 0 uses rows :H)
    whh_e   : (L, 2H, 3H)    bf16 hidden->gate weights, rows [fwd ; bwd] (block-diagonal use)
    bi_e    : (L, 2, 1, 3H)  f32  input-side bias, b_hh pre-folded for r and z
    bhn_e   : (L, 2, 1, H)   f32  hidden-side bias of the n gate
    wih_d/whh_d : (L, H, 3H) bf16 ; bi_d : (L, 1, 3H) ; bhn_d : (L, 1, H)
    wout    : (1, H), bout : (1, 1)   scoring head Linear(H -> 1)
    o_ref   : (N, 1) f32   output scores (row = b*Na + n)
    """
    B, Tq, D = q_ref.shape
    N, Ta, _ = a_ref.shape
    H = D
    L = wih_e_ref.shape[0]
    Na = N // B
    f32 = jnp.float32
    bf16 = jnp.bfloat16

    # ---------------- image prelude: images.mean(1) -> MLP -> Fuser image half ----------------
    x = jnp.mean(img_ref[...], axis=1)                                           # (B, C)
    d = jnp.dot(jnp.maximum(x, 0.0).astype(bf16), mlp_w_ref[...],
                preferred_element_type=f32) + mlp_b_ref[...]
    mu = jnp.mean(d, axis=-1, keepdims=True)
    var = jnp.mean((d - mu) ** 2, axis=-1, keepdims=True)
    y = x + (d - mu) * jax.lax.rsqrt(var + 1e-5) * ln_g_ref[...] + ln_b_ref[...]
    img_part = jnp.dot(y.astype(bf16), wf_i_ref[...],
                       preferred_element_type=f32) + bf_ref[...]                 # (B, D)

    # ---------------- Fuser question half (time-major reorder done in-kernel) ----------------
    qq = q_ref[...]                                                              # (B, Tq, D)
    q_tm = jnp.concatenate([_rows_at_t(qq, t) for t in range(Tq)], axis=0)       # (Tq*B, D)
    # Replicating img_part over time is T small sublane copies, once, off the recurrence path.
    img_rep = jnp.concatenate([img_part] * Tq, axis=0)                           # (Tq*B, D)
    x_tm = jnp.dot(q_tm.astype(bf16), wf_q_ref[...],
                   preferred_element_type=f32) + img_rep                         # (Tq*B, D)

    # (2B, 2H) direction mask for the block-diagonal hidden matmul, built ONCE.
    ones = jnp.ones((B, H), f32)
    zeros = jnp.zeros((B, H), f32)
    mask2 = jnp.concatenate([jnp.concatenate([ones, zeros], axis=1),
                             jnp.concatenate([zeros, ones], axis=1)], axis=0)    # (2B, 2H)

    # ---------------- bidirectional multi-layer GRU encoder ----------------
    henc = []                                                                    # per-layer (B, H)
    for l in range(L):
        w_f = wih_e_ref[l, 0]                                                    # (2H, 3H) bf16
        w_b = wih_e_ref[l, 1]
        if l == 0:                       # layer-0 input is D wide: static K-slice, no zero-pad
            w_f = w_f[:H]
            w_b = w_b[:H]
        xb = x_tm.astype(bf16)
        # Hoisted whole-sequence input-side matmuls (off the serial recurrence).
        gi_f = jnp.dot(xb, w_f, preferred_element_type=f32) + bi_e_ref[l, 0]     # (Tq*B, 3H)
        gi_b = jnp.dot(xb, w_b, preferred_element_type=f32) + bi_e_ref[l, 1]
        whh_blk = whh_e_ref[l]                                                   # (2H, 3H) bf16
        bhn = jnp.concatenate([jnp.broadcast_to(bhn_e_ref[l, 0], (B, H)),
                               jnp.broadcast_to(bhn_e_ref[l, 1], (B, H))], axis=0)  # (2B, H)

        # Recurrence, fully unrolled; rows [0:B] = forward, [B:2B] = backward (stacked batch).
        h = jnp.zeros((2 * B, H), f32)
        hs = []                                                                  # per-step (2B, H)
        for t in range(Tq):
            gi_t = jnp.concatenate([gi_f[t * B:(t + 1) * B],
                                    gi_b[(Tq - 1 - t) * B:(Tq - t) * B]], axis=0)    # (2B, 3H)
            h_wide = jnp.concatenate([h, h], axis=1) * mask2                     # (2B, 2H)
            gh = jnp.dot(h_wide.astype(bf16), whh_blk,
                         preferred_element_type=f32)                             # (2B, 3H)
            rz = jax.nn.sigmoid(gi_t[:, :2 * H] + gh[:, :2 * H])                 # one sigmoid r,z
            r = rz[:, :H]
            z = rz[:, H:]
            n = jnp.tanh(gi_t[:, 2 * H:] + r * (gh[:, 2 * H:] + bhn))
            h = (1.0 - z) * n + z * h
            hs.append(h)                                                         # stays in vregs

        henc.append(0.5 * (h[:B] + h[B:]))            # Encoder: hn.view(L, 2, B, H).mean(1)
        if l + 1 < L:
            # Next layer input: [fwd_t | bwd_t] per real time t, one concat per layer (no scratch).
            x_tm = jnp.concatenate(
                [jnp.concatenate([hs[t][:B], hs[Tq - 1 - t][B:]], axis=1) for t in range(Tq)],
                axis=0)                                                          # (Tq*B, 2H)

    # ---------------- multi-layer GRU decoder + layer-mean + scoring head ----------------
    aa = a_ref[...]                                                              # (N, Ta, D)
    x_tm = jnp.concatenate([_rows_at_t(aa, t) for t in range(Ta)], axis=0)       # (Ta*N, D)
    hsum = jnp.zeros((N, H), f32)
    for l in range(L):
        gi = jnp.dot(x_tm.astype(bf16), wih_d_ref[l],
                     preferred_element_type=f32) + bi_d_ref[l]                   # (Ta*N, 3H)
        whh_l = whh_d_ref[l]                                                     # (H, 3H) bf16
        bhn = bhn_d_ref[l]                                                       # (1, H)
        # Per-candidate broadcast of the encoder state, done in VMEM/vregs (no HBM (L,N,H) array).
        h = jnp.concatenate(
            [jnp.broadcast_to(henc[l][b:b + 1, :], (Na, H)) for b in range(B)], axis=0)  # (N, H)

        hs = []
        for t in range(Ta):
            gi_t = gi[t * N:(t + 1) * N]
            gh = jnp.dot(h.astype(bf16), whh_l, preferred_element_type=f32)
            rz = jax.nn.sigmoid(gi_t[:, :2 * H] + gh[:, :2 * H])
            r = rz[:, :H]
            z = rz[:, H:]
            n = jnp.tanh(gi_t[:, 2 * H:] + r * (gh[:, 2 * H:] + bhn))
            h = (1.0 - z) * n + z * h
            hs.append(h)

        hsum = hsum + h
        if l + 1 < L:
            x_tm = jnp.concatenate(hs, axis=0)                                   # (Ta*N, H)

    hmean = hsum * (1.0 / L)                          # Decoder: h.permute(1,2,0,3).mean(2)
    o_ref[...] = jnp.sum(hmean * wout_ref[...], axis=-1, keepdims=True) + bout_ref[...]


# --------------------------------------------------------------------------------------
# AccModel forward (single pallas_call) and pure-JAX reference
# --------------------------------------------------------------------------------------
def acc_model_forward(p, que, images, answers):
    """AccModel.forward: que (B,Tq) i32, images (B,Ni,C) f32, answers (B,Na,Ta) i32 -> (B,Na)."""
    # TODO(synk): the nn.Embedding gathers are done with jnp.take in the wrapper (plain XLA);
    # an in-kernel DMA gather is overkill at this vocabulary size.
    emb = p["emb"]
    q = jnp.take(emb, que, axis=0)                       # (B, Tq, D)
    a = jnp.take(emb, answers, axis=0)                   # (B, Na, Ta, D)
    B, Tq, D = q.shape
    _, Na, Ta, _ = a.shape
    N = B * Na
    a2 = a.reshape(N, Ta, D)                             # contiguous reshape (no transpose)

    o = pl.pallas_call(
        acc_model_kernel,
        out_shape=jax.ShapeDtypeStruct((N, 1), jnp.float32),
        in_specs=[_VMEM] * 20,
        out_specs=_VMEM,
        compiler_params=_COMPILER_PARAMS,
    )(q, a2, images,
      p["mlp_w"], p["mlp_b"], p["ln_g"], p["ln_b"],
      p["wf_q"], p["wf_i"], p["bf"],
      p["wih_enc"], p["whh_enc_blk"], p["bi_enc"], p["bhn_enc"],
      p["wih_dec"], p["whh_dec"], p["bi_dec"], p["bhn_dec"],
      p["wout"], p["bout"])
    return o.reshape(B, Na)


def _gru_layer_ref(x_tm, h0, wih, whh, bi, bhn):
    """Pure-JAX single-direction GRU layer (same bf16-matmul / f32-gate precision)."""
    H = whh.shape[0]
    gi = jnp.einsum("tnd,dg->tng", x_tm.astype(jnp.bfloat16), wih,
                    preferred_element_type=jnp.float32) + bi

    def step(h, gi_t):
        gh = jnp.dot(h.astype(jnp.bfloat16), whh, preferred_element_type=jnp.float32)
        rz = jax.nn.sigmoid(gi_t[:, :2 * H] + gh[:, :2 * H])
        r, z = rz[:, :H], rz[:, H:]
        n = jnp.tanh(gi_t[:, 2 * H:] + r * (gh[:, 2 * H:] + bhn))
        h_new = (1.0 - z) * n + z * h
        return h_new, h_new

    h_fin, outs = jax.lax.scan(step, h0, gi)
    return outs, h_fin


def acc_model_ref(p, que, images, answers):
    emb = p["emb"]
    q = jnp.take(emb, que, axis=0)
    a = jnp.take(emb, answers, axis=0)
    B, Tq, D = q.shape
    _, Na, Ta, _ = a.shape
    L = p["wih_enc"].shape[0]
    H = D
    N = B * Na

    # image MLP + fuser image half
    x = jnp.mean(images, axis=1)
    d = jnp.dot(jnp.maximum(x, 0.0).astype(jnp.bfloat16), p["mlp_w"],
                preferred_element_type=jnp.float32) + p["mlp_b"]
    mu = jnp.mean(d, axis=-1, keepdims=True)
    var = jnp.mean((d - mu) ** 2, axis=-1, keepdims=True)
    y = x + (d - mu) * jax.lax.rsqrt(var + 1e-5) * p["ln_g"] + p["ln_b"]
    img_part = jnp.dot(y.astype(jnp.bfloat16), p["wf_i"],
                       preferred_element_type=jnp.float32) + p["bf"]

    # fuser question half
    x0 = jnp.einsum("btd,dk->btk", q.astype(jnp.bfloat16), p["wf_q"],
                    preferred_element_type=jnp.float32) + img_part[:, None, :]
    x0 = jnp.transpose(x0, (1, 0, 2))                                    # (Tq, B, D)

    # bidirectional multi-layer encoder (only hn is used by AccModel)
    x_cur = jnp.concatenate([x0, jnp.zeros_like(x0)], axis=-1)
    h0z = jnp.zeros((B, H), jnp.float32)
    hns = []
    for l in range(L):
        whh_f = p["whh_enc_blk"][l, :H]
        whh_b = p["whh_enc_blk"][l, H:]
        of, hf = _gru_layer_ref(x_cur, h0z, p["wih_enc"][l, 0], whh_f,
                                p["bi_enc"][l, 0], p["bhn_enc"][l, 0])
        obr, hb = _gru_layer_ref(x_cur[::-1], h0z, p["wih_enc"][l, 1], whh_b,
                                 p["bi_enc"][l, 1], p["bhn_enc"][l, 1])
        x_cur = jnp.concatenate([of, obr[::-1]], axis=-1)
        hns.append(0.5 * (hf + hb))
    henc = jnp.stack(hns)                                                # (L, B, H)

    # decoder + scoring head
    h0 = jnp.broadcast_to(henc[:, :, None, :], (L, B, Na, H)).reshape(L, N, H)
    x_cur = jnp.transpose(a.reshape(N, Ta, D), (1, 0, 2))                # (Ta, N, D)
    hs = []
    for l in range(L):
        outs, hl = _gru_layer_ref(x_cur, h0[l], p["wih_dec"][l], p["whh_dec"][l],
                                  p["bi_dec"][l], p["bhn_dec"][l])
        x_cur = outs
        hs.append(hl)
    hmean = jnp.mean(jnp.stack(hs), axis=0)                              # (N, H)
    o = jnp.sum(hmean * p["wout"], axis=-1) + p["bout"][0, 0]
    return o.reshape(B, Na)


# --------------------------------------------------------------------------------------
# Parameters (PyTorch-style init, packed for the kernel)
# --------------------------------------------------------------------------------------
def init_params(key, V, D, C, L):
    H = D
    keys = iter(jax.random.split(key, 64))

    def unif(k, shape, fan_in):
        s = 1.0 / math.sqrt(fan_in)
        return jax.random.uniform(k, shape, jnp.float32, -s, s)

    def gru_dir(k, din, pad_to):
        k1, k2, k3, k4 = jax.random.split(k, 4)
        s = 1.0 / math.sqrt(H)
        w_ih = jax.random.uniform(k1, (3 * H, din), jnp.float32, -s, s)   # rows [r; z; n]
        w_hh = jax.random.uniform(k2, (3 * H, H), jnp.float32, -s, s)
        b_ih = jax.random.uniform(k3, (3 * H,), jnp.float32, -s, s)
        b_hh = jax.random.uniform(k4, (3 * H,), jnp.float32, -s, s)
        wih_t = w_ih.T                                                    # (din, 3H) cols [r|z|n]
        if pad_to > din:
            # pad rows are never read by the kernel (layer 0 uses a static [:H] slice)
            wih_t = jnp.concatenate(
                [wih_t, jnp.zeros((pad_to - din, 3 * H), jnp.float32)], axis=0)
        whh_t = w_hh.T                                                    # (H, 3H)
        # fold b_hh into the input-side bias for r,z (n keeps b_hn: it is multiplied by r)
        bi = jnp.concatenate([b_ih[:2 * H] + b_hh[:2 * H], b_ih[2 * H:]]).reshape(1, 3 * H)
        bhn = b_hh[2 * H:].reshape(1, H)
        return wih_t.astype(jnp.bfloat16), whh_t.astype(jnp.bfloat16), bi, bhn

    p = {}
    p["emb"] = jax.random.normal(next(keys), (V, D), jnp.float32)
    p["mlp_w"] = unif(next(keys), (C, C), C).astype(jnp.bfloat16)
    p["mlp_b"] = unif(next(keys), (1, C), C)
    p["ln_g"] = jnp.ones((1, C), jnp.float32)
    p["ln_b"] = jnp.zeros((1, C), jnp.float32)
    wf = unif(next(keys), (D + C, D), D + C)              # Fuser Linear(D+C -> D), (in, out)
    p["wf_q"] = wf[:D].astype(jnp.bfloat16)
    p["wf_i"] = wf[D:].astype(jnp.bfloat16)
    p["bf"] = unif(next(keys), (1, D), D + C)
    p["wout"] = unif(next(keys), (1, D), D)               # out: Linear(D -> 1)
    p["bout"] = unif(next(keys), (1, 1), D)

    wih_e, whh_e, bi_e, bhn_e = [], [], [], []
    for l in range(L):
        din = D if l == 0 else 2 * D
        dirs = [gru_dir(next(keys), din, 2 * D) for _ in range(2)]
        wih_e.append(jnp.stack([w for w, _, _, _ in dirs]))
        whh_e.append(jnp.concatenate([u for _, u, _, _ in dirs], axis=0))  # rows [fwd ; bwd]
        bi_e.append(jnp.stack([b for _, _, b, _ in dirs]))
        bhn_e.append(jnp.stack([bn for _, _, _, bn in dirs]))
    p["wih_enc"] = jnp.stack(wih_e)          # (L, 2, 2D, 3D) bf16
    p["whh_enc_blk"] = jnp.stack(whh_e)      # (L, 2D, 3D)    bf16
    p["bi_enc"] = jnp.stack(bi_e)            # (L, 2, 1, 3D)  f32
    p["bhn_enc"] = jnp.stack(bhn_e)          # (L, 2, 1, D)   f32

    wih_d, whh_d, bi_d, bhn_d = [], [], [], []
    for l in range(L):
        w, u, b, bn = gru_dir(next(keys), D, D)
        wih_d.append(w)
        whh_d.append(u)
        bi_d.append(b)
        bhn_d.append(bn)
    p["wih_dec"] = jnp.stack(wih_d)          # (L, D, 3D) bf16
    p["whh_dec"] = jnp.stack(whh_d)          # (L, D, 3D) bf16
    p["bi_dec"] = jnp.stack(bi_d)            # (L, 1, 3D) f32
    p["bhn_dec"] = jnp.stack(bhn_d)          # (L, 1, D)  f32
    return p


# --------------------------------------------------------------------------------------
if __name__ == "__main__":
    B, TQ, NA, TA = 2, 8, 4, 6     # batch, question len, #answer candidates, answer len
    D = 32                          # n_dim (embedding & GRU hidden size)
    C = 64                          # image_dim
    L = 2                           # GRU layers
    V = 50                          # vocab size

    key = jax.random.PRNGKey(0)
    kp, kq, ka, ki = jax.random.split(key, 4)
    params = init_params(kp, V, D, C, L)
    que = jax.random.randint(kq, (B, TQ), 0, V, dtype=jnp.int32)
    answers = jax.random.randint(ka, (B, NA, TA), 0, V, dtype=jnp.int32)
    images = jax.random.normal(ki, (B, 3, C), dtype=jnp.float32)

    o = jax.jit(acc_model_forward)(params, que, images, answers)
    o = jax.block_until_ready(o)

    o_ref = jax.jit(acc_model_ref)(params, que, images, answers)
    o_ref = jax.block_until_ready(o_ref)

    assert o.shape == (B, NA), o.shape
    assert bool(jnp.all(jnp.isfinite(o)))
    err = float(jnp.max(jnp.abs(o - o_ref)))
    assert err < 2e-3, f"max abs diff vs pure-JAX reference: {err}"
    print("KERNEL_OK")
</pallas_src>

<mosaic_0001>
module attributes {stable_mosaic.version = 11 : i64} {
  func.func @acc_model_kernel(%arg0: memref<2x8x32xf32, #tpu.memory_space<vmem>>, %arg1: memref<8x6x32xf32, #tpu.memory_space<vmem>>, %arg2: memref<2x3x64xf32, #tpu.memory_space<vmem>>, %arg3: memref<64x64xbf16, #tpu.memory_space<vmem>>, %arg4: memref<1x64xf32, #tpu.memory_space<vmem>>, %arg5: memref<1x64xf32, #tpu.memory_space<vmem>>, %arg6: memref<1x64xf32, #tpu.memory_space<vmem>>, %arg7: memref<32x32xbf16, #tpu.memory_space<vmem>>, %arg8: memref<64x32xbf16, #tpu.memory_space<vmem>>, %arg9: memref<1x32xf32, #tpu.memory_space<vmem>>, %arg10: memref<2x2x64x96xbf16, #tpu.memory_space<vmem>>, %arg11: memref<2x64x96xbf16, #tpu.memory_space<vmem>>, %arg12: memref<2x2x1x96xf32, #tpu.memory_space<vmem>>, %arg13: memref<2x2x1x32xf32, #tpu.memory_space<vmem>>, %arg14: memref<2x32x96xbf16, #tpu.memory_space<vmem>>, %arg15: memref<2x32x96xbf16, #tpu.memory_space<vmem>>, %arg16: memref<2x1x96xf32, #tpu.memory_space<vmem>>, %arg17: memref<2x1x32xf32, #tpu.memory_space<vmem>>, %arg18: memref<1x32xf32, #tpu.memory_space<vmem>>, %arg19: memref<1x1xf32, #tpu.memory_space<vmem>>, %arg20: memref<8x1xf32, #tpu.memory_space<vmem>>) attributes {dimension_semantics = [], scalar_prefetch = 0 : i64, scratch_operands = 0 : i64, tpu.core_type = #tpu.core_type<tc>} {
    %c0 = arith.constant 0 : index
    %c0_0 = arith.constant 0 : index
    %c0_1 = arith.constant 0 : index
    %0 = vector.load %arg2[%c0, %c0_0, %c0_1] : memref<2x3x64xf32, #tpu.memory_space<vmem>>, vector<2x3x64xf32>
    %cst = arith.constant dense<0.000000e+00> : vector<2x64xf32>
    %1 = vector.multi_reduction <add>, %0, %cst [1] : vector<2x3x64xf32> to vector<2x64xf32>
    %cst_2 = arith.constant 3.000000e+00 : f32
    %2 = vector.broadcast %cst_2 : f32 to vector<2x64xf32>
    %3 = arith.divf %1, %2 : vector<2x64xf32>
    %cst_3 = arith.constant 0.000000e+00 : f32
    %4 = vector.broadcast %cst_3 : f32 to vector<2x64xf32>
    %5 = arith.maximumf %3, %4 : vector<2x64xf32>
    %6 = arith.truncf %5 : vector<2x64xf32> to vector<2x64xbf16>
    %c0_4 = arith.constant 0 : index
    %c0_5 = arith.constant 0 : index
    %7 = vector.load %arg3[%c0_4, %c0_5] : memref<64x64xbf16, #tpu.memory_space<vmem>>, vector<64x64xbf16>
    %cst_6 = arith.constant dense<0.000000e+00> : vector<2x64xf32>
    %8 = tpu.matmul %6, %7, %cst_6 {dimension_numbers = #tpu.dot_dimension_numbers<[1], [0], [0], [1], [0, 0, 1, 1], [], []>} : vector<2x64xbf16>, vector<64x64xbf16>, vector<2x64xf32> -> vector<2x64xf32>
    %c0_7 = arith.constant 0 : index
    %c0_8 = arith.constant 0 : index
    %9 = vector.load %arg4[%c0_7, %c0_8] : memref<1x64xf32, #tpu.memory_space<vmem>>, vector<1x64xf32>
    %10 = vector.broadcast %9 : vector<1x64xf32> to vector<2x64xf32>
    %11 = arith.addf %8, %10 : vector<2x64xf32>
    %cst_9 = arith.constant dense<0.000000e+00> : vector<2xf32>
    %12 = vector.multi_reduction <add>, %11, %cst_9 [1] : vector<2x64xf32> to vector<2xf32>
    %13 = vector.shape_cast %12 : vector<2xf32> to vector<2x1xf32>
    %cst_10 = arith.constant 6.400000e+01 : f32
    %14 = vector.broadcast %cst_10 : f32 to vector<2x1xf32>
    %15 = arith.divf %13, %14 : vector<2x1xf32>
    %16 = vector.broadcast %15 : vector<2x1xf32> to vector<2x64xf32>
    %17 = arith.subf %11, %16 : vector<2x64xf32>
    %18 = arith.mulf %17, %17 : vector<2x64xf32>
    %cst_11 = arith.constant dense<0.000000e+00> : vector<2xf32>
    %19 = vector.multi_reduction <add>, %18, %cst_11 [1] : vector<2x64xf32> to vector<2xf32>
    %20 = vector.shape_cast %19 : vector<2xf32> to vector<2x1xf32>
    %cst_12 = arith.constant 6.400000e+01 : f32
    %21 = vector.broadcast %cst_12 : f32 to vector<2x1xf32>
    %22 = arith.divf %20, %21 : vector<2x1xf32>
    %23 = vector.broadcast %15 : vector<2x1xf32> to vector<2x64xf32>
    %24 = arith.subf %11, %23 : vector<2x64xf32>
    %cst_13 = arith.constant 9.99999974E-6 : f32
    %25 = vector.broadcast %cst_13 : f32 to vector<2x1xf32>
    %26 = arith.addf %22, %25 : vector<2x1xf32>
    %27 = math.rsqrt %26 : vector<2x1xf32>
    %28 = vector.broadcast %27 : vector<2x1xf32> to vector<2x64xf32>
    %29 = arith.mulf %24, %28 : vector<2x64xf32>
    %c0_14 = arith.constant 0 : index
    %c0_15 = arith.constant 0 : index
    %30 = vector.load %arg5[%c0_14, %c0_15] : memref<1x64xf32, #tpu.memory_space<vmem>>, vector<1x64xf32>
    %31 = vector.broadcast %30 : vector<1x64xf32> to vector<2x64xf32>
    %32 = arith.mulf %29, %31 : vector<2x64xf32>
    %33 = arith.addf %3, %32 : vector<2x64xf32>
    %c0_16 = arith.constant 0 : index
    %c0_17 = arith.constant 0 : index
    %34 = vector.load %arg6[%c0_16, %c0_17] : memref<1x64xf32, #tpu.memory_space<vmem>>, vector<1x64xf32>
    %35 = vector.broadcast %34 : vector<1x64xf32> to vector<2x64xf32>
    %36 = arith.addf %33, %35 : vector<2x64xf32>
    %37 = arith.truncf %36 : vector<2x64xf32> to vector<2x64xbf16>
    %c0_18 = arith.constant 0 : index
    %c0_19 = arith.constant 0 : index
    %38 = vector.load %arg8[%c0_18, %c0_19] : memref<64x32xbf16, #tpu.memory_space<vmem>>, vector<64x32xbf16>
    %cst_20 = arith.constant dense<0.000000e+00> : vector<2x32xf32>
    %39 = tpu.matmul %37, %38, %cst_20 {dimension_numbers = #tpu.dot_dimension_numbers<[1], [0], [0], [1], [0, 0, 1, 1], [], []>} : vector<2x64xbf16>, vector<64x32xbf16>, vector<2x32xf32> -> vector<2x32xf32>
    %c0_21 = arith.constant 0 : index
    %c0_22 = arith.constant 0 : index
    %40 = vector.load %arg9[%c0_21, %c0_22] : memref<1x32xf32, #tpu.memory_space<vmem>>, vector<1x32xf32>
    %41 = vector.broadcast %40 : vector<1x32xf32> to vector<2x32xf32>
    %42 = arith.addf %39, %41 : vector<2x32xf32>
    %c0_23 = arith.constant 0 : index
    %c0_24 = arith.constant 0 : index
    %c0_25 = arith.constant 0 : index
    %43 = vector.load %arg0[%c0_23, %c0_24, %c0_25] : memref<2x8x32xf32, #tpu.memory_space<vmem>>, vector<2x8x32xf32>
    %44 = vector.extract_strided_slice %43 {offsets = [0, 0, 0], sizes = [2, 1, 32], strides = [1, 1, 1]} : vector<2x8x32xf32> to vector<2x1x32xf32>
    %cst_26 = arith.constant dense<0.000000e+00> : vector<2x32xf32>
    %45 = vector.multi_reduction <add>, %44, %cst_26 [1] : vector<2x1x32xf32> to vector<2x32xf32>
    %46 = vector.extract_strided_slice %43 {offsets = [0, 1, 0], sizes = [2, 1, 32], strides = [1, 1, 1]} : vector<2x8x32xf32> to vector<2x1x32xf32>
    %cst_27 = arith.constant dense<0.000000e+00> : vector<2x32xf32>
    %47 = vector.multi_reduction <add>, %46, %cst_27 [1] : vector<2x1x32xf32> to vector<2x32xf32>
    %48 = vector.extract_strided_slice %43 {offsets = [0, 2, 0], sizes = [2, 1, 32], strides = [1, 1, 1]} : vector<2x8x32xf32> to vector<2x1x32xf32>
    %cst_28 = arith.constant dense<0.000000e+00> : vector<2x32xf32>
    %49 = vector.multi_reduction <add>, %48, %cst_28 [1] : vector<2x1x32xf32> to vector<2x32xf32>
    %50 = vector.extract_strided_slice %43 {offsets = [0, 3, 0], sizes = [2, 1, 32], strides = [1, 1, 1]} : vector<2x8x32xf32> to vector<2x1x32xf32>
    %cst_29 = arith.constant dense<0.000000e+00> : vector<2x32xf32>
    %51 = vector.multi_reduction <add>, %50, %cst_29 [1] : vector<2x1x32xf32> to vector<2x32xf32>
    %52 = vector.extract_strided_slice %43 {offsets = [0, 4, 0], sizes = [2, 1, 32], strides = [1, 1, 1]} : vector<2x8x32xf32> to vector<2x1x32xf32>
    %cst_30 = arith.constant dense<0.000000e+00> : vector<2x32xf32>
    %53 = vector.multi_reduction <add>, %52, %cst_30 [1] : vector<2x1x32xf32> to vector<2x32xf32>
    %54 = vector.extract_strided_slice %43 {offsets = [0, 5, 0], sizes = [2, 1, 32], strides = [1, 1, 1]} : vector<2x8x32xf32> to vector<2x1x32xf32>
    %cst_31 = arith.constant dense<0.000000e+00> : vector<2x32xf32>
    %55 = vector.multi_reduction <add>, %54, %cst_31 [1] : vector<2x1x32xf32> to vector<2x32xf32>
    %56 = vector.extract_strided_slice %43 {offsets = [0, 6, 0], sizes = [2, 1, 32], strides = [1, 1, 1]} : vector<2x8x32xf32> to vector<2x1x32xf32>
    %cst_32 = arith.constant dense<0.000000e+00> : vector<2x32xf32>
    %57 = vector.multi_reduction <add>, %56, %cst_32 [1] : vector<2x1x32xf32> to vector<2x32xf32>
    %58 = vector.extract_strided_slice %43 {offsets = [0, 7, 0], sizes = [2, 1, 32], strides = [1, 1, 1]} : vector<2x8x32xf32> to vector<2x1x32xf32>
    %cst_33 = arith.constant dense<0.000000e+00> : vector<2x32xf32>
    %59 = vector.multi_reduction <add>, %58, %cst_33 [1] : vector<2x1x32xf32> to vector<2x32xf32>
    %60 = tpu.concatenate %45, %47, %49, %51, %53, %55, %57, %59 in 0 : vector<2x32xf32>, vector<2x32xf32>, vector<2x32xf32>, vector<2x32xf32>, vector<2x32xf32>, vector<2x32xf32>, vector<2x32xf32>, vector<2x32xf32> -> vector<16x32xf32>
    %61 = tpu.concatenate %42, %42, %42, %42, %42, %42, %42, %42 in 0 : vector<2x32xf32>, vector<2x32xf32>, vector<2x32xf32>, vector<2x32xf32>, vector<2x32xf32>, vector<2x32xf32>, vector<2x32xf32>, vector<2x32xf32> -> vector<16x32xf32>
    %62 = arith.truncf %60 : vector<16x32xf32> to vector<16x32xbf16>
    %c0_34 = arith.constant 0 : index
    %c0_35 = arith.constant 0 : index
    %63 = vector.load %arg7[%c0_34, %c0_35] : memref<32x32xbf16, #tpu.memory_space<vmem>>, vector<32x32xbf16>
    %cst_36 = arith.constant dense<0.000000e+00> : vector<16x32xf32>
    %64 = tpu.matmul %62, %63, %cst_36 {dimension_numbers = #tpu.dot_dimension_numbers<[1], [0], [0], [1], [0, 0, 1, 1], [], []>} : vector<16x32xbf16>, vector<32x32xbf16>, vector<16x32xf32> -> vector<16x32xf32>
    %65 = arith.addf %64, %61 : vector<16x32xf32>
    %cst_37 = arith.constant 1.000000e+00 : f32
    %66 = vector.broadcast %cst_37 : f32 to vector<2x32xf32>
    %cst_38 = arith.constant 0.000000e+00 : f32
    %67 = vector.broadcast %cst_38 : f32 to vector<2x32xf32>
    %68 = tpu.concatenate %66, %67 in 1 : vector<2x32xf32>, vector<2x32xf32> -> vector<2x64xf32>
    %69 = tpu.concatenate %67, %66 in 1 : vector<2x32xf32>, vector<2x32xf32> -> vector<2x64xf32>
    %70 = tpu.concatenate %68, %69 in 0 : vector<2x64xf32>, vector<2x64xf32> -> vector<4x64xf32>
    %c0_39 = arith.constant 0 : index
    %c0_40 = arith.constant 0 : index
    %c0_41 = arith.constant 0 : index
    %c0_42 = arith.constant 0 : index
    %71 = vector.load %arg10[%c0_39, %c0_40, %c0_41, %c0_42] : memref<2x2x64x96xbf16, #tpu.memory_space<vmem>>, vector<1x1x64x96xbf16>
    %72 = vector.shape_cast %71 : vector<1x1x64x96xbf16> to vector<64x96xbf16>
    %c0_43 = arith.constant 0 : index
    %c1 = arith.constant 1 : index
    %c0_44 = arith.constant 0 : index
    %c0_45 = arith.constant 0 : index
    %73 = vector.load %arg10[%c0_43, %c1, %c0_44, %c0_45] : memref<2x2x64x96xbf16, #tpu.memory_space<vmem>>, vector<1x1x64x96xbf16>
    %74 = vector.shape_cast %73 : vector<1x1x64x96xbf16> to vector<64x96xbf16>
    %75 = vector.extract_strided_slice %72 {offsets = [0, 0], sizes = [32, 96], strides = [1, 1]} : vector<64x96xbf16> to vector<32x96xbf16>
    %76 = vector.extract_strided_slice %74 {offsets = [0, 0], sizes = [32, 96], strides = [1, 1]} : vector<64x96xbf16> to vector<32x96xbf16>
    %77 = arith.truncf %65 : vector<16x32xf32> to vector<16x32xbf16>
    %cst_46 = arith.constant dense<0.000000e+00> : vector<16x96xf32>
    %78 = tpu.matmul %77, %75, %cst_46 {dimension_numbers = #tpu.dot_dimension_numbers<[1], [0], [0], [1], [0, 0, 1, 1], [], []>} : vector<16x32xbf16>, vector<32x96xbf16>, vector<16x96xf32> -> vector<16x96xf32>
    %c0_47 = arith.constant 0 : index
    %c0_48 = arith.constant 0 : index
    %c0_49 = arith.constant 0 : index
    %c0_50 = arith.constant 0 : index
    %79 = vector.load %arg12[%c0_47, %c0_48, %c0_49, %c0_50] : memref<2x2x1x96xf32, #tpu.memory_space<vmem>>, vector<1x1x1x96xf32>
    %80 = vector.shape_cast %79 : vector<1x1x1x96xf32> to vector<1x96xf32>
    %81 = vector.broadcast %80 : vector<1x96xf32> to vector<16x96xf32>
    %82 = arith.addf %78, %81 : vector<16x96xf32>
    %cst_51 = arith.constant dense<0.000000e+00> : vector<16x96xf32>
    %83 = tpu.matmul %77, %76, %cst_51 {dimension_numbers = #tpu.dot_dimension_numbers<[1], [0], [0], [1], [0, 0, 1, 1], [], []>} : vector<16x32xbf16>, vector<32x96xbf16>, vector<16x96xf32> -> vector<16x96xf32>
    %c0_52 = arith.constant 0 : index
    %c1_53 = arith.constant 1 : index
    %c0_54 = arith.constant 0 : index
    %c0_55 = arith.constant 0 : index
    %84 = vector.load %arg12[%c0_52, %c1_53, %c0_54, %c0_55] : memref<2x2x1x96xf32, #tpu.memory_space<vmem>>, vector<1x1x1x96xf32>
    %85 = vector.shape_cast %84 : vector<1x1x1x96xf32> to vector<1x96xf32>
    %86 = vector.broadcast %85 : vector<1x96xf32> to vector<16x96xf32>
    %87 = arith.addf %83, %86 : vector<16x96xf32>
    %c0_56 = arith.constant 0 : index
    %c0_57 = arith.constant 0 : index
    %c0_58 = arith.constant 0 : index
    %88 = vector.load %arg11[%c0_56, %c0_57, %c0_58] : memref<2x64x96xbf16, #tpu.memory_space<vmem>>, vector<1x64x96xbf16>
    %89 = vector.shape_cast %88 : vector<1x64x96xbf16> to vector<64x96xbf16>
    %c0_59 = arith.constant 0 : index
    %c0_60 = arith.constant 0 : index
    %c0_61 = arith.constant 0 : index
    %c0_62 = arith.constant 0 : index
    %90 = vector.load %arg13[%c0_59, %c0_60, %c0_61, %c0_62] : memref<2x2x1x32xf32, #tpu.memory_space<vmem>>, vector<1x1x1x32xf32>
    %91 = vector.shape_cast %90 : vector<1x1x1x32xf32> to vector<1x32xf32>
    %92 = vector.shape_cast %91 : vector<1x32xf32> to vector<1x32xf32>
    %93 = vector.broadcast %92 : vector<1x32xf32> to vector<2x32xf32>
    %c0_63 = arith.constant 0 : index
    %c1_64 = arith.constant 1 : index
    %c0_65 = arith.constant 0 : index
    %c0_66 = arith.constant 0 : index
    %94 = vector.load %arg13[%c0_63, %c1_64, %c0_65, %c0_66] : memref<2x2x1x32xf32, #tpu.memory_space<vmem>>, vector<1x1x1x32xf32>
    %95 = vector.shape_cast %94 : vector<1x1x1x32xf32> to vector<1x32xf32>
    %96 = vector.shape_cast %95 : vector<1x32xf32> to vector<1x32xf32>
    %97 = vector.broadcast %96 : vector<1x32xf32> to vector<2x32xf32>
    %98 = tpu.concatenate %93, %97 in 0 : vector<2x32xf32>, vector<2x32xf32> -> vector<4x32xf32>
    %cst_67 = arith.constant 0.000000e+00 : f32
    %99 = vector.broadcast %cst_67 : f32 to vector<4x32xf32>
    %100 = vector.extract_strided_slice %82 {offsets = [0, 0], sizes = [2, 96], strides = [1, 1]} : vector<16x96xf32> to vector<2x96xf32>
    %101 = vector.extract_strided_slice %87 {offsets = [14, 0], sizes = [2, 96], strides = [1, 1]} : vector<16x96xf32> to vector<2x96xf32>
    %102 = tpu.concatenate %100, %101 in 0 : vector<2x96xf32>, vector<2x96xf32> -> vector<4x96xf32>
    %103 = tpu.concatenate %99, %99 in 1 : vector<4x32xf32>, vector<4x32xf32> -> vector<4x64xf32>
    %104 = arith.mulf %103, %70 : vector<4x64xf32>
    %105 = arith.truncf %104 : vector<4x64xf32> to vector<4x64xbf16>
    %cst_68 = arith.constant dense<0.000000e+00> : vector<4x96xf32>
    %106 = tpu.matmul %105, %89, %cst_68 {dimension_numbers = #tpu.dot_dimension_numbers<[1], [0], [0], [1], [0, 0, 1, 1], [], []>} : vector<4x64xbf16>, vector<64x96xbf16>, vector<4x96xf32> -> vector<4x96xf32>
    %107 = vector.extract_strided_slice %102 {offsets = [0, 0], sizes = [4, 64], strides = [1, 1]} : vector<4x96xf32> to vector<4x64xf32>
    %108 = vector.extract_strided_slice %106 {offsets = [0, 0], sizes = [4, 64], strides = [1, 1]} : vector<4x96xf32> to vector<4x64xf32>
    %109 = arith.addf %107, %108 : vector<4x64xf32>
    %110 = arith.negf %109 : vector<4x64xf32>
    %111 = math.exp %110 : vector<4x64xf32>
    %cst_69 = arith.constant 1.000000e+00 : f32
    %112 = vector.broadcast %cst_69 : f32 to vector<4x64xf32>
    %113 = arith.addf %112, %111 : vector<4x64xf32>
    %114 = arith.divf %112, %113 : vector<4x64xf32>
    %115 = vector.extract_strided_slice %114 {offsets = [0, 0], sizes = [4, 32], strides = [1, 1]} : vector<4x64xf32> to vector<4x32xf32>
    %116 = vector.extract_strided_slice %114 {offsets = [0, 32], sizes = [4, 32], strides = [1, 1]} : vector<4x64xf32> to vector<4x32xf32>
    %117 = vector.extract_strided_slice %102 {offsets = [0, 64], sizes = [4, 32], strides = [1, 1]} : vector<4x96xf32> to vector<4x32xf32>
    %118 = vector.extract_strided_slice %106 {offsets = [0, 64], sizes = [4, 32], strides = [1, 1]} : vector<4x96xf32> to vector<4x32xf32>
    %119 = arith.addf %118, %98 : vector<4x32xf32>
    %120 = arith.mulf %115, %119 : vector<4x32xf32>
    %121 = arith.addf %117, %120 : vector<4x32xf32>
    %122 = math.tanh %121 : vector<4x32xf32>
    %cst_70 = arith.constant 1.000000e+00 : f32
    %123 = vector.broadcast %cst_70 : f32 to vector<4x32xf32>
    %124 = arith.subf %123, %116 : vector<4x32xf32>
    %125 = arith.mulf %124, %122 : vector<4x32xf32>
    %126 = arith.mulf %116, %99 : vector<4x32xf32>
    %127 = arith.addf %125, %126 : vector<4x32xf32>
    %128 = vector.extract_strided_slice %82 {offsets = [2, 0], sizes = [2, 96], strides = [1, 1]} : vector<16x96xf32> to vector<2x96xf32>
    %129 = vector.extract_strided_slice %87 {offsets = [12, 0], sizes = [2, 96], strides = [1, 1]} : vector<16x96xf32> to vector<2x96xf32>
    %130 = tpu.concatenate %128, %129 in 0 : vector<2x96xf32>, vector<2x96xf32> -> vector<4x96xf32>
    %131 = tpu.concatenate %127, %127 in 1 : vector<4x32xf32>, vector<4x32xf32> -> vector<4x64xf32>
    %132 = arith.mulf %131, %70 : vector<4x64xf32>
    %133 = arith.truncf %132 : vector<4x64xf32> to vector<4x64xbf16>
    %cst_71 = arith.constant dense<0.000000e+00> : vector<4x96xf32>
    %134 = tpu.matmul %133, %89, %cst_71 {dimension_numbers = #tpu.dot_dimension_numbers<[1], [0], [0], [1], [0, 0, 1, 1], [], []>} : vector<4x64xbf16>, vector<64x96xbf16>, vector<4x96xf32> -> vector<4x96xf32>
    %135 = vector.extract_strided_slice %130 {offsets = [0, 0], sizes = [4, 64], strides = [1, 1]} : vector<4x96xf32> to vector<4x64xf32>
    %136 = vector.extract_strided_slice %134 {offsets = [0, 0], sizes = [4, 64], strides = [1, 1]} : vector<4x96xf32> to vector<4x64xf32>
    %137 = arith.addf %135, %136 : vector<4x64xf32>
    %138 = arith.negf %137 : vector<4x64xf32>
    %139 = math.exp %138 : vector<4x64xf32>
    %cst_72 = arith.constant 1.000000e+00 : f32
    %140 = vector.broadcast %cst_72 : f32 to vector<4x64xf32>
    %141 = arith.addf %140, %139 : vector<4x64xf32>
    %142 = arith.divf %140, %141 : vector<4x64xf32>
    %143 = vector.extract_strided_slice %142 {offsets = [0, 0], sizes = [4, 32], strides = [1, 1]} : vector<4x64xf32> to vector<4x32xf32>
    %144 = vector.extract_strided_slice %142 {offsets = [0, 32], sizes = [4, 32], strides = [1, 1]} : vector<4x64xf32> to vector<4x32xf32>
    %145 = vector.extract_strided_slice %130 {offsets = [0, 64], sizes = [4, 32], strides = [1, 1]} : vector<4x96xf32> to vector<4x32xf32>
    %146 = vector.extract_strided_slice %134 {offsets = [0, 64], sizes = [4, 32], strides = [1, 1]} : vector<4x96xf32> to vector<4x32xf32>
    %147 = arith.addf %146, %98 : vector<4x32xf32>
    %148 = arith.mulf %143, %147 : vector<4x32xf32>
    %149 = arith.addf %145, %148 : vector<4x32xf32>
    %150 = math.tanh %149 : vector<4x32xf32>
    %cst_73 = arith.constant 1.000000e+00 : f32
    %151 = vector.broadcast %cst_73 : f32 to vector<4x32xf32>
    %152 = arith.subf %151, %144 : vector<4x32xf32>
    %153 = arith.mulf %152, %150 : vector<4x32xf32>
    %154 = arith.mulf %144, %127 : vector<4x32xf32>
    %155 = arith.addf %153, %154 : vector<4x32xf32>
    %156 = vector.extract_strided_slice %82 {offsets = [4, 0], sizes = [2, 96], strides = [1, 1]} : vector<16x96xf32> to vector<2x96xf32>
    %157 = vector.extract_strided_slice %87 {offsets = [10, 0], sizes = [2, 96], strides = [1, 1]} : vector<16x96xf32> to vector<2x96xf32>
    %158 = tpu.concatenate %156, %157 in 0 : vector<2x96xf32>, vector<2x96xf32> -> vector<4x96xf32>
    %159 = tpu.concatenate %155, %155 in 1 : vector<4x32xf32>, vector<4x32xf32> -> vector<4x64xf32>
    %160 = arith.mulf %159, %70 : vector<4x64xf32>
    %161 = arith.truncf %160 : vector<4x64xf32> to vector<4x64xbf16>
    %cst_74 = arith.constant dense<0.000000e+00> : vector<4x96xf32>
    %162 = tpu.matmul %161, %89, %cst_74 {dimension_numbers = #tpu.dot_dimension_numbers<[1], [0], [0], [1], [0, 0, 1, 1], [], []>} : vector<4x64xbf16>, vector<64x96xbf16>, vector<4x96xf32> -> vector<4x96xf32>
    %163 = vector.extract_strided_slice %158 {offsets = [0, 0], sizes = [4, 64], strides = [1, 1]} : vector<4x96xf32> to vector<4x64xf32>
    %164 = vector.extract_strided_slice %162 {offsets = [0, 0], sizes = [4, 64], strides = [1, 1]} : vector<4x96xf32> to vector<4x64xf32>
    %165 = arith.addf %163, %164 : vector<4x64xf32>
    %166 = arith.negf %165 : vector<4x64xf32>
    %167 = math.exp %166 : vector<4x64xf32>
    %cst_75 = arith.constant 1.000000e+00 : f32
    %168 = vector.broadcast %cst_75 : f32 to vector<4x64xf32>
    %169 = arith.addf %168, %167 : vector<4x64xf32>
    %170 = arith.divf %168, %169 : vector<4x64xf32>
    %171 = vector.extract_strided_slice %170 {offsets = [0, 0], sizes = [4, 32], strides = [1, 1]} : vector<4x64xf32> to vector<4x32xf32>
    %172 = vector.extract_strided_slice %170 {offsets = [0, 32], sizes = [4, 32], strides = [1, 1]} : vector<4x64xf32> to vector<4x32xf32>
    %173 = vector.extract_strided_slice %158 {offsets = [0, 64], sizes = [4, 32], strides = [1, 1]} : vector<4x96xf32> to vector<4x32xf32>
    %174 = vector.extract_strided_slice %162 {offsets = [0, 64], sizes = [4, 32], strides = [1, 1]} : vector<4x96xf32> to vector<4x32xf32>
    %175 = arith.addf %174, %98 : vector<4x32xf32>
    %176 = arith.mulf %171, %175 : vector<4x32xf32>
    %177 = arith.addf %173, %176 : vector<4x32xf32>
    %178 = math.tanh %177 : vector<4x32xf32>
    %cst_76 = arith.constant 1.000000e+00 : f32
    %179 = vector.broadcast %cst_76 : f32 to vector<4x32xf32>
    %180 = arith.subf %179, %172 : vector<4x32xf32>
    %181 = arith.mulf %180, %178 : vector<4x32xf32>
    %182 = arith.mulf %172, %155 : vector<4x32xf32>
    %183 = arith.addf %181, %182 : vector<4x32xf32>
    %184 = vector.extract_strided_slice %82 {offsets = [6, 0], sizes = [2, 96], strides = [1, 1]} : vector<16x96xf32> to vector<2x96xf32>
    %185 = vector.extract_strided_slice %87 {offsets = [8, 0], sizes = [2, 96], strides = [1, 1]} : vector<16x96xf32> to vector<2x96xf32>
    %186 = tpu.concatenate %184, %185 in 0 : vector<2x96xf32>, vector<2x96xf32> -> vector<4x96xf32>
    %187 = tpu.concatenate %183, %183 in 1 : vector<4x32xf32>, vector<4x32xf32> -> vector<4x64xf32>
    %188 = arith.mulf %187, %70 : vector<4x64xf32>
    %189 = arith.truncf %188 : vector<4x64xf32> to vector<4x64xbf16>
    %cst_77 = arith.constant dense<0.000000e+00> : vector<4x96xf32>
    %190 = tpu.matmul %189, %89, %cst_77 {dimension_numbers = #tpu.dot_dimension_numbers<[1], [0], [0], [1], [0, 0, 1, 1], [], []>} : vector<4x64xbf16>, vector<64x96xbf16>, vector<4x96xf32> -> vector<4x96xf32>
    %191 = vector.extract_strided_slice %186 {offsets = [0, 0], sizes = [4, 64], strides = [1, 1]} : vector<4x96xf32> to vector<4x64xf32>
    %192 = vector.extract_strided_slice %190 {offsets = [0, 0], sizes = [4, 64], strides = [1, 1]} : vector<4x96xf32> to vector<4x64xf32>
    %193 = arith.addf %191, %192 : vector<4x64xf32>
    %194 = arith.negf %193 : vector<4x64xf32>
    %195 = math.exp %194 : vector<4x64xf32>
    %cst_78 = arith.constant 1.000000e+00 : f32
    %196 = vector.broadcast %cst_78 : f32 to vector<4x64xf32>
    %197 = arith.addf %196, %195 : vector<4x64xf32>
    %198 = arith.divf %196, %197 : vector<4x64xf32>
    %199 = vector.extract_strided_slice %198 {offsets = [0, 0], sizes = [4, 32], strides = [1, 1]} : vector<4x64xf32> to vector<4x32xf32>
    %200 = vector.extract_strided_slice %198 {offsets = [0, 32], sizes = [4, 32], strides = [1, 1]} : vector<4x64xf32> to vector<4x32xf32>
    %201 = vector.extract_strided_slice %186 {offsets = [0, 64], sizes = [4, 32], strides = [1, 1]} : vector<4x96xf32> to vector<4x32xf32>
    %202 = vector.extract_strided_slice %190 {offsets = [0, 64], sizes = [4, 32], strides = [1, 1]} : vector<4x96xf32> to vector<4x32xf32>
    %203 = arith.addf %202, %98 : vector<4x32xf32>
    %204 = arith.mulf %199, %203 : vector<4x32xf32>
    %205 = arith.addf %201, %204 : vector<4x32xf32>
    %206 = math.tanh %205 : vector<4x32xf32>
    %cst_79 = arith.constant 1.000000e+00 : f32
    %207 = vector.broadcast %cst_79 : f32 to vector<4x32xf32>
    %208 = arith.subf %207, %200 : vector<4x32xf32>
    %209 = arith.mulf %208, %206 : vector<4x32xf32>
    %210 = arith.mulf %200, %183 : vector<4x32xf32>
    %211 = arith.addf %209, %210 : vector<4x32xf32>
    %212 = vector.extract_strided_slice %82 {offsets = [8, 0], sizes = [2, 96], strides = [1, 1]} : vector<16x96xf32> to vector<2x96xf32>
    %213 = vector.extract_strided_slice %87 {offsets = [6, 0], sizes = [2, 96], strides = [1, 1]} : vector<16x96xf32> to vector<2x96xf32>
    %214 = tpu.concatenate %212, %213 in 0 : vector<2x96xf32>, vector<2x96xf32> -> vector<4x96xf32>
    %215 = tpu.concatenate %211, %211 in 1 : vector<4x32xf32>, vector<4x32xf32> -> vector<4x64xf32>
    %216 = arith.mulf %215, %70 : vector<4x64xf32>
    %217 = arith.truncf %216 : vector<4x64xf32> to vector<4x64xbf16>
    %cst_80 = arith.constant dense<0.000000e+00> : vector<4x96xf32>
    %218 = tpu.matmul %217, %89, %cst_80 {dimension_numbers = #tpu.dot_dimension_numbers<[1], [0], [0], [1], [0, 0, 1, 1], [], []>} : vector<4x64xbf16>, vector<64x96xbf16>, vector<4x96xf32> -> vector<4x96xf32>
    %219 = vector.extract_strided_slice %214 {offsets = [0, 0], sizes = [4, 64], strides = [1, 1]} : vector<4x96xf32> to vector<4x64xf32>
    %220 = vector.extract_strided_slice %218 {offsets = [0, 0], sizes = [4, 64], strides = [1, 1]} : vector<4x96xf32> to vector<4x64xf32>
    %221 = arith.addf %219, %220 : vector<4x64xf32>
    %222 = arith.negf %221 : vector<4x64xf32>
    %223 = math.exp %222 : vector<4x64xf32>
    %cst_81 = arith.constant 1.000000e+00 : f32
    %224 = vector.broadcast %cst_81 : f32 to vector<4x64xf32>
    %225 = arith.addf %224, %223 : vector<4x64xf32>
    %226 = arith.divf %224, %225 : vector<4x64xf32>
    %227 = vector.extract_strided_slice %226 {offsets = [0, 0], sizes = [4, 32], strides = [1, 1]} : vector<4x64xf32> to vector<4x32xf32>
    %228 = vector.extract_strided_slice %226 {offsets = [0, 32], sizes = [4, 32], strides = [1, 1]} : vector<4x64xf32> to vector<4x32xf32>
    %229 = vector.extract_strided_slice %214 {offsets = [0, 64], sizes = [4, 32], strides = [1, 1]} : vector<4x96xf32> to vector<4x32xf32>
    %230 = vector.extract_strided_slice %218 {offsets = [0, 64], sizes = [4, 32], strides = [1, 1]} : vector<4x96xf32> to vector<4x32xf32>
    %231 = arith.addf %230, %98 : vector<4x32xf32>
    %232 = arith.mulf %227, %231 : vector<4x32xf32>
    %233 = arith.addf %229, %232 : vector<4x32xf32>
    %234 = math.tanh %233 : vector<4x32xf32>
    %cst_82 = arith.constant 1.000000e+00 : f32
    %235 = vector.broadcast %cst_82 : f32 to vector<4x32xf32>
    %236 = arith.subf %235, %228 : vector<4x32xf32>
    %237 = arith.mulf %236, %234 : vector<4x32xf32>
    %238 = arith.mulf %228, %211 : vector<4x32xf32>
    %239 = arith.addf %237, %238 : vector<4x32xf32>
    %240 = vector.extract_strided_slice %82 {offsets = [10, 0], sizes = [2, 96], strides = [1, 1]} : vector<16x96xf32> to vector<2x96xf32>
    %241 = vector.extract_strided_slice %87 {offsets = [4, 0], sizes = [2, 96], strides = [1, 1]} : vector<16x96xf32> to vector<2x96xf32>
    %242 = tpu.concatenate %240, %241 in 0 : vector<2x96xf32>, vector<2x96xf32> -> vector<4x96xf32>
    %243 = tpu.concatenate %239, %239 in 1 : vector<4x32xf32>, vector<4x32xf32> -> vector<4x64xf32>
    %244 = arith.mulf %243, %70 : vector<4x64xf32>
    %245 = arith.truncf %244 : vector<4x64xf32> to vector<4x64xbf16>
    %cst_83 = arith.constant dense<0.000000e+00> : vector<4x96xf32>
    %246 = tpu.matmul %245, %89, %cst_83 {dimension_numbers = #tpu.dot_dimension_numbers<[1], [0], [0], [1], [0, 0, 1, 1], [], []>} : vector<4x64xbf16>, vector<64x96xbf16>, vector<4x96xf32> -> vector<4x96xf32>
    %247 = vector.extract_strided_slice %242 {offsets = [0, 0], sizes = [4, 64], strides = [1, 1]} : vector<4x96xf32> to vector<4x64xf32>
    %248 = vector.extract_strided_slice %246 {offsets = [0, 0], sizes = [4, 64], strides = [1, 1]} : vector<4x96xf32> to vector<4x64xf32>
    %249 = arith.addf %247, %248 : vector<4x64xf32>
    %250 = arith.negf %249 : vector<4x64xf32>
    %251 = math.exp %250 : vector<4x64xf32>
    %cst_84 = arith.constant 1.000000e+00 : f32
    %252 = vector.broadcast %cst_84 : f32 to vector<4x64xf32>
    %253 = arith.addf %252, %251 : vector<4x64xf32>
    %254 = arith.divf %252, %253 : vector<4x64xf32>
    %255 = vector.extract_strided_slice %254 {offsets = [0, 0], sizes = [4, 32], strides = [1, 1]} : vector<4x64xf32> to vector<4x32xf32>
    %256 = vector.extract_strided_slice %254 {offsets = [0, 32], sizes = [4, 32], strides = [1, 1]} : vector<4x64xf32> to vector<4x32xf32>
    %257 = vector.extract_strided_slice %242 {offsets = [0, 64], sizes = [4, 32], strides = [1, 1]} : vector<4x96xf32> to vector<4x32xf32>
    %258 = vector.extract_strided_slice %246 {offsets = [0, 64], sizes = [4, 32], strides = [1, 1]} : vector<4x96xf32> to vector<4x32xf32>
    %259 = arith.addf %258, %98 : vector<4x32xf32>
    %260 = arith.mulf %255, %259 : vector<4x32xf32>
    %261 = arith.addf %257, %260 : vector<4x32xf32>
    %262 = math.tanh %261 : vector<4x32xf32>
    %cst_85 = arith.constant 1.000000e+00 : f32
    %263 = vector.broadcast %cst_85 : f32 to vector<4x32xf32>
    %264 = arith.subf %263, %256 : vector<4x32xf32>
    %265 = arith.mulf %264, %262 : vector<4x32xf32>
    %266 = arith.mulf %256, %239 : vector<4x32xf32>
    %267 = arith.addf %265, %266 : vector<4x32xf32>
    %268 = vector.extract_strided_slice %82 {offsets = [12, 0], sizes = [2, 96], strides = [1, 1]} : vector<16x96xf32> to vector<2x96xf32>
    %269 = vector.extract_strided_slice %87 {offsets = [2, 0], sizes = [2, 96], strides = [1, 1]} : vector<16x96xf32> to vector<2x96xf32>
    %270 = tpu.concatenate %268, %269 in 0 : vector<2x96xf32>, vector<2x96xf32> -> vector<4x96xf32>
    %271 = tpu.concatenate %267, %267 in 1 : vector<4x32xf32>, vector<4x32xf32> -> vector<4x64xf32>
    %272 = arith.mulf %271, %70 : vector<4x64xf32>
    %273 = arith.truncf %272 : vector<4x64xf32> to vector<4x64xbf16>
    %cst_86 = arith.constant dense<0.000000e+00> : vector<4x96xf32>
    %274 = tpu.matmul %273, %89, %cst_86 {dimension_numbers = #tpu.dot_dimension_numbers<[1], [0], [0], [1], [0, 0, 1, 1], [], []>} : vector<4x64xbf16>, vector<64x96xbf16>, vector<4x96xf32> -> vector<4x96xf32>
    %275 = vector.extract_strided_slice %270 {offsets = [0, 0], sizes = [4, 64], strides = [1, 1]} : vector<4x96xf32> to vector<4x64xf32>
    %276 = vector.extract_strided_slice %274 {offsets = [0, 0], sizes = [4, 64], strides = [1, 1]} : vector<4x96xf32> to vector<4x64xf32>
    %277 = arith.addf %275, %276 : vector<4x64xf32>
    %278 = arith.negf %277 : vector<4x64xf32>
    %279 = math.exp %278 : vector<4x64xf32>
    %cst_87 = arith.constant 1.000000e+00 : f32
    %280 = vector.broadcast %cst_87 : f32 to vector<4x64xf32>
    %281 = arith.addf %280, %279 : vector<4x64xf32>
    %282 = arith.divf %280, %281 : vector<4x64xf32>
    %283 = vector.extract_strided_slice %282 {offsets = [0, 0], sizes = [4, 32], strides = [1, 1]} : vector<4x64xf32> to vector<4x32xf32>
    %284 = vector.extract_strided_slice %282 {offsets = [0, 32], sizes = [4, 32], strides = [1, 1]} : vector<4x64xf32> to vector<4x32xf32>
    %285 = vector.extract_strided_slice %270 {offsets = [0, 64], sizes = [4, 32], strides = [1, 1]} : vector<4x96xf32> to vector<4x32xf32>
    %286 = vector.extract_strided_slice %274 {offsets = [0, 64], sizes = [4, 32], strides = [1, 1]} : vector<4x96xf32> to vector<4x32xf32>
    %287 = arith.addf %286, %98 : vector<4x32xf32>
    %288 = arith.mulf %283, %287 : vector<4x32xf32>
    %289 = arith.addf %285, %288 : vector<4x32xf32>
    %290 = math.tanh %289 : vector<4x32xf32>
    %cst_88 = arith.constant 1.000000e+00 : f32
    %291 = vector.broadcast %cst_88 : f32 to vector<4x32xf32>
    %292 = arith.subf %291, %284 : vector<4x32xf32>
    %293 = arith.mulf %292, %290 : vector<4x32xf32>
    %294 = arith.mulf %284, %267 : vector<4x32xf32>
    %295 = arith.addf %293, %294 : vector<4x32xf32>
    %296 = vector.extract_strided_slice %82 {offsets = [14, 0], sizes = [2, 96], strides = [1, 1]} : vector<16x96xf32> to vector<2x96xf32>
    %297 = vector.extract_strided_slice %87 {offsets = [0, 0], sizes = [2, 96], strides = [1, 1]} : vector<16x96xf32> to vector<2x96xf32>
    %298 = tpu.concatenate %296, %297 in 0 : vector<2x96xf32>, vector<2x96xf32> -> vector<4x96xf32>
    %299 = tpu.concatenate %295, %295 in 1 : vector<4x32xf32>, vector<4x32xf32> -> vector<4x64xf32>
    %300 = arith.mulf %299, %70 : vector<4x64xf32>
    %301 = arith.truncf %300 : vector<4x64xf32> to vector<4x64xbf16>
    %cst_89 = arith.constant dense<0.000000e+00> : vector<4x96xf32>
    %302 = tpu.matmul %301, %89, %cst_89 {dimension_numbers = #tpu.dot_dimension_numbers<[1], [0], [0], [1], [0, 0, 1, 1], [], []>} : vector<4x64xbf16>, vector<64x96xbf16>, vector<4x96xf32> -> vector<4x96xf32>
    %303 = vector.extract_strided_slice %298 {offsets = [0, 0], sizes = [4, 64], strides = [1, 1]} : vector<4x96xf32> to vector<4x64xf32>
    %304 = vector.extract_strided_slice %302 {offsets = [0, 0], sizes = [4, 64], strides = [1, 1]} : vector<4x96xf32> to vector<4x64xf32>
    %305 = arith.addf %303, %304 : vector<4x64xf32>
    %306 = arith.negf %305 : vector<4x64xf32>
    %307 = math.exp %306 : vector<4x64xf32>
    %cst_90 = arith.constant 1.000000e+00 : f32
    %308 = vector.broadcast %cst_90 : f32 to vector<4x64xf32>
    %309 = arith.addf %308, %307 : vector<4x64xf32>
    %310 = arith.divf %308, %309 : vector<4x64xf32>
    %311 = vector.extract_strided_slice %310 {offsets = [0, 0], sizes = [4, 32], strides = [1, 1]} : vector<4x64xf32> to vector<4x32xf32>
    %312 = vector.extract_strided_slice %310 {offsets = [0, 32], sizes = [4, 32], strides = [1, 1]} : vector<4x64xf32> to vector<4x32xf32>
    %313 = vector.extract_strided_slice %298 {offsets = [0, 64], sizes = [4, 32], strides = [1, 1]} : vector<4x96xf32> to vector<4x32xf32>
    %314 = vector.extract_strided_slice %302 {offsets = [0, 64], sizes = [4, 32], strides = [1, 1]} : vector<4x96xf32> to vector<4x32xf32>
    %315 = arith.addf %314, %98 : vector<4x32xf32>
    %316 = arith.mulf %311, %315 : vector<4x32xf32>
    %317 = arith.addf %313, %316 : vector<4x32xf32>
    %318 = math.tanh %317 : vector<4x32xf32>
    %cst_91 = arith.constant 1.000000e+00 : f32
    %319 = vector.broadcast %cst_91 : f32 to vector<4x32xf32>
    %320 = arith.subf %319, %312 : vector<4x32xf32>
    %321 = arith.mulf %320, %318 : vector<4x32xf32>
    %322 = arith.mulf %312, %295 : vector<4x32xf32>
    %323 = arith.addf %321, %322 : vector<4x32xf32>
    %324 = vector.extract_strided_slice %323 {offsets = [0, 0], sizes = [2, 32], strides = [1, 1]} : vector<4x32xf32> to vector<2x32xf32>
    %325 = vector.extract_strided_slice %323 {offsets = [2, 0], sizes = [2, 32], strides = [1, 1]} : vector<4x32xf32> to vector<2x32xf32>
    %326 = arith.addf %324, %325 : vector<2x32xf32>
    %cst_92 = arith.constant 5.000000e-01 : f32
    %327 = vector.broadcast %cst_92 : f32 to vector<2x32xf32>
    %328 = arith.mulf %327, %326 : vector<2x32xf32>
    %329 = vector.extract_strided_slice %127 {offsets = [0, 0], sizes = [2, 32], strides = [1, 1]} : vector<4x32xf32> to vector<2x32xf32>
    %330 = vector.extract_strided_slice %323 {offsets = [2, 0], sizes = [2, 32], strides = [1, 1]} : vector<4x32xf32> to vector<2x32xf32>
    %331 = tpu.concatenate %329, %330 in 1 : vector<2x32xf32>, vector<2x32xf32> -> vector<2x64xf32>
    %332 = vector.extract_strided_slice %155 {offsets = [0, 0], sizes = [2, 32], strides = [1, 1]} : vector<4x32xf32> to vector<2x32xf32>
    %333 = vector.extract_strided_slice %295 {offsets = [2, 0], sizes = [2, 32], strides = [1, 1]} : vector<4x32xf32> to vector<2x32xf32>
    %334 = tpu.concatenate %332, %333 in 1 : vector<2x32xf32>, vector<2x32xf32> -> vector<2x64xf32>
    %335 = vector.extract_strided_slice %183 {offsets = [0, 0], sizes = [2, 32], strides = [1, 1]} : vector<4x32xf32> to vector<2x32xf32>
    %336 = vector.extract_strided_slice %267 {offsets = [2, 0], sizes = [2, 32], strides = [1, 1]} : vector<4x32xf32> to vector<2x32xf32>
    %337 = tpu.concatenate %335, %336 in 1 : vector<2x32xf32>, vector<2x32xf32> -> vector<2x64xf32>
    %338 = vector.extract_strided_slice %211 {offsets = [0, 0], sizes = [2, 32], strides = [1, 1]} : vector<4x32xf32> to vector<2x32xf32>
    %339 = vector.extract_strided_slice %239 {offsets = [2, 0], sizes = [2, 32], strides = [1, 1]} : vector<4x32xf32> to vector<2x32xf32>
    %340 = tpu.concatenate %338, %339 in 1 : vector<2x32xf32>, vector<2x32xf32> -> vector<2x64xf32>
    %341 = vector.extract_strided_slice %239 {offsets = [0, 0], sizes = [2, 32], strides = [1, 1]} : vector<4x32xf32> to vector<2x32xf32>
    %342 = vector.extract_strided_slice %211 {offsets = [2, 0], sizes = [2, 32], strides = [1, 1]} : vector<4x32xf32> to vector<2x32xf32>
    %343 = tpu.concatenate %341, %342 in 1 : vector<2x32xf32>, vector<2x32xf32> -> vector<2x64xf32>
    %344 = vector.extract_strided_slice %267 {offsets = [0, 0], sizes = [2, 32], strides = [1, 1]} : vector<4x32xf32> to vector<2x32xf32>
    %345 = vector.extract_strided_slice %183 {offsets = [2, 0], sizes = [2, 32], strides = [1, 1]} : vector<4x32xf32> to vector<2x32xf32>
    %346 = tpu.concatenate %344, %345 in 1 : vector<2x32xf32>, vector<2x32xf32> -> vector<2x64xf32>
    %347 = vector.extract_strided_slice %295 {offsets = [0, 0], sizes = [2, 32], strides = [1, 1]} : vector<4x32xf32> to vector<2x32xf32>
    %348 = vector.extract_strided_slice %155 {offsets = [2, 0], sizes = [2, 32], strides = [1, 1]} : vector<4x32xf32> to vector<2x32xf32>
    %349 = tpu.concatenate %347, %348 in 1 : vector<2x32xf32>, vector<2x32xf32> -> vector<2x64xf32>
    %350 = vector.extract_strided_slice %323 {offsets = [0, 0], sizes = [2, 32], strides = [1, 1]} : vector<4x32xf32> to vector<2x32xf32>
    %351 = vector.extract_strided_slice %127 {offsets = [2, 0], sizes = [2, 32], strides = [1, 1]} : vector<4x32xf32> to vector<2x32xf32>
    %352 = tpu.concatenate %350, %351 in 1 : vector<2x32xf32>, vector<2x32xf32> -> vector<2x64xf32>
    %353 = tpu.concatenate %331, %334, %337, %340, %343, %346, %349, %352 in 0 : vector<2x64xf32>, vector<2x64xf32>, vector<2x64xf32>, vector<2x64xf32>, vector<2x64xf32>, vector<2x64xf32>, vector<2x64xf32>, vector<2x64xf32> -> vector<16x64xf32>
    %c1_93 = arith.constant 1 : index
    %c0_94 = arith.constant 0 : index
    %c0_95 = arith.constant 0 : index
    %c0_96 = arith.constant 0 : index
    %354 = vector.load %arg10[%c1_93, %c0_94, %c0_95, %c0_96] : memref<2x2x64x96xbf16, #tpu.memory_space<vmem>>, vector<1x1x64x96xbf16>
    %355 = vector.shape_cast %354 : vector<1x1x64x96xbf16> to vector<64x96xbf16>
    %c1_97 = arith.constant 1 : index
    %c1_98 = arith.constant 1 : index
    %c0_99 = arith.constant 0 : index
    %c0_100 = arith.constant 0 : index
    %356 = vector.load %arg10[%c1_97, %c1_98, %c0_99, %c0_100] : memref<2x2x64x96xbf16, #tpu.memory_space<vmem>>, vector<1x1x64x96xbf16>
    %357 = vector.shape_cast %356 : vector<1x1x64x96xbf16> to vector<64x96xbf16>
    %358 = arith.truncf %353 : vector<16x64xf32> to vector<16x64xbf16>
    %cst_101 = arith.constant dense<0.000000e+00> : vector<16x96xf32>
    %359 = tpu.matmul %358, %355, %cst_101 {dimension_numbers = #tpu.dot_dimension_numbers<[1], [0], [0], [1], [0, 0, 1, 1], [], []>} : vector<16x64xbf16>, vector<64x96xbf16>, vector<16x96xf32> -> vector<16x96xf32>
    %c1_102 = arith.constant 1 : index
    %c0_103 = arith.constant 0 : index
    %c0_104 = arith.constant 0 : index
    %c0_105 = arith.constant 0 : index
    %360 = vector.load %arg12[%c1_102, %c0_103, %c0_104, %c0_105] : memref<2x2x1x96xf32, #tpu.memory_space<vmem>>, vector<1x1x1x96xf32>
    %361 = vector.shape_cast %360 : vector<1x1x1x96xf32> to vector<1x96xf32>
    %362 = vector.broadcast %361 : vector<1x96xf32> to vector<16x96xf32>
    %363 = arith.addf %359, %362 : vector<16x96xf32>
    %cst_106 = arith.constant dense<0.000000e+00> : vector<16x96xf32>
    %364 = tpu.matmul %358, %357, %cst_106 {dimension_numbers = #tpu.dot_dimension_numbers<[1], [0], [0], [1], [0, 0, 1, 1], [], []>} : vector<16x64xbf16>, vector<64x96xbf16>, vector<16x96xf32> -> vector<16x96xf32>
    %c1_107 = arith.constant 1 : index
    %c1_108 = arith.constant 1 : index
    %c0_109 = arith.constant 0 : index
    %c0_110 = arith.constant 0 : index
    %365 = vector.load %arg12[%c1_107, %c1_108, %c0_109, %c0_110] : memref<2x2x1x96xf32, #tpu.memory_space<vmem>>, vector<1x1x1x96xf32>
    %366 = vector.shape_cast %365 : vector<1x1x1x96xf32> to vector<1x96xf32>
    %367 = vector.broadcast %366 : vector<1x96xf32> to vector<16x96xf32>
    %368 = arith.addf %364, %367 : vector<16x96xf32>
    %c1_111 = arith.constant 1 : index
    %c0_112 = arith.constant 0 : index
    %c0_113 = arith.constant 0 : index
    %369 = vector.load %arg11[%c1_111, %c0_112, %c0_113] : memref<2x64x96xbf16, #tpu.memory_space<vmem>>, vector<1x64x96xbf16>
    %370 = vector.shape_cast %369 : vector<1x64x96xbf16> to vector<64x96xbf16>
    %c1_114 = arith.constant 1 : index
    %c0_115 = arith.constant 0 : index
    %c0_116 = arith.constant 0 : index
    %c0_117 = arith.constant 0 : index
    %371 = vector.load %arg13[%c1_114, %c0_115, %c0_116, %c0_117] : memref<2x2x1x32xf32, #tpu.memory_space<vmem>>, vector<1x1x1x32xf32>
    %372 = vector.shape_cast %371 : vector<1x1x1x32xf32> to vector<1x32xf32>
    %373 = vector.shape_cast %372 : vector<1x32xf32> to vector<1x32xf32>
    %374 = vector.broadcast %373 : vector<1x32xf32> to vector<2x32xf32>
    %c1_118 = arith.constant 1 : index
    %c1_119 = arith.constant 1 : index
    %c0_120 = arith.constant 0 : index
    %c0_121 = arith.constant 0 : index
    %375 = vector.load %arg13[%c1_118, %c1_119, %c0_120, %c0_121] : memref<2x2x1x32xf32, #tpu.memory_space<vmem>>, vector<1x1x1x32xf32>
    %376 = vector.shape_cast %375 : vector<1x1x1x32xf32> to vector<1x32xf32>
    %377 = vector.shape_cast %376 : vector<1x32xf32> to vector<1x32xf32>
    %378 = vector.broadcast %377 : vector<1x32xf32> to vector<2x32xf32>
    %379 = tpu.concatenate %374, %378 in 0 : vector<2x32xf32>, vector<2x32xf32> -> vector<4x32xf32>
    %cst_122 = arith.constant 0.000000e+00 : f32
    %380 = vector.broadcast %cst_122 : f32 to vector<4x32xf32>
    %381 = vector.extract_strided_slice %363 {offsets = [0, 0], sizes = [2, 96], strides = [1, 1]} : vector<16x96xf32> to vector<2x96xf32>
    %382 = vector.extract_strided_slice %368 {offsets = [14, 0], sizes = [2, 96], strides = [1, 1]} : vector<16x96xf32> to vector<2x96xf32>
    %383 = tpu.concatenate %381, %382 in 0 : vector<2x96xf32>, vector<2x96xf32> -> vector<4x96xf32>
    %384 = tpu.concatenate %380, %380 in 1 : vector<4x32xf32>, vector<4x32xf32> -> vector<4x64xf32>
    %385 = arith.mulf %384, %70 : vector<4x64xf32>
    %386 = arith.truncf %385 : vector<4x64xf32> to vector<4x64xbf16>
    %cst_123 = arith.constant dense<0.000000e+00> : vector<4x96xf32>
    %387 = tpu.matmul %386, %370, %cst_123 {dimension_numbers = #tpu.dot_dimension_numbers<[1], [0], [0], [1], [0, 0, 1, 1], [], []>} : vector<4x64xbf16>, vector<64x96xbf16>, vector<4x96xf32> -> vector<4x96xf32>
    %388 = vector.extract_strided_slice %383 {offsets = [0, 0], sizes = [4, 64], strides = [1, 1]} : vector<4x96xf32> to vector<4x64xf32>
    %389 = vector.extract_strided_slice %387 {offsets = [0, 0], sizes = [4, 64], strides = [1, 1]} : vector<4x96xf32> to vector<4x64xf32>
    %390 = arith.addf %388, %389 : vector<4x64xf32>
    %391 = arith.negf %390 : vector<4x64xf32>
    %392 = math.exp %391 : vector<4x64xf32>
    %cst_124 = arith.constant 1.000000e+00 : f32
    %393 = vector.broadcast %cst_124 : f32 to vector<4x64xf32>
    %394 = arith.addf %393, %392 : vector<4x64xf32>
    %395 = arith.divf %393, %394 : vector<4x64xf32>
    %396 = vector.extract_strided_slice %395 {offsets = [0, 0], sizes = [4, 32], strides = [1, 1]} : vector<4x64xf32> to vector<4x32xf32>
    %397 = vector.extract_strided_slice %395 {offsets = [0, 32], sizes = [4, 32], strides = [1, 1]} : vector<4x64xf32> to vector<4x32xf32>
    %398 = vector.extract_strided_slice %383 {offsets = [0, 64], sizes = [4, 32], strides = [1, 1]} : vector<4x96xf32> to vector<4x32xf32>
    %399 = vector.extract_strided_slice %387 {offsets = [0, 64], sizes = [4, 32], strides = [1, 1]} : vector<4x96xf32> to vector<4x32xf32>
    %400 = arith.addf %399, %379 : vector<4x32xf32>
    %401 = arith.mulf %396, %400 : vector<4x32xf32>
    %402 = arith.addf %398, %401 : vector<4x32xf32>
    %403 = math.tanh %402 : vector<4x32xf32>
    %cst_125 = arith.constant 1.000000e+00 : f32
    %404 = vector.broadcast %cst_125 : f32 to vector<4x32xf32>
    %405 = arith.subf %404, %397 : vector<4x32xf32>
    %406 = arith.mulf %405, %403 : vector<4x32xf32>
    %407 = arith.mulf %397, %380 : vector<4x32xf32>
    %408 = arith.addf %406, %407 : vector<4x32xf32>
    %409 = vector.extract_strided_slice %363 {offsets = [2, 0], sizes = [2, 96], strides = [1, 1]} : vector<16x96xf32> to vector<2x96xf32>
    %410 = vector.extract_strided_slice %368 {offsets = [12, 0], sizes = [2, 96], strides = [1, 1]} : vector<16x96xf32> to vector<2x96xf32>
    %411 = tpu.concatenate %409, %410 in 0 : vector<2x96xf32>, vector<2x96xf32> -> vector<4x96xf32>
    %412 = tpu.concatenate %408, %408 in 1 : vector<4x32xf32>, vector<4x32xf32> -> vector<4x64xf32>
    %413 = arith.mulf %412, %70 : vector<4x64xf32>
    %414 = arith.truncf %413 : vector<4x64xf32> to vector<4x64xbf16>
    %cst_126 = arith.constant dense<0.000000e+00> : vector<4x96xf32>
    %415 = tpu.matmul %414, %370, %cst_126 {dimension_numbers = #tpu.dot_dimension_numbers<[1], [0], [0], [1], [0, 0, 1, 1], [], []>} : vector<4x64xbf16>, vector<64x96xbf16>, vector<4x96xf32> -> vector<4x96xf32>
    %416 = vector.extract_strided_slice %411 {offsets = [0, 0], sizes = [4, 64], strides = [1, 1]} : vector<4x96xf32> to vector<4x64xf32>
    %417 = vector.extract_strided_slice %415 {offsets = [0, 0], sizes = [4, 64], strides = [1, 1]} : vector<4x96xf32> to vector<4x64xf32>
    %418 = arith.addf %416, %417 : vector<4x64xf32>
    %419 = arith.negf %418 : vector<4x64xf32>
    %420 = math.exp %419 : vector<4x64xf32>
    %cst_127 = arith.constant 1.000000e+00 : f32
    %421 = vector.broadcast %cst_127 : f32 to vector<4x64xf32>
    %422 = arith.addf %421, %420 : vector<4x64xf32>
    %423 = arith.divf %421, %422 : vector<4x64xf32>
    %424 = vector.extract_strided_slice %423 {offsets = [0, 0], sizes = [4, 32], strides = [1, 1]} : vector<4x64xf32> to vector<4x32xf32>
    %425 = vector.extract_strided_slice %423 {offsets = [0, 32], sizes = [4, 32], strides = [1, 1]} : vector<4x64xf32> to vector<4x32xf32>
    %426 = vector.extract_strided_slice %411 {offsets = [0, 64], sizes = [4, 32], strides = [1, 1]} : vector<4x96xf32> to vector<4x32xf32>
    %427 = vector.extract_strided_slice %415 {offsets = [0, 64], sizes = [4, 32], strides = [1, 1]} : vector<4x96xf32> to vector<4x32xf32>
    %428 = arith.addf %427, %379 : vector<4x32xf32>
    %429 = arith.mulf %424, %428 : vector<4x32xf32>
    %430 = arith.addf %426, %429 : vector<4x32xf32>
    %431 = math.tanh %430 : vector<4x32xf32>
    %cst_128 = arith.constant 1.000000e+00 : f32
    %432 = vector.broadcast %cst_128 : f32 to vector<4x32xf32>
    %433 = arith.subf %432, %425 : vector<4x32xf32>
    %434 = arith.mulf %433, %431 : vector<4x32xf32>
    %435 = arith.mulf %425, %408 : vector<4x32xf32>
    %436 = arith.addf %434, %435 : vector<4x32xf32>
    %437 = vector.extract_strided_slice %363 {offsets = [4, 0], sizes = [2, 96], strides = [1, 1]} : vector<16x96xf32> to vector<2x96xf32>
    %438 = vector.extract_strided_slice %368 {offsets = [10, 0], sizes = [2, 96], strides = [1, 1]} : vector<16x96xf32> to vector<2x96xf32>
    %439 = tpu.concatenate %437, %438 in 0 : vector<2x96xf32>, vector<2x96xf32> -> vector<4x96xf32>
    %440 = tpu.concatenate %436, %436 in 1 : vector<4x32xf32>, vector<4x32xf32> -> vector<4x64xf32>
    %441 = arith.mulf %440, %70 : vector<4x64xf32>
    %442 = arith.truncf %441 : vector<4x64xf32> to vector<4x64xbf16>
    %cst_129 = arith.constant dense<0.000000e+00> : vector<4x96xf32>
    %443 = tpu.matmul %442, %370, %cst_129 {dimension_numbers = #tpu.dot_dimension_numbers<[1], [0], [0], [1], [0, 0, 1, 1], [], []>} : vector<4x64xbf16>, vector<64x96xbf16>, vector<4x96xf32> -> vector<4x96xf32>
    %444 = vector.extract_strided_slice %439 {offsets = [0, 0], sizes = [4, 64], strides = [1, 1]} : vector<4x96xf32> to vector<4x64xf32>
    %445 = vector.extract_strided_slice %443 {offsets = [0, 0], sizes = [4, 64], strides = [1, 1]} : vector<4x96xf32> to vector<4x64xf32>
    %446 = arith.addf %444, %445 : vector<4x64xf32>
    %447 = arith.negf %446 : vector<4x64xf32>
    %448 = math.exp %447 : vector<4x64xf32>
    %cst_130 = arith.constant 1.000000e+00 : f32
    %449 = vector.broadcast %cst_130 : f32 to vector<4x64xf32>
    %450 = arith.addf %449, %448 : vector<4x64xf32>
    %451 = arith.divf %449, %450 : vector<4x64xf32>
    %452 = vector.extract_strided_slice %451 {offsets = [0, 0], sizes = [4, 32], strides = [1, 1]} : vector<4x64xf32> to vector<4x32xf32>
    %453 = vector.extract_strided_slice %451 {offsets = [0, 32], sizes = [4, 32], strides = [1, 1]} : vector<4x64xf32> to vector<4x32xf32>
    %454 = vector.extract_strided_slice %439 {offsets = [0, 64], sizes = [4, 32], strides = [1, 1]} : vector<4x96xf32> to vector<4x32xf32>
    %455 = vector.extract_strided_slice %443 {offsets = [0, 64], sizes = [4, 32], strides = [1, 1]} : vector<4x96xf32> to vector<4x32xf32>
    %456 = arith.addf %455, %379 : vector<4x32xf32>
    %457 = arith.mulf %452, %456 : vector<4x32xf32>
    %458 = arith.addf %454, %457 : vector<4x32xf32>
    %459 = math.tanh %458 : vector<4x32xf32>
    %cst_131 = arith.constant 1.000000e+00 : f32
    %460 = vector.broadcast %cst_131 : f32 to vector<4x32xf32>
    %461 = arith.subf %460, %453 : vector<4x32xf32>
    %462 = arith.mulf %461, %459 : vector<4x32xf32>
    %463 = arith.mulf %453, %436 : vector<4x32xf32>
    %464 = arith.addf %462, %463 : vector<4x32xf32>
    %465 = vector.extract_strided_slice %363 {offsets = [6, 0], sizes = [2, 96], strides = [1, 1]} : vector<16x96xf32> to vector<2x96xf32>
    %466 = vector.extract_strided_slice %368 {offsets = [8, 0], sizes = [2, 96], strides = [1, 1]} : vector<16x96xf32> to vector<2x96xf32>
    %467 = tpu.concatenate %465, %466 in 0 : vector<2x96xf32>, vector<2x96xf32> -> vector<4x96xf32>
    %468 = tpu.concatenate %464, %464 in 1 : vector<4x32xf32>, vector<4x32xf32> -> vector<4x64xf32>
    %469 = arith.mulf %468, %70 : vector<4x64xf32>
    %470 = arith.truncf %469 : vector<4x64xf32> to vector<4x64xbf16>
    %cst_132 = arith.constant dense<0.000000e+00> : vector<4x96xf32>
    %471 = tpu.matmul %470, %370, %cst_132 {dimension_numbers = #tpu.dot_dimension_numbers<[1], [0], [0], [1], [0, 0, 1, 1], [], []>} : vector<4x64xbf16>, vector<64x96xbf16>, vector<4x96xf32> -> vector<4x96xf32>
    %472 = vector.extract_strided_slice %467 {offsets = [0, 0], sizes = [4, 64], strides = [1, 1]} : vector<4x96xf32> to vector<4x64xf32>
    %473 = vector.extract_strided_slice %471 {offsets = [0, 0], sizes = [4, 64], strides = [1, 1]} : vector<4x96xf32> to vector<4x64xf32>
    %474 = arith.addf %472, %473 : vector<4x64xf32>
    %475 = arith.negf %474 : vector<4x64xf32>
    %476 = math.exp %475 : vector<4x64xf32>
    %cst_133 = arith.constant 1.000000e+00 : f32
    %477 = vector.broadcast %cst_133 : f32 to vector<4x64xf32>
    %478 = arith.addf %477, %476 : vector<4x64xf32>
    %479 = arith.divf %477, %478 : vector<4x64xf32>
    %480 = vector.extract_strided_slice %479 {offsets = [0, 0], sizes = [4, 32], strides = [1, 1]} : vector<4x64xf32> to vector<4x32xf32>
    %481 = vector.extract_strided_slice %479 {offsets = [0, 32], sizes = [4, 32], strides = [1, 1]} : vector<4x64xf32> to vector<4x32xf32>
    %482 = vector.extract_strided_slice %467 {offsets = [0, 64], sizes = [4, 32], strides = [1, 1]} : vector<4x96xf32> to vector<4x32xf32>
    %483 = vector.extract_strided_slice %471 {offsets = [0, 64], sizes = [4, 32], strides = [1, 1]} : vector<4x96xf32> to vector<4x32xf32>
    %484 = arith.addf %483, %379 : vector<4x32xf32>
    %485 = arith.mulf %480, %484 : vector<4x32xf32>
    %486 = arith.addf %482, %485 : vector<4x32xf32>
    %487 = math.tanh %486 : vector<4x32xf32>
    %cst_134 = arith.constant 1.000000e+00 : f32
    %488 = vector.broadcast %cst_134 : f32 to vector<4x32xf32>
    %489 = arith.subf %488, %481 : vector<4x32xf32>
    %490 = arith.mulf %489, %487 : vector<4x32xf32>
    %491 = arith.mulf %481, %464 : vector<4x32xf32>
    %492 = arith.addf %490, %491 : vector<4x32xf32>
    %493 = vector.extract_strided_slice %363 {offsets = [8, 0], sizes = [2, 96], strides = [1, 1]} : vector<16x96xf32> to vector<2x96xf32>
    %494 = vector.extract_strided_slice %368 {offsets = [6, 0], sizes = [2, 96], strides = [1, 1]} : vector<16x96xf32> to vector<2x96xf32>
    %495 = tpu.concatenate %493, %494 in 0 : vector<2x96xf32>, vector<2x96xf32> -> vector<4x96xf32>
    %496 = tpu.concatenate %492, %492 in 1 : vector<4x32xf32>, vector<4x32xf32> -> vector<4x64xf32>
    %497 = arith.mulf %496, %70 : vector<4x64xf32>
    %498 = arith.truncf %497 : vector<4x64xf32> to vector<4x64xbf16>
    %cst_135 = arith.constant dense<0.000000e+00> : vector<4x96xf32>
    %499 = tpu.matmul %498, %370, %cst_135 {dimension_numbers = #tpu.dot_dimension_numbers<[1], [0], [0], [1], [0, 0, 1, 1], [], []>} : vector<4x64xbf16>, vector<64x96xbf16>, vector<4x96xf32> -> vector<4x96xf32>
    %500 = vector.extract_strided_slice %495 {offsets = [0, 0], sizes = [4, 64], strides = [1, 1]} : vector<4x96xf32> to vector<4x64xf32>
    %501 = vector.extract_strided_slice %499 {offsets = [0, 0], sizes = [4, 64], strides = [1, 1]} : vector<4x96xf32> to vector<4x64xf32>
    %502 = arith.addf %500, %501 : vector<4x64xf32>
    %503 = arith.negf %502 : vector<4x64xf32>
    %504 = math.exp %503 : vector<4x64xf32>
    %cst_136 = arith.constant 1.000000e+00 : f32
    %505 = vector.broadcast %cst_136 : f32 to vector<4x64xf32>
    %506 = arith.addf %505, %504 : vector<4x64xf32>
    %507 = arith.divf %505, %506 : vector<4x64xf32>
    %508 = vector.extract_strided_slice %507 {offsets = [0, 0], sizes = [4, 32], strides = [1, 1]} : vector<4x64xf32> to vector<4x32xf32>
    %509 = vector.extract_strided_slice %507 {offsets = [0, 32], sizes = [4, 32], strides = [1, 1]} : vector<4x64xf32> to vector<4x32xf32>
    %510 = vector.extract_strided_slice %495 {offsets = [0, 64], sizes = [4, 32], strides = [1, 1]} : vector<4x96xf32> to vector<4x32xf32>
    %511 = vector.extract_strided_slice %499 {offsets = [0, 64], sizes = [4, 32], strides = [1, 1]} : vector<4x96xf32> to vector<4x32xf32>
    %512 = arith.addf %511, %379 : vector<4x32xf32>
    %513 = arith.mulf %508, %512 : vector<4x32xf32>
    %514 = arith.addf %510, %513 : vector<4x32xf32>
    %515 = math.tanh %514 : vector<4x32xf32>
    %cst_137 = arith.constant 1.000000e+00 : f32
    %516 = vector.broadcast %cst_137 : f32 to vector<4x32xf32>
    %517 = arith.subf %516, %509 : vector<4x32xf32>
    %518 = arith.mulf %517, %515 : vector<4x32xf32>
    %519 = arith.mulf %509, %492 : vector<4x32xf32>
    %520 = arith.addf %518, %519 : vector<4x32xf32>
    %521 = vector.extract_strided_slice %363 {offsets = [10, 0], sizes = [2, 96], strides = [1, 1]} : vector<16x96xf32> to vector<2x96xf32>
    %522 = vector.extract_strided_slice %368 {offsets = [4, 0], sizes = [2, 96], strides = [1, 1]} : vector<16x96xf32> to vector<2x96xf32>
    %523 = tpu.concatenate %521, %522 in 0 : vector<2x96xf32>, vector<2x96xf32> -> vector<4x96xf32>
    %524 = tpu.concatenate %520, %520 in 1 : vector<4x32xf32>, vector<4x32xf32> -> vector<4x64xf32>
    %525 = arith.mulf %524, %70 : vector<4x64xf32>
    %526 = arith.truncf %525 : vector<4x64xf32> to vector<4x64xbf16>
    %cst_138 = arith.constant dense<0.000000e+00> : vector<4x96xf32>
    %527 = tpu.matmul %526, %370, %cst_138 {dimension_numbers = #tpu.dot_dimension_numbers<[1], [0], [0], [1], [0, 0, 1, 1], [], []>} : vector<4x64xbf16>, vector<64x96xbf16>, vector<4x96xf32> -> vector<4x96xf32>
    %528 = vector.extract_strided_slice %523 {offsets = [0, 0], sizes = [4, 64], strides = [1, 1]} : vector<4x96xf32> to vector<4x64xf32>
    %529 = vector.extract_strided_slice %527 {offsets = [0, 0], sizes = [4, 64], strides = [1, 1]} : vector<4x96xf32> to vector<4x64xf32>
    %530 = arith.addf %528, %529 : vector<4x64xf32>
    %531 = arith.negf %530 : vector<4x64xf32>
    %532 = math.exp %531 : vector<4x64xf32>
    %cst_139 = arith.constant 1.000000e+00 : f32
    %533 = vector.broadcast %cst_139 : f32 to vector<4x64xf32>
    %534 = arith.addf %533, %532 : vector<4x64xf32>
    %535 = arith.divf %533, %534 : vector<4x64xf32>
    %536 = vector.extract_strided_slice %535 {offsets = [0, 0], sizes = [4, 32], strides = [1, 1]} : vector<4x64xf32> to vector<4x32xf32>
    %537 = vector.extract_strided_slice %535 {offsets = [0, 32], sizes = [4, 32], strides = [1, 1]} : vector<4x64xf32> to vector<4x32xf32>
    %538 = vector.extract_strided_slice %523 {offsets = [0, 64], sizes = [4, 32], strides = [1, 1]} : vector<4x96xf32> to vector<4x32xf32>
    %539 = vector.extract_strided_slice %527 {offsets = [0, 64], sizes = [4, 32], strides = [1, 1]} : vector<4x96xf32> to vector<4x32xf32>
    %540 = arith.addf %539, %379 : vector<4x32xf32>
    %541 = arith.mulf %536, %540 : vector<4x32xf32>
    %542 = arith.addf %538, %541 : vector<4x32xf32>
    %543 = math.tanh %542 : vector<4x32xf32>
    %cst_140 = arith.constant 1.000000e+00 : f32
    %544 = vector.broadcast %cst_140 : f32 to vector<4x32xf32>
    %545 = arith.subf %544, %537 : vector<4x32xf32>
    %546 = arith.mulf %545, %543 : vector<4x32xf32>
    %547 = arith.mulf %537, %520 : vector<4x32xf32>
    %548 = arith.addf %546, %547 : vector<4x32xf32>
    %549 = vector.extract_strided_slice %363 {offsets = [12, 0], sizes = [2, 96], strides = [1, 1]} : vector<16x96xf32> to vector<2x96xf32>
    %550 = vector.extract_strided_slice %368 {offsets = [2, 0], sizes = [2, 96], strides = [1, 1]} : vector<16x96xf32> to vector<2x96xf32>
    %551 = tpu.concatenate %549, %550 in 0 : vector<2x96xf32>, vector<2x96xf32> -> vector<4x96xf32>
    %552 = tpu.concatenate %548, %548 in 1 : vector<4x32xf32>, vector<4x32xf32> -> vector<4x64xf32>
    %553 = arith.mulf %552, %70 : vector<4x64xf32>
    %554 = arith.truncf %553 : vector<4x64xf32> to vector<4x64xbf16>
    %cst_141 = arith.constant dense<0.000000e+00> : vector<4x96xf32>
    %555 = tpu.matmul %554, %370, %cst_141 {dimension_numbers = #tpu.dot_dimension_numbers<[1], [0], [0], [1], [0, 0, 1, 1], [], []>} : vector<4x64xbf16>, vector<64x96xbf16>, vector<4x96xf32> -> vector<4x96xf32>
    %556 = vector.extract_strided_slice %551 {offsets = [0, 0], sizes = [4, 64], strides = [1, 1]} : vector<4x96xf32> to vector<4x64xf32>
    %557 = vector.extract_strided_slice %555 {offsets = [0, 0], sizes = [4, 64], strides = [1, 1]} : vector<4x96xf32> to vector<4x64xf32>
    %558 = arith.addf %556, %557 : vector<4x64xf32>
    %559 = arith.negf %558 : vector<4x64xf32>
    %560 = math.exp %559 : vector<4x64xf32>
    %cst_142 = arith.constant 1.000000e+00 : f32
    %561 = vector.broadcast %cst_142 : f32 to vector<4x64xf32>
    %562 = arith.addf %561, %560 : vector<4x64xf32>
    %563 = arith.divf %561, %562 : vector<4x64xf32>
    %564 = vector.extract_strided_slice %563 {offsets = [0, 0], sizes = [4, 32], strides = [1, 1]} : vector<4x64xf32> to vector<4x32xf32>
    %565 = vector.extract_strided_slice %563 {offsets = [0, 32], sizes = [4, 32], strides = [1, 1]} : vector<4x64xf32> to vector<4x32xf32>
    %566 = vector.extract_strided_slice %551 {offsets = [0, 64], sizes = [4, 32], strides = [1, 1]} : vector<4x96xf32> to vector<4x32xf32>
    %567 = vector.extract_strided_slice %555 {offsets = [0, 64], sizes = [4, 32], strides = [1, 1]} : vector<4x96xf32> to vector<4x32xf32>
    %568 = arith.addf %567, %379 : vector<4x32xf32>
    %569 = arith.mulf %564, %568 : vector<4x32xf32>
    %570 = arith.addf %566, %569 : vector<4x32xf32>
    %571 = math.tanh %570 : vector<4x32xf32>
    %cst_143 = arith.constant 1.000000e+00 : f32
    %572 = vector.broadcast %cst_143 : f32 to vector<4x32xf32>
    %573 = arith.subf %572, %565 : vector<4x32xf32>
    %574 = arith.mulf %573, %571 : vector<4x32xf32>
    %575 = arith.mulf %565, %548 : vector<4x32xf32>
    %576 = arith.addf %574, %575 : vector<4x32xf32>
    %577 = vector.extract_strided_slice %363 {offsets = [14, 0], sizes = [2, 96], strides = [1, 1]} : vector<16x96xf32> to vector<2x96xf32>
    %578 = vector.extract_strided_slice %368 {offsets = [0, 0], sizes = [2, 96], strides = [1, 1]} : vector<16x96xf32> to vector<2x96xf32>
    %579 = tpu.concatenate %577, %578 in 0 : vector<2x96xf32>, vector<2x96xf32> -> vector<4x96xf32>
    %580 = tpu.concatenate %576, %576 in 1 : vector<4x32xf32>, vector<4x32xf32> -> vector<4x64xf32>
    %581 = arith.mulf %580, %70 : vector<4x64xf32>
    %582 = arith.truncf %581 : vector<4x64xf32> to vector<4x64xbf16>
    %cst_144 = arith.constant dense<0.000000e+00> : vector<4x96xf32>
    %583 = tpu.matmul %582, %370, %cst_144 {dimension_numbers = #tpu.dot_dimension_numbers<[1], [0], [0], [1], [0, 0, 1, 1], [], []>} : vector<4x64xbf16>, vector<64x96xbf16>, vector<4x96xf32> -> vector<4x96xf32>
    %584 = vector.extract_strided_slice %579 {offsets = [0, 0], sizes = [4, 64], strides = [1, 1]} : vector<4x96xf32> to vector<4x64xf32>
    %585 = vector.extract_strided_slice %583 {offsets = [0, 0], sizes = [4, 64], strides = [1, 1]} : vector<4x96xf32> to vector<4x64xf32>
    %586 = arith.addf %584, %585 : vector<4x64xf32>
    %587 = arith.negf %586 : vector<4x64xf32>
    %588 = math.exp %587 : vector<4x64xf32>
    %cst_145 = arith.constant 1.000000e+00 : f32
    %589 = vector.broadcast %cst_145 : f32 to vector<4x64xf32>
    %590 = arith.addf %589, %588 : vector<4x64xf32>
    %591 = arith.divf %589, %590 : vector<4x64xf32>
    %592 = vector.extract_strided_slice %591 {offsets = [0, 0], sizes = [4, 32], strides = [1, 1]} : vector<4x64xf32> to vector<4x32xf32>
    %593 = vector.extract_strided_slice %591 {offsets = [0, 32], sizes = [4, 32], strides = [1, 1]} : vector<4x64xf32> to vector<4x32xf32>
    %594 = vector.extract_strided_slice %579 {offsets = [0, 64], sizes = [4, 32], strides = [1, 1]} : vector<4x96xf32> to vector<4x32xf32>
    %595 = vector.extract_strided_slice %583 {offsets = [0, 64], sizes = [4, 32], strides = [1, 1]} : vector<4x96xf32> to vector<4x32xf32>
    %596 = arith.addf %595, %379 : vector<4x32xf32>
    %597 = arith.mulf %592, %596 : vector<4x32xf32>
    %598 = arith.addf %594, %597 : vector<4x32xf32>
    %599 = math.tanh %598 : vector<4x32xf32>
    %cst_146 = arith.constant 1.000000e+00 : f32
    %600 = vector.broadcast %cst_146 : f32 to vector<4x32xf32>
    %601 = arith.subf %600, %593 : vector<4x32xf32>
    %602 = arith.mulf %601, %599 : vector<4x32xf32>
    %603 = arith.mulf %593, %576 : vector<4x32xf32>
    %604 = arith.addf %602, %603 : vector<4x32xf32>
    %605 = vector.extract_strided_slice %604 {offsets = [0, 0], sizes = [2, 32], strides = [1, 1]} : vector<4x32xf32> to vector<2x32xf32>
    %606 = vector.extract_strided_slice %604 {offsets = [2, 0], sizes = [2, 32], strides = [1, 1]} : vector<4x32xf32> to vector<2x32xf32>
    %607 = arith.addf %605, %606 : vector<2x32xf32>
    %cst_147 = arith.constant 5.000000e-01 : f32
    %608 = vector.broadcast %cst_147 : f32 to vector<2x32xf32>
    %609 = arith.mulf %608, %607 : vector<2x32xf32>
    %c0_148 = arith.constant 0 : index
    %c0_149 = arith.constant 0 : index
    %c0_150 = arith.constant 0 : index
    %610 = vector.load %arg1[%c0_148, %c0_149, %c0_150] : memref<8x6x32xf32, #tpu.memory_space<vmem>>, vector<8x6x32xf32>
    %611 = vector.extract_strided_slice %610 {offsets = [0, 0, 0], sizes = [8, 1, 32], strides = [1, 1, 1]} : vector<8x6x32xf32> to vector<8x1x32xf32>
    %cst_151 = arith.constant dense<0.000000e+00> : vector<8x32xf32>
    %612 = vector.multi_reduction <add>, %611, %cst_151 [1] : vector<8x1x32xf32> to vector<8x32xf32>
    %613 = vector.extract_strided_slice %610 {offsets = [0, 1, 0], sizes = [8, 1, 32], strides = [1, 1, 1]} : vector<8x6x32xf32> to vector<8x1x32xf32>
    %cst_152 = arith.constant dense<0.000000e+00> : vector<8x32xf32>
    %614 = vector.multi_reduction <add>, %613, %cst_152 [1] : vector<8x1x32xf32> to vector<8x32xf32>
    %615 = vector.extract_strided_slice %610 {offsets = [0, 2, 0], sizes = [8, 1, 32], strides = [1, 1, 1]} : vector<8x6x32xf32> to vector<8x1x32xf32>
    %cst_153 = arith.constant dense<0.000000e+00> : vector<8x32xf32>
    %616 = vector.multi_reduction <add>, %615, %cst_153 [1] : vector<8x1x32xf32> to vector<8x32xf32>
    %617 = vector.extract_strided_slice %610 {offsets = [0, 3, 0], sizes = [8, 1, 32], strides = [1, 1, 1]} : vector<8x6x32xf32> to vector<8x1x32xf32>
    %cst_154 = arith.constant dense<0.000000e+00> : vector<8x32xf32>
    %618 = vector.multi_reduction <add>, %617, %cst_154 [1] : vector<8x1x32xf32> to vector<8x32xf32>
    %619 = vector.extract_strided_slice %610 {offsets = [0, 4, 0], sizes = [8, 1, 32], strides = [1, 1, 1]} : vector<8x6x32xf32> to vector<8x1x32xf32>
    %cst_155 = arith.constant dense<0.000000e+00> : vector<8x32xf32>
    %620 = vector.multi_reduction <add>, %619, %cst_155 [1] : vector<8x1x32xf32> to vector<8x32xf32>
    %621 = vector.extract_strided_slice %610 {offsets = [0, 5, 0], sizes = [8, 1, 32], strides = [1, 1, 1]} : vector<8x6x32xf32> to vector<8x1x32xf32>
    %cst_156 = arith.constant dense<0.000000e+00> : vector<8x32xf32>
    %622 = vector.multi_reduction <add>, %621, %cst_156 [1] : vector<8x1x32xf32> to vector<8x32xf32>
    %623 = tpu.concatenate %612, %614, %616, %618, %620, %622 in 0 : vector<8x32xf32>, vector<8x32xf32>, vector<8x32xf32>, vector<8x32xf32>, vector<8x32xf32>, vector<8x32xf32> -> vector<48x32xf32>
    %cst_157 = arith.constant 0.000000e+00 : f32
    %624 = vector.broadcast %cst_157 : f32 to vector<8x32xf32>
    %625 = arith.truncf %623 : vector<48x32xf32> to vector<48x32xbf16>
    %c0_158 = arith.constant 0 : index
    %c0_159 = arith.constant 0 : index
    %c0_160 = arith.constant 0 : index
    %626 = vector.load %arg14[%c0_158, %c0_159, %c0_160] : memref<2x32x96xbf16, #tpu.memory_space<vmem>>, vector<1x32x96xbf16>
    %627 = vector.shape_cast %626 : vector<1x32x96xbf16> to vector<32x96xbf16>
    %cst_161 = arith.constant dense<0.000000e+00> : vector<48x96xf32>
    %628 = tpu.matmul %625, %627, %cst_161 {dimension_numbers = #tpu.dot_dimension_numbers<[1], [0], [0], [1], [0, 0, 1, 1], [], []>} : vector<48x32xbf16>, vector<32x96xbf16>, vector<48x96xf32> -> vector<48x96xf32>
    %c0_162 = arith.constant 0 : index
    %c0_163 = arith.constant 0 : index
    %c0_164 = arith.constant 0 : index
    %629 = vector.load %arg16[%c0_162, %c0_163, %c0_164] : memref<2x1x96xf32, #tpu.memory_space<vmem>>, vector<1x1x96xf32>
    %630 = vector.shape_cast %629 : vector<1x1x96xf32> to vector<1x96xf32>
    %631 = vector.broadcast %630 : vector<1x96xf32> to vector<48x96xf32>
    %632 = arith.addf %628, %631 : vector<48x96xf32>
    %c0_165 = arith.constant 0 : index
    %c0_166 = arith.constant 0 : index
    %c0_167 = arith.constant 0 : index
    %633 = vector.load %arg15[%c0_165, %c0_166, %c0_167] : memref<2x32x96xbf16, #tpu.memory_space<vmem>>, vector<1x32x96xbf16>
    %634 = vector.shape_cast %633 : vector<1x32x96xbf16> to vector<32x96xbf16>
    %c0_168 = arith.constant 0 : index
    %c0_169 = arith.constant 0 : index
    %c0_170 = arith.constant 0 : index
    %635 = vector.load %arg17[%c0_168, %c0_169, %c0_170] : memref<2x1x32xf32, #tpu.memory_space<vmem>>, vector<1x1x32xf32>
    %636 = vector.shape_cast %635 : vector<1x1x32xf32> to vector<1x32xf32>
    %637 = vector.extract_strided_slice %328 {offsets = [0, 0], sizes = [1, 32], strides = [1, 1]} : vector<2x32xf32> to vector<1x32xf32>
    %638 = vector.shape_cast %637 : vector<1x32xf32> to vector<1x32xf32>
    %639 = vector.broadcast %638 : vector<1x32xf32> to vector<4x32xf32>
    %640 = vector.extract_strided_slice %328 {offsets = [1, 0], sizes = [1, 32], strides = [1, 1]} : vector<2x32xf32> to vector<1x32xf32>
    %641 = vector.shape_cast %640 : vector<1x32xf32> to vector<1x32xf32>
    %642 = vector.broadcast %641 : vector<1x32xf32> to vector<4x32xf32>
    %643 = tpu.concatenate %639, %642 in 0 : vector<4x32xf32>, vector<4x32xf32> -> vector<8x32xf32>
    %644 = vector.extract_strided_slice %632 {offsets = [0, 0], sizes = [8, 96], strides = [1, 1]} : vector<48x96xf32> to vector<8x96xf32>
    %645 = arith.truncf %643 : vector<8x32xf32> to vector<8x32xbf16>
    %cst_171 = arith.constant dense<0.000000e+00> : vector<8x96xf32>
    %646 = tpu.matmul %645, %634, %cst_171 {dimension_numbers = #tpu.dot_dimension_numbers<[1], [0], [0], [1], [0, 0, 1, 1], [], []>} : vector<8x32xbf16>, vector<32x96xbf16>, vector<8x96xf32> -> vector<8x96xf32>
    %647 = vector.extract_strided_slice %644 {offsets = [0, 0], sizes = [8, 64], strides = [1, 1]} : vector<8x96xf32> to vector<8x64xf32>
    %648 = vector.extract_strided_slice %646 {offsets = [0, 0], sizes = [8, 64], strides = [1, 1]} : vector<8x96xf32> to vector<8x64xf32>
    %649 = arith.addf %647, %648 : vector<8x64xf32>
    %650 = arith.negf %649 : vector<8x64xf32>
    %651 = math.exp %650 : vector<8x64xf32>
    %cst_172 = arith.constant 1.000000e+00 : f32
    %652 = vector.broadcast %cst_172 : f32 to vector<8x64xf32>
    %653 = arith.addf %652, %651 : vector<8x64xf32>
    %654 = arith.divf %652, %653 : vector<8x64xf32>
    %655 = vector.extract_strided_slice %654 {offsets = [0, 0], sizes = [8, 32], strides = [1, 1]} : vector<8x64xf32> to vector<8x32xf32>
    %656 = vector.extract_strided_slice %654 {offsets = [0, 32], sizes = [8, 32], strides = [1, 1]} : vector<8x64xf32> to vector<8x32xf32>
    %657 = vector.extract_strided_slice %644 {offsets = [0, 64], sizes = [8, 32], strides = [1, 1]} : vector<8x96xf32> to vector<8x32xf32>
    %658 = vector.extract_strided_slice %646 {offsets = [0, 64], sizes = [8, 32], strides = [1, 1]} : vector<8x96xf32> to vector<8x32xf32>
    %659 = vector.broadcast %636 : vector<1x32xf32> to vector<8x32xf32>
    %660 = arith.addf %658, %659 : vector<8x32xf32>
    %661 = arith.mulf %655, %660 : vector<8x32xf32>
    %662 = arith.addf %657, %661 : vector<8x32xf32>
    %663 = math.tanh %662 : vector<8x32xf32>
    %cst_173 = arith.constant 1.000000e+00 : f32
    %664 = vector.broadcast %cst_173 : f32 to vector<8x32xf32>
    %665 = arith.subf %664, %656 : vector<8x32xf32>
    %666 = arith.mulf %665, %663 : vector<8x32xf32>
    %667 = arith.mulf %656, %643 : vector<8x32xf32>
    %668 = arith.addf %666, %667 : vector<8x32xf32>
    %669 = vector.extract_strided_slice %632 {offsets = [8, 0], sizes = [8, 96], strides = [1, 1]} : vector<48x96xf32> to vector<8x96xf32>
    %670 = arith.truncf %668 : vector<8x32xf32> to vector<8x32xbf16>
    %cst_174 = arith.constant dense<0.000000e+00> : vector<8x96xf32>
    %671 = tpu.matmul %670, %634, %cst_174 {dimension_numbers = #tpu.dot_dimension_numbers<[1], [0], [0], [1], [0, 0, 1, 1], [], []>} : vector<8x32xbf16>, vector<32x96xbf16>, vector<8x96xf32> -> vector<8x96xf32>
    %672 = vector.extract_strided_slice %669 {offsets = [0, 0], sizes = [8, 64], strides = [1, 1]} : vector<8x96xf32> to vector<8x64xf32>
    %673 = vector.extract_strided_slice %671 {offsets = [0, 0], sizes = [8, 64], strides = [1, 1]} : vector<8x96xf32> to vector<8x64xf32>
    %674 = arith.addf %672, %673 : vector<8x64xf32>
    %675 = arith.negf %674 : vector<8x64xf32>
    %676 = math.exp %675 : vector<8x64xf32>
    %cst_175 = arith.constant 1.000000e+00 : f32
    %677 = vector.broadcast %cst_175 : f32 to vector<8x64xf32>
    %678 = arith.addf %677, %676 : vector<8x64xf32>
    %679 = arith.divf %677, %678 : vector<8x64xf32>
    %680 = vector.extract_strided_slice %679 {offsets = [0, 0], sizes = [8, 32], strides = [1, 1]} : vector<8x64xf32> to vector<8x32xf32>
    %681 = vector.extract_strided_slice %679 {offsets = [0, 32], sizes = [8, 32], strides = [1, 1]} : vector<8x64xf32> to vector<8x32xf32>
    %682 = vector.extract_strided_slice %669 {offsets = [0, 64], sizes = [8, 32], strides = [1, 1]} : vector<8x96xf32> to vector<8x32xf32>
    %683 = vector.extract_strided_slice %671 {offsets = [0, 64], sizes = [8, 32], strides = [1, 1]} : vector<8x96xf32> to vector<8x32xf32>
    %684 = vector.broadcast %636 : vector<1x32xf32> to vector<8x32xf32>
    %685 = arith.addf %683, %684 : vector<8x32xf32>
    %686 = arith.mulf %680, %685 : vector<8x32xf32>
    %687 = arith.addf %682, %686 : vector<8x32xf32>
    %688 = math.tanh %687 : vector<8x32xf32>
    %cst_176 = arith.constant 1.000000e+00 : f32
    %689 = vector.broadcast %cst_176 : f32 to vector<8x32xf32>
    %690 = arith.subf %689, %681 : vector<8x32xf32>
    %691 = arith.mulf %690, %688 : vector<8x32xf32>
    %692 = arith.mulf %681, %668 : vector<8x32xf32>
    %693 = arith.addf %691, %692 : vector<8x32xf32>
    %694 = vector.extract_strided_slice %632 {offsets = [16, 0], sizes = [8, 96], strides = [1, 1]} : vector<48x96xf32> to vector<8x96xf32>
    %695 = arith.truncf %693 : vector<8x32xf32> to vector<8x32xbf16>
    %cst_177 = arith.constant dense<0.000000e+00> : vector<8x96xf32>
    %696 = tpu.matmul %695, %634, %cst_177 {dimension_numbers = #tpu.dot_dimension_numbers<[1], [0], [0], [1], [0, 0, 1, 1], [], []>} : vector<8x32xbf16>, vector<32x96xbf16>, vector<8x96xf32> -> vector<8x96xf32>
    %697 = vector.extract_strided_slice %694 {offsets = [0, 0], sizes = [8, 64], strides = [1, 1]} : vector<8x96xf32> to vector<8x64xf32>
    %698 = vector.extract_strided_slice %696 {offsets = [0, 0], sizes = [8, 64], strides = [1, 1]} : vector<8x96xf32> to vector<8x64xf32>
    %699 = arith.addf %697, %698 : vector<8x64xf32>
    %700 = arith.negf %699 : vector<8x64xf32>
    %701 = math.exp %700 : vector<8x64xf32>
    %cst_178 = arith.constant 1.000000e+00 : f32
    %702 = vector.broadcast %cst_178 : f32 to vector<8x64xf32>
    %703 = arith.addf %702, %701 : vector<8x64xf32>
    %704 = arith.divf %702, %703 : vector<8x64xf32>
    %705 = vector.extract_strided_slice %704 {offsets = [0, 0], sizes = [8, 32], strides = [1, 1]} : vector<8x64xf32> to vector<8x32xf32>
    %706 = vector.extract_strided_slice %704 {offsets = [0, 32], sizes = [8, 32], strides = [1, 1]} : vector<8x64xf32> to vector<8x32xf32>
    %707 = vector.extract_strided_slice %694 {offsets = [0, 64], sizes = [8, 32], strides = [1, 1]} : vector<8x96xf32> to vector<8x32xf32>
    %708 = vector.extract_strided_slice %696 {offsets = [0, 64], sizes = [8, 32], strides = [1, 1]} : vector<8x96xf32> to vector<8x32xf32>
    %709 = vector.broadcast %636 : vector<1x32xf32> to vector<8x32xf32>
    %710 = arith.addf %708, %709 : vector<8x32xf32>
    %711 = arith.mulf %705, %710 : vector<8x32xf32>
    %712 = arith.addf %707, %711 : vector<8x32xf32>
    %713 = math.tanh %712 : vector<8x32xf32>
    %cst_179 = arith.constant 1.000000e+00 : f32
    %714 = vector.broadcast %cst_179 : f32 to vector<8x32xf32>
    %715 = arith.subf %714, %706 : vector<8x32xf32>
    %716 = arith.mulf %715, %713 : vector<8x32xf32>
    %717 = arith.mulf %706, %693 : vector<8x32xf32>
    %718 = arith.addf %716, %717 : vector<8x32xf32>
    %719 = vector.extract_strided_slice %632 {offsets = [24, 0], sizes = [8, 96], strides = [1, 1]} : vector<48x96xf32> to vector<8x96xf32>
    %720 = arith.truncf %718 : vector<8x32xf32> to vector<8x32xbf16>
    %cst_180 = arith.constant dense<0.000000e+00> : vector<8x96xf32>
    %721 = tpu.matmul %720, %634, %cst_180 {dimension_numbers = #tpu.dot_dimension_numbers<[1], [0], [0], [1], [0, 0, 1, 1], [], []>} : vector<8x32xbf16>, vector<32x96xbf16>, vector<8x96xf32> -> vector<8x96xf32>
    %722 = vector.extract_strided_slice %719 {offsets = [0, 0], sizes = [8, 64], strides = [1, 1]} : vector<8x96xf32> to vector<8x64xf32>
    %723 = vector.extract_strided_slice %721 {offsets = [0, 0], sizes = [8, 64], strides = [1, 1]} : vector<8x96xf32> to vector<8x64xf32>
    %724 = arith.addf %722, %723 : vector<8x64xf32>
    %725 = arith.negf %724 : vector<8x64xf32>
    %726 = math.exp %725 : vector<8x64xf32>
    %cst_181 = arith.constant 1.000000e+00 : f32
    %727 = vector.broadcast %cst_181 : f32 to vector<8x64xf32>
    %728 = arith.addf %727, %726 : vector<8x64xf32>
    %729 = arith.divf %727, %728 : vector<8x64xf32>
    %730 = vector.extract_strided_slice %729 {offsets = [0, 0], sizes = [8, 32], strides = [1, 1]} : vector<8x64xf32> to vector<8x32xf32>
    %731 = vector.extract_strided_slice %729 {offsets = [0, 32], sizes = [8, 32], strides = [1, 1]} : vector<8x64xf32> to vector<8x32xf32>
    %732 = vector.extract_strided_slice %719 {offsets = [0, 64], sizes = [8, 32], strides = [1, 1]} : vector<8x96xf32> to vector<8x32xf32>
    %733 = vector.extract_strided_slice %721 {offsets = [0, 64], sizes = [8, 32], strides = [1, 1]} : vector<8x96xf32> to vector<8x32xf32>
    %734 = vector.broadcast %636 : vector<1x32xf32> to vector<8x32xf32>
    %735 = arith.addf %733, %734 : vector<8x32xf32>
    %736 = arith.mulf %730, %735 : vector<8x32xf32>
    %737 = arith.addf %732, %736 : vector<8x32xf32>
    %738 = math.tanh %737 : vector<8x32xf32>
    %cst_182 = arith.constant 1.000000e+00 : f32
    %739 = vector.broadcast %cst_182 : f32 to vector<8x32xf32>
    %740 = arith.subf %739, %731 : vector<8x32xf32>
    %741 = arith.mulf %740, %738 : vector<8x32xf32>
    %742 = arith.mulf %731, %718 : vector<8x32xf32>
    %743 = arith.addf %741, %742 : vector<8x32xf32>
    %744 = vector.extract_strided_slice %632 {offsets = [32, 0], sizes = [8, 96], strides = [1, 1]} : vector<48x96xf32> to vector<8x96xf32>
    %745 = arith.truncf %743 : vector<8x32xf32> to vector<8x32xbf16>
    %cst_183 = arith.constant dense<0.000000e+00> : vector<8x96xf32>
    %746 = tpu.matmul %745, %634, %cst_183 {dimension_numbers = #tpu.dot_dimension_numbers<[1], [0], [0], [1], [0, 0, 1, 1], [], []>} : vector<8x32xbf16>, vector<32x96xbf16>, vector<8x96xf32> -> vector<8x96xf32>
    %747 = vector.extract_strided_slice %744 {offsets = [0, 0], sizes = [8, 64], strides = [1, 1]} : vector<8x96xf32> to vector<8x64xf32>
    %748 = vector.extract_strided_slice %746 {offsets = [0, 0], sizes = [8, 64], strides = [1, 1]} : vector<8x96xf32> to vector<8x64xf32>
    %749 = arith.addf %747, %748 : vector<8x64xf32>
    %750 = arith.negf %749 : vector<8x64xf32>
    %751 = math.exp %750 : vector<8x64xf32>
    %cst_184 = arith.constant 1.000000e+00 : f32
    %752 = vector.broadcast %cst_184 : f32 to vector<8x64xf32>
    %753 = arith.addf %752, %751 : vector<8x64xf32>
    %754 = arith.divf %752, %753 : vector<8x64xf32>
    %755 = vector.extract_strided_slice %754 {offsets = [0, 0], sizes = [8, 32], strides = [1, 1]} : vector<8x64xf32> to vector<8x32xf32>
    %756 = vector.extract_strided_slice %754 {offsets = [0, 32], sizes = [8, 32], strides = [1, 1]} : vector<8x64xf32> to vector<8x32xf32>
    %757 = vector.extract_strided_slice %744 {offsets = [0, 64], sizes = [8, 32], strides = [1, 1]} : vector<8x96xf32> to vector<8x32xf32>
    %758 = vector.extract_strided_slice %746 {offsets = [0, 64], sizes = [8, 32], strides = [1, 1]} : vector<8x96xf32> to vector<8x32xf32>
    %759 = vector.broadcast %636 : vector<1x32xf32> to vector<8x32xf32>
    %760 = arith.addf %758, %759 : vector<8x32xf32>
    %761 = arith.mulf %755, %760 : vector<8x32xf32>
    %762 = arith.addf %757, %761 : vector<8x32xf32>
    %763 = math.tanh %762 : vector<8x32xf32>
    %cst_185 = arith.constant 1.000000e+00 : f32
    %764 = vector.broadcast %cst_185 : f32 to vector<8x32xf32>
    %765 = arith.subf %764, %756 : vector<8x32xf32>
    %766 = arith.mulf %765, %763 : vector<8x32xf32>
    %767 = arith.mulf %756, %743 : vector<8x32xf32>
    %768 = arith.addf %766, %767 : vector<8x32xf32>
    %769 = vector.extract_strided_slice %632 {offsets = [40, 0], sizes = [8, 96], strides = [1, 1]} : vector<48x96xf32> to vector<8x96xf32>
    %770 = arith.truncf %768 : vector<8x32xf32> to vector<8x32xbf16>
    %cst_186 = arith.constant dense<0.000000e+00> : vector<8x96xf32>
    %771 = tpu.matmul %770, %634, %cst_186 {dimension_numbers = #tpu.dot_dimension_numbers<[1], [0], [0], [1], [0, 0, 1, 1], [], []>} : vector<8x32xbf16>, vector<32x96xbf16>, vector<8x96xf32> -> vector<8x96xf32>
    %772 = vector.extract_strided_slice %769 {offsets = [0, 0], sizes = [8, 64], strides = [1, 1]} : vector<8x96xf32> to vector<8x64xf32>
    %773 = vector.extract_strided_slice %771 {offsets = [0, 0], sizes = [8, 64], strides = [1, 1]} : vector<8x96xf32> to vector<8x64xf32>
    %774 = arith.addf %772, %773 : vector<8x64xf32>
    %775 = arith.negf %774 : vector<8x64xf32>
    %776 = math.exp %775 : vector<8x64xf32>
    %cst_187 = arith.constant 1.000000e+00 : f32
    %777 = vector.broadcast %cst_187 : f32 to vector<8x64xf32>
    %778 = arith.addf %777, %776 : vector<8x64xf32>
    %779 = arith.divf %777, %778 : vector<8x64xf32>
    %780 = vector.extract_strided_slice %779 {offsets = [0, 0], sizes = [8, 32], strides = [1, 1]} : vector<8x64xf32> to vector<8x32xf32>
    %781 = vector.extract_strided_slice %779 {offsets = [0, 32], sizes = [8, 32], strides = [1, 1]} : vector<8x64xf32> to vector<8x32xf32>
    %782 = vector.extract_strided_slice %769 {offsets = [0, 64], sizes = [8, 32], strides = [1, 1]} : vector<8x96xf32> to vector<8x32xf32>
    %783 = vector.extract_strided_slice %771 {offsets = [0, 64], sizes = [8, 32], strides = [1, 1]} : vector<8x96xf32> to vector<8x32xf32>
    %784 = vector.broadcast %636 : vector<1x32xf32> to vector<8x32xf32>
    %785 = arith.addf %783, %784 : vector<8x32xf32>
    %786 = arith.mulf %780, %785 : vector<8x32xf32>
    %787 = arith.addf %782, %786 : vector<8x32xf32>
    %788 = math.tanh %787 : vector<8x32xf32>
    %cst_188 = arith.constant 1.000000e+00 : f32
    %789 = vector.broadcast %cst_188 : f32 to vector<8x32xf32>
    %790 = arith.subf %789, %781 : vector<8x32xf32>
    %791 = arith.mulf %790, %788 : vector<8x32xf32>
    %792 = arith.mulf %781, %768 : vector<8x32xf32>
    %793 = arith.addf %791, %792 : vector<8x32xf32>
    %794 = arith.addf %624, %793 : vector<8x32xf32>
    %795 = tpu.concatenate %668, %693, %718, %743, %768, %793 in 0 : vector<8x32xf32>, vector<8x32xf32>, vector<8x32xf32>, vector<8x32xf32>, vector<8x32xf32>, vector<8x32xf32> -> vector<48x32xf32>
    %796 = arith.truncf %795 : vector<48x32xf32> to vector<48x32xbf16>
    %c1_189 = arith.constant 1 : index
    %c0_190 = arith.constant 0 : index
    %c0_191 = arith.constant 0 : index
    %797 = vector.load %arg14[%c1_189, %c0_190, %c0_191] : memref<2x32x96xbf16, #tpu.memory_space<vmem>>, vector<1x32x96xbf16>
    %798 = vector.shape_cast %797 : vector<1x32x96xbf16> to vector<32x96xbf16>
    %cst_192 = arith.constant dense<0.000000e+00> : vector<48x96xf32>
    %799 = tpu.matmul %796, %798, %cst_192 {dimension_numbers = #tpu.dot_dimension_numbers<[1], [0], [0], [1], [0, 0, 1, 1], [], []>} : vector<48x32xbf16>, vector<32x96xbf16>, vector<48x96xf32> -> vector<48x96xf32>
    %c1_193 = arith.constant 1 : index
    %c0_194 = arith.constant 0 : index
    %c0_195 = arith.constant 0 : index
    %800 = vector.load %arg16[%c1_193, %c0_194, %c0_195] : memref<2x1x96xf32, #tpu.memory_space<vmem>>, vector<1x1x96xf32>
    %801 = vector.shape_cast %800 : vector<1x1x96xf32> to vector<1x96xf32>
    %802 = vector.broadcast %801 : vector<1x96xf32> to vector<48x96xf32>
    %803 = arith.addf %799, %802 : vector<48x96xf32>
    %c1_196 = arith.constant 1 : index
    %c0_197 = arith.constant 0 : index
    %c0_198 = arith.constant 0 : index
    %804 = vector.load %arg15[%c1_196, %c0_197, %c0_198] : memref<2x32x96xbf16, #tpu.memory_space<vmem>>, vector<1x32x96xbf16>
    %805 = vector.shape_cast %804 : vector<1x32x96xbf16> to vector<32x96xbf16>
    %c1_199 = arith.constant 1 : index
    %c0_200 = arith.constant 0 : index
    %c0_201 = arith.constant 0 : index
    %806 = vector.load %arg17[%c1_199, %c0_200, %c0_201] : memref<2x1x32xf32, #tpu.memory_space<vmem>>, vector<1x1x32xf32>
    %807 = vector.shape_cast %806 : vector<1x1x32xf32> to vector<1x32xf32>
    %808 = vector.extract_strided_slice %609 {offsets = [0, 0], sizes = [1, 32], strides = [1, 1]} : vector<2x32xf32> to vector<1x32xf32>
    %809 = vector.shape_cast %808 : vector<1x32xf32> to vector<1x32xf32>
    %810 = vector.broadcast %809 : vector<1x32xf32> to vector<4x32xf32>
    %811 = vector.extract_strided_slice %609 {offsets = [1, 0], sizes = [1, 32], strides = [1, 1]} : vector<2x32xf32> to vector<1x32xf32>
    %812 = vector.shape_cast %811 : vector<1x32xf32> to vector<1x32xf32>
    %813 = vector.broadcast %812 : vector<1x32xf32> to vector<4x32xf32>
    %814 = tpu.concatenate %810, %813 in 0 : vector<4x32xf32>, vector<4x32xf32> -> vector<8x32xf32>
    %815 = vector.extract_strided_slice %803 {offsets = [0, 0], sizes = [8, 96], strides = [1, 1]} : vector<48x96xf32> to vector<8x96xf32>
    %816 = arith.truncf %814 : vector<8x32xf32> to vector<8x32xbf16>
    %cst_202 = arith.constant dense<0.000000e+00> : vector<8x96xf32>
    %817 = tpu.matmul %816, %805, %cst_202 {dimension_numbers = #tpu.dot_dimension_numbers<[1], [0], [0], [1], [0, 0, 1, 1], [], []>} : vector<8x32xbf16>, vector<32x96xbf16>, vector<8x96xf32> -> vector<8x96xf32>
    %818 = vector.extract_strided_slice %815 {offsets = [0, 0], sizes = [8, 64], strides = [1, 1]} : vector<8x96xf32> to vector<8x64xf32>
    %819 = vector.extract_strided_slice %817 {offsets = [0, 0], sizes = [8, 64], strides = [1, 1]} : vector<8x96xf32> to vector<8x64xf32>
    %820 = arith.addf %818, %819 : vector<8x64xf32>
    %821 = arith.negf %820 : vector<8x64xf32>
    %822 = math.exp %821 : vector<8x64xf32>
    %cst_203 = arith.constant 1.000000e+00 : f32
    %823 = vector.broadcast %cst_203 : f32 to vector<8x64xf32>
    %824 = arith.addf %823, %822 : vector<8x64xf32>
    %825 = arith.divf %823, %824 : vector<8x64xf32>
    %826 = vector.extract_strided_slice %825 {offsets = [0, 0], sizes = [8, 32], strides = [1, 1]} : vector<8x64xf32> to vector<8x32xf32>
    %827 = vector.extract_strided_slice %825 {offsets = [0, 32], sizes = [8, 32], strides = [1, 1]} : vector<8x64xf32> to vector<8x32xf32>
    %828 = vector.extract_strided_slice %815 {offsets = [0, 64], sizes = [8, 32], strides = [1, 1]} : vector<8x96xf32> to vector<8x32xf32>
    %829 = vector.extract_strided_slice %817 {offsets = [0, 64], sizes = [8, 32], strides = [1, 1]} : vector<8x96xf32> to vector<8x32xf32>
    %830 = vector.broadcast %807 : vector<1x32xf32> to vector<8x32xf32>
    %831 = arith.addf %829, %830 : vector<8x32xf32>
    %832 = arith.mulf %826, %831 : vector<8x32xf32>
    %833 = arith.addf %828, %832 : vector<8x32xf32>
    %834 = math.tanh %833 : vector<8x32xf32>
    %cst_204 = arith.constant 1.000000e+00 : f32
    %835 = vector.broadcast %cst_204 : f32 to vector<8x32xf32>
    %836 = arith.subf %835, %827 : vector<8x32xf32>
    %837 = arith.mulf %836, %834 : vector<8x32xf32>
    %838 = arith.mulf %827, %814 : vector<8x32xf32>
    %839 = arith.addf %837, %838 : vector<8x32xf32>
    %840 = vector.extract_strided_slice %803 {offsets = [8, 0], sizes = [8, 96], strides = [1, 1]} : vector<48x96xf32> to vector<8x96xf32>
    %841 = arith.truncf %839 : vector<8x32xf32> to vector<8x32xbf16>
    %cst_205 = arith.constant dense<0.000000e+00> : vector<8x96xf32>
    %842 = tpu.matmul %841, %805, %cst_205 {dimension_numbers = #tpu.dot_dimension_numbers<[1], [0], [0], [1], [0, 0, 1, 1], [], []>} : vector<8x32xbf16>, vector<32x96xbf16>, vector<8x96xf32> -> vector<8x96xf32>
    %843 = vector.extract_strided_slice %840 {offsets = [0, 0], sizes = [8, 64], strides = [1, 1]} : vector<8x96xf32> to vector<8x64xf32>
    %844 = vector.extract_strided_slice %842 {offsets = [0, 0], sizes = [8, 64], strides = [1, 1]} : vector<8x96xf32> to vector<8x64xf32>
    %845 = arith.addf %843, %844 : vector<8x64xf32>
    %846 = arith.negf %845 : vector<8x64xf32>
    %847 = math.exp %846 : vector<8x64xf32>
    %cst_206 = arith.constant 1.000000e+00 : f32
    %848 = vector.broadcast %cst_206 : f32 to vector<8x64xf32>
    %849 = arith.addf %848, %847 : vector<8x64xf32>
    %850 = arith.divf %848, %849 : vector<8x64xf32>
    %851 = vector.extract_strided_slice %850 {offsets = [0, 0], sizes = [8, 32], strides = [1, 1]} : vector<8x64xf32> to vector<8x32xf32>
    %852 = vector.extract_strided_slice %850 {offsets = [0, 32], sizes = [8, 32], strides = [1, 1]} : vector<8x64xf32> to vector<8x32xf32>
    %853 = vector.extract_strided_slice %840 {offsets = [0, 64], sizes = [8, 32], strides = [1, 1]} : vector<8x96xf32> to vector<8x32xf32>
    %854 = vector.extract_strided_slice %842 {offsets = [0, 64], sizes = [8, 32], strides = [1, 1]} : vector<8x96xf32> to vector<8x32xf32>
    %855 = vector.broadcast %807 : vector<1x32xf32> to vector<8x32xf32>
    %856 = arith.addf %854, %855 : vector<8x32xf32>
    %857 = arith.mulf %851, %856 : vector<8x32xf32>
    %858 = arith.addf %853, %857 : vector<8x32xf32>
    %859 = math.tanh %858 : vector<8x32xf32>
    %cst_207 = arith.constant 1.000000e+00 : f32
    %860 = vector.broadcast %cst_207 : f32 to vector<8x32xf32>
    %861 = arith.subf %860, %852 : vector<8x32xf32>
    %862 = arith.mulf %861, %859 : vector<8x32xf32>
    %863 = arith.mulf %852, %839 : vector<8x32xf32>
    %864 = arith.addf %862, %863 : vector<8x32xf32>
    %865 = vector.extract_strided_slice %803 {offsets = [16, 0], sizes = [8, 96], strides = [1, 1]} : vector<48x96xf32> to vector<8x96xf32>
    %866 = arith.truncf %864 : vector<8x32xf32> to vector<8x32xbf16>
    %cst_208 = arith.constant dense<0.000000e+00> : vector<8x96xf32>
    %867 = tpu.matmul %866, %805, %cst_208 {dimension_numbers = #tpu.dot_dimension_numbers<[1], [0], [0], [1], [0, 0, 1, 1], [], []>} : vector<8x32xbf16>, vector<32x96xbf16>, vector<8x96xf32> -> vector<8x96xf32>
    %868 = vector.extract_strided_slice %865 {offsets = [0, 0], sizes = [8, 64], strides = [1, 1]} : vector<8x96xf32> to vector<8x64xf32>
    %869 = vector.extract_strided_slice %867 {offsets = [0, 0], sizes = [8, 64], strides = [1, 1]} : vector<8x96xf32> to vector<8x64xf32>
    %870 = arith.addf %868, %869 : vector<8x64xf32>
    %871 = arith.negf %870 : vector<8x64xf32>
    %872 = math.exp %871 : vector<8x64xf32>
    %cst_209 = arith.constant 1.000000e+00 : f32
    %873 = vector.broadcast %cst_209 : f32 to vector<8x64xf32>
    %874 = arith.addf %873, %872 : vector<8x64xf32>
    %875 = arith.divf %873, %874 : vector<8x64xf32>
    %876 = vector.extract_strided_slice %875 {offsets = [0, 0], sizes = [8, 32], strides = [1, 1]} : vector<8x64xf32> to vector<8x32xf32>
    %877 = vector.extract_strided_slice %875 {offsets = [0, 32], sizes = [8, 32], strides = [1, 1]} : vector<8x64xf32> to vector<8x32xf32>
    %878 = vector.extract_strided_slice %865 {offsets = [0, 64], sizes = [8, 32], strides = [1, 1]} : vector<8x96xf32> to vector<8x32xf32>
    %879 = vector.extract_strided_slice %867 {offsets = [0, 64], sizes = [8, 32], strides = [1, 1]} : vector<8x96xf32> to vector<8x32xf32>
    %880 = vector.broadcast %807 : vector<1x32xf32> to vector<8x32xf32>
    %881 = arith.addf %879, %880 : vector<8x32xf32>
    %882 = arith.mulf %876, %881 : vector<8x32xf32>
    %883 = arith.addf %878, %882 : vector<8x32xf32>
    %884 = math.tanh %883 : vector<8x32xf32>
    %cst_210 = arith.constant 1.000000e+00 : f32
    %885 = vector.broadcast %cst_210 : f32 to vector<8x32xf32>
    %886 = arith.subf %885, %877 : vector<8x32xf32>
    %887 = arith.mulf %886, %884 : vector<8x32xf32>
    %888 = arith.mulf %877, %864 : vector<8x32xf32>
    %889 = arith.addf %887, %888 : vector<8x32xf32>
    %890 = vector.extract_strided_slice %803 {offsets = [24, 0], sizes = [8, 96], strides = [1, 1]} : vector<48x96xf32> to vector<8x96xf32>
    %891 = arith.truncf %889 : vector<8x32xf32> to vector<8x32xbf16>
    %cst_211 = arith.constant dense<0.000000e+00> : vector<8x96xf32>
    %892 = tpu.matmul %891, %805, %cst_211 {dimension_numbers = #tpu.dot_dimension_numbers<[1], [0], [0], [1], [0, 0, 1, 1], [], []>} : vector<8x32xbf16>, vector<32x96xbf16>, vector<8x96xf32> -> vector<8x96xf32>
    %893 = vector.extract_strided_slice %890 {offsets = [0, 0], sizes = [8, 64], strides = [1, 1]} : vector<8x96xf32> to vector<8x64xf32>
    %894 = vector.extract_strided_slice %892 {offsets = [0, 0], sizes = [8, 64], strides = [1, 1]} : vector<8x96xf32> to vector<8x64xf32>
    %895 = arith.addf %893, %894 : vector<8x64xf32>
    %896 = arith.negf %895 : vector<8x64xf32>
    %897 = math.exp %896 : vector<8x64xf32>
    %cst_212 = arith.constant 1.000000e+00 : f32
    %898 = vector.broadcast %cst_212 : f32 to vector<8x64xf32>
    %899 = arith.addf %898, %897 : vector<8x64xf32>
    %900 = arith.divf %898, %899 : vector<8x64xf32>
    %901 = vector.extract_strided_slice %900 {offsets = [0, 0], sizes = [8, 32], strides = [1, 1]} : vector<8x64xf32> to vector<8x32xf32>
    %902 = vector.extract_strided_slice %900 {offsets = [0, 32], sizes = [8, 32], strides = [1, 1]} : vector<8x64xf32> to vector<8x32xf32>
    %903 = vector.extract_strided_slice %890 {offsets = [0, 64], sizes = [8, 32], strides = [1, 1]} : vector<8x96xf32> to vector<8x32xf32>
    %904 = vector.extract_strided_slice %892 {offsets = [0, 64], sizes = [8, 32], strides = [1, 1]} : vector<8x96xf32> to vector<8x32xf32>
    %905 = vector.broadcast %807 : vector<1x32xf32> to vector<8x32xf32>
    %906 = arith.addf %904, %905 : vector<8x32xf32>
    %907 = arith.mulf %901, %906 : vector<8x32xf32>
    %908 = arith.addf %903, %907 : vector<8x32xf32>
    %909 = math.tanh %908 : vector<8x32xf32>
    %cst_213 = arith.constant 1.000000e+00 : f32
    %910 = vector.broadcast %cst_213 : f32 to vector<8x32xf32>
    %911 = arith.subf %910, %902 : vector<8x32xf32>
    %912 = arith.mulf %911, %909 : vector<8x32xf32>
    %913 = arith.mulf %902, %889 : vector<8x32xf32>
    %914 = arith.addf %912, %913 : vector<8x32xf32>
    %915 = vector.extract_strided_slice %803 {offsets = [32, 0], sizes = [8, 96], strides = [1, 1]} : vector<48x96xf32> to vector<8x96xf32>
    %916 = arith.truncf %914 : vector<8x32xf32> to vector<8x32xbf16>
    %cst_214 = arith.constant dense<0.000000e+00> : vector<8x96xf32>
    %917 = tpu.matmul %916, %805, %cst_214 {dimension_numbers = #tpu.dot_dimension_numbers<[1], [0], [0], [1], [0, 0, 1, 1], [], []>} : vector<8x32xbf16>, vector<32x96xbf16>, vector<8x96xf32> -> vector<8x96xf32>
    %918 = vector.extract_strided_slice %915 {offsets = [0, 0], sizes = [8, 64], strides = [1, 1]} : vector<8x96xf32> to vector<8x64xf32>
    %919 = vector.extract_strided_slice %917 {offsets = [0, 0], sizes = [8, 64], strides = [1, 1]} : vector<8x96xf32> to vector<8x64xf32>
    %920 = arith.addf %918, %919 : vector<8x64xf32>
    %921 = arith.negf %920 : vector<8x64xf32>
    %922 = math.exp %921 : vector<8x64xf32>
    %cst_215 = arith.constant 1.000000e+00 : f32
    %923 = vector.broadcast %cst_215 : f32 to vector<8x64xf32>
    %924 = arith.addf %923, %922 : vector<8x64xf32>
    %925 = arith.divf %923, %924 : vector<8x64xf32>
    %926 = vector.extract_strided_slice %925 {offsets = [0, 0], sizes = [8, 32], strides = [1, 1]} : vector<8x64xf32> to vector<8x32xf32>
    %927 = vector.extract_strided_slice %925 {offsets = [0, 32], sizes = [8, 32], strides = [1, 1]} : vector<8x64xf32> to vector<8x32xf32>
    %928 = vector.extract_strided_slice %915 {offsets = [0, 64], sizes = [8, 32], strides = [1, 1]} : vector<8x96xf32> to vector<8x32xf32>
    %929 = vector.extract_strided_slice %917 {offsets = [0, 64], sizes = [8, 32], strides = [1, 1]} : vector<8x96xf32> to vector<8x32xf32>
    %930 = vector.broadcast %807 : vector<1x32xf32> to vector<8x32xf32>
    %931 = arith.addf %929, %930 : vector<8x32xf32>
    %932 = arith.mulf %926, %931 : vector<8x32xf32>
    %933 = arith.addf %928, %932 : vector<8x32xf32>
    %934 = math.tanh %933 : vector<8x32xf32>
    %cst_216 = arith.constant 1.000000e+00 : f32
    %935 = vector.broadcast %cst_216 : f32 to vector<8x32xf32>
    %936 = arith.subf %935, %927 : vector<8x32xf32>
    %937 = arith.mulf %936, %934 : vector<8x32xf32>
    %938 = arith.mulf %927, %914 : vector<8x32xf32>
    %939 = arith.addf %937, %938 : vector<8x32xf32>
    %940 = vector.extract_strided_slice %803 {offsets = [40, 0], sizes = [8, 96], strides = [1, 1]} : vector<48x96xf32> to vector<8x96xf32>
    %941 = arith.truncf %939 : vector<8x32xf32> to vector<8x32xbf16>
    %cst_217 = arith.constant dense<0.000000e+00> : vector<8x96xf32>
    %942 = tpu.matmul %941, %805, %cst_217 {dimension_numbers = #tpu.dot_dimension_numbers<[1], [0], [0], [1], [0, 0, 1, 1], [], []>} : vector<8x32xbf16>, vector<32x96xbf16>, vector<8x96xf32> -> vector<8x96xf32>
    %943 = vector.extract_strided_slice %940 {offsets = [0, 0], sizes = [8, 64], strides = [1, 1]} : vector<8x96xf32> to vector<8x64xf32>
    %944 = vector.extract_strided_slice %942 {offsets = [0, 0], sizes = [8, 64], strides = [1, 1]} : vector<8x96xf32> to vector<8x64xf32>
    %945 = arith.addf %943, %944 : vector<8x64xf32>
    %946 = arith.negf %945 : vector<8x64xf32>
    %947 = math.exp %946 : vector<8x64xf32>
    %cst_218 = arith.constant 1.000000e+00 : f32
    %948 = vector.broadcast %cst_218 : f32 to vector<8x64xf32>
    %949 = arith.addf %948, %947 : vector<8x64xf32>
    %950 = arith.divf %948, %949 : vector<8x64xf32>
    %951 = vector.extract_strided_slice %950 {offsets = [0, 0], sizes = [8, 32], strides = [1, 1]} : vector<8x64xf32> to vector<8x32xf32>
    %952 = vector.extract_strided_slice %950 {offsets = [0, 32], sizes = [8, 32], strides = [1, 1]} : vector<8x64xf32> to vector<8x32xf32>
    %953 = vector.extract_strided_slice %940 {offsets = [0, 64], sizes = [8, 32], strides = [1, 1]} : vector<8x96xf32> to vector<8x32xf32>
    %954 = vector.extract_strided_slice %942 {offsets = [0, 64], sizes = [8, 32], strides = [1, 1]} : vector<8x96xf32> to vector<8x32xf32>
    %955 = vector.broadcast %807 : vector<1x32xf32> to vector<8x32xf32>
    %956 = arith.addf %954, %955 : vector<8x32xf32>
    %957 = arith.mulf %951, %956 : vector<8x32xf32>
    %958 = arith.addf %953, %957 : vector<8x32xf32>
    %959 = math.tanh %958 : vector<8x32xf32>
    %cst_219 = arith.constant 1.000000e+00 : f32
    %960 = vector.broadcast %cst_219 : f32 to vector<8x32xf32>
    %961 = arith.subf %960, %952 : vector<8x32xf32>
    %962 = arith.mulf %961, %959 : vector<8x32xf32>
    %963 = arith.mulf %952, %939 : vector<8x32xf32>
    %964 = arith.addf %962, %963 : vector<8x32xf32>
    %965 = arith.addf %794, %964 : vector<8x32xf32>
    %cst_220 = arith.constant 5.000000e-01 : f32
    %966 = vector.broadcast %cst_220 : f32 to vector<8x32xf32>
    %967 = arith.mulf %965, %966 : vector<8x32xf32>
    %c0_221 = arith.constant 0 : index
    %c0_222 = arith.constant 0 : index
    %968 = vector.load %arg18[%c0_221, %c0_222] : memref<1x32xf32, #tpu.memory_space<vmem>>, vector<1x32xf32>
    %969 = vector.broadcast %968 : vector<1x32xf32> to vector<8x32xf32>
    %970 = arith.mulf %967, %969 : vector<8x32xf32>
    %cst_223 = arith.constant dense<0.000000e+00> : vector<8xf32>
    %971 = vector.multi_reduction <add>, %970, %cst_223 [1] : vector<8x32xf32> to vector<8xf32>
    %972 = vector.shape_cast %971 : vector<8xf32> to vector<8x1xf32>
    %c0_224 = arith.constant 0 : index
    %c0_225 = arith.constant 0 : index
    %973 = vector.load %arg19[%c0_224, %c0_225] : memref<1x1xf32, #tpu.memory_space<vmem>>, vector<1x1xf32>
    %974 = vector.broadcast %973 : vector<1x1xf32> to vector<8x1xf32>
    %975 = arith.addf %972, %974 : vector<8x1xf32>
    %c0_226 = arith.constant 0 : index
    %c0_227 = arith.constant 0 : index
    %976 = vector.load %arg20[%c0_226, %c0_227] : memref<8x1xf32, #tpu.memory_space<vmem>>, vector<8x1xf32>
    tpu.vector_store %arg20[%c0_226, %c0_227], %975 {strides = array<i32>} : memref<8x1xf32, #tpu.memory_space<vmem>>, vector<8x1xf32>,
    return
  }
}

</mosaic_0001>

<bundles_post_ra>
// kernel: acc_model_forward.1
= control target key start
LH: loop header
LB: loop body
LE: loop exit
PB: predicated region body
PF: predicated region fallthrough
CT: control target
= control target key end

     0   :  { %v4427_v0 = vmov 0.0   ;;  %vm4428_vm0 = vmmov 0   ;;  %vm70_vm1 = vcmask 518144   ;;  %vm111_vm2 = vcmask 1041409   ;;  %s4431_s21 = smov 96   ;;  %s5692_s3 = inlined_call_operand.vmem [shape: bf16[64,64], index: 3, kind: input, shape index: {}]   ;;  %s5693_s2 = inlined_call_operand.vmem [shape: f32[2,3,64], index: 2, kind: input, shape index: {}]   ;;  %s5694_s4 = inlined_call_operand.vmem [shape: f32[1,64], index: 4, kind: input, shape index: {}]   ;;  %s5695_s8 = inlined_call_operand.vmem [shape: bf16[64,32], index: 8, kind: input, shape index: {}]   ;;  %s5696_s7 = inlined_call_operand.vmem [shape: bf16[32,32], index: 7, kind: input, shape index: {}]   ;;  %s5697_s0 = inlined_call_operand.vmem [shape: f32[2,8,32], index: 0, kind: input, shape index: {}]   ;;  %s5698_s5 = inlined_call_operand.vmem [shape: f32[1,64], index: 5, kind: input, shape index: {}]   ;;  %s5699_s6 = inlined_call_operand.vmem [shape: f32[1,64], index: 6, kind: input, shape index: {}]   ;;  %s5700_s10 = inlined_call_operand.vmem [shape: bf16[2,2,64,96], index: 10, kind: input, shape index: {}]   ;;  %s5701_s11 = inlined_call_operand.vmem [shape: bf16[2,64,96], index: 11, kind: input, shape index: {}]   ;;  %s5702_s13 = inlined_call_operand.vmem [shape: f32[2,2,1,32], index: 13, kind: input, shape index: {}]   ;;  %s5703_s9 = inlined_call_operand.vmem [shape: f32[1,32], index: 9, kind: input, shape index: {}]   ;;  %s5704_s12 = inlined_call_operand.vmem [shape: f32[2,2,1,96], index: 12, kind: input, shape index: {}]   ;;  %s5705_s1 = inlined_call_operand.vmem [shape: f32[8,6,32], index: 1, kind: input, shape index: {}]   ;;  %s5706_s14 = inlined_call_operand.vmem [shape: bf16[2,32,96], index: 14, kind: input, shape index: {}]   ;;  %s5707_s15 = inlined_call_operand.vmem [shape: bf16[2,32,96], index: 15, kind: input, shape index: {}]   ;;  %s5708_s17 = inlined_call_operand.vmem [shape: f32[2,1,32], index: 17, kind: input, shape index: {}]   ;;  %s5709_s16 = inlined_call_operand.vmem [shape: f32[2,1,96], index: 16, kind: input, shape index: {}]   ;;  %s5710_s18 = inlined_call_operand.vmem [shape: f32[1,32], index: 18, kind: input, shape index: {}]   ;;  %s5711_s19 = inlined_call_operand.<no memory space> [shape: f32[1,1], index: 19, kind: input, shape index: {}]   ;;  %s5712_s20 = inlined_call_operand.vmem [shape: f32[8,1], index: 20, kind: output, shape index: {}]  }
   0x1   :  { %5717 = sst [smem:[#allocation3_spill]] %s5692_s3  ;;  %3821 = vmatprep.subr.bf16.mxu0 %v4427_v0  ;;  %3829 = vmatprep.mubr.msk.bf16.mxu0 %vm4428_vm0, %v4427_v0  ;;  %vm138_vm3 = vcmask 523264   ;;  %vm182_vm4 = vcmask 517120   ;;  %vm322_vm5 = vcmask 1043459   ;;  %vm327_vm6 = vcmask 1045509   ;;  %v311_v48 = vld [vmem:[%s5697_s0] sm:$0xff] }
   0x2   :  { %5718 = sst [smem:[#allocation4_spill]] %s5693_s2  ;;  %3833 = vmatprep.subr.bf16.mxu1 %v4427_v0  ;;  %3841 = vmatprep.mubr.msk.bf16.mxu1 %vm4428_vm0, %v4427_v0  ;;  %vm332_vm7 = vcmask 1047559   ;;  %v312_v49 = vld [vmem:[%s5697_s0 + $0x8] sm:$0xff]  ;;  %vm350_vm8 = vcmask 1041408   ;;  %vm352_vm9 = vcmask 1043456   ;;  %vm354_vm10 = vcmask 1045504  }
   0x3   :  { %5719 = sst [smem:[#allocation5_spill]] %s5694_s4  ;;  %v317_v50 = vrot.slane %v312_v49, 7  ;;  %v320_v51 = vrot.slane %v311_v48, 7  ;;  %v321_v52 = vrot.slane %v312_v49, 6  ;;  %v325_v53 = vrot.slane %v311_v48, 6  ;;  %s4429_s0 = smov 64  }
   0x4   :  { %5720 = sst [smem:[#allocation6_spill]] %s5695_s8  ;;  %v326_v54 = vrot.slane %v312_v49, 5  ;;  %v330_v55 = vrot.slane %v311_v48, 5  ;;  %v331_v56 = vrot.slane %v312_v49, 4  ;;  %v335_v57 = vrot.slane %v311_v48, 4 }
   0x5   :  { %5721 = sst [smem:[#allocation7_spill]] %s5696_s7  ;;  %v318_v58 = vsel %vm111_vm2, %v317_v50, %v311_v48  ;;  %v323_v59 = vsel %vm322_vm5, %v321_v52, %v320_v51  ;;  %v336_v60 = vrot.slane %v312_v49, 3  ;;  %v339_v61 = vrot.slane %v311_v48, 3 }
   0x6   :  { %s5722_s23 = sld [smem:[#allocation3_spill]]  ;;  %v328_v63 = vsel %vm327_vm6, %v326_v54, %v325_v53  ;;  %vm386_vm11 = vcmask 261120   ;;  %vm2220_vm12 = vcmask 1042434   ;;  %vm2225_vm13 = vcmask 1044484  }
   0x7   :  { %s5723_s26 = sld [smem:[#allocation4_spill]]  ;;  %vm2230_vm14 = vcmask 1046534   ;;  %vm3491_vm15 = vcmask 7168  }
   0x8   :  { %s5724_s22 = sld [smem:[#allocation5_spill]] }
   0x9   :  { %s5725_s4 = sld [smem:[#allocation6_spill]] }
   0xa   :  { %s5726_s28 = sld [smem:[#allocation7_spill]] }
   0xc   :  { %v4219_v1 = vld [vmem:[%s5722_s23 + $0x18] sm:$0xff]   ;;  %v4220_v2 = vld [vmem:[%s5722_s23 + $0x10] sm:$0xff]   ;;  %v4221_v7 = vld [vmem:[%s5722_s23 + $0x8] sm:$0xff]  }
   0xd   :  { %3822 = vmatpush3.bf16.msra.mxu0 %v4219_v1  ;;  %v68_v3 = vld [vmem:[%s5723_s26] sm:$0x7]  ;;  %v69_v4 = vld [vmem:[%s5723_s26 + $0x4] sm:$0x7]  ;;  %v333_v1 = vsel %vm332_vm7, %v331_v56, %v330_v55  ;;  %s4432_s26 = smov 32  }
   0xe   :  { %3823 = vmatprep.subr.bf16.mxu0 %v4427_v0  ;;  %v71_v5 = vsel %vm70_vm1, %v68_v3, 0.0  ;;  %v78_v6 = vsel %vm70_vm1, %v69_v4, 0.0  ;;  %v4222_v12 = vld [vmem:[%s5722_s23] sm:$0xff]   ;;  %v343_v3 = vrot.slane %v311_v48, 2  ;;  %v337_v4 = vsel %vm111_vm2, %v336_v60, %v335_v57 }
   0xf   :  { %v72_v8 = vrot.slane %v71_v5, 4  ;;  %v79_v9 = vrot.slane %v78_v6, 4  ;;  %v3497_v31 = vld [vmem:[%s5724_s22] ss:$0 sm:$0xff]  ;;  %v4223_v43 = vld [vmem:[%s5725_s4 + $0x18] sm:$0xff]   ;;  %v4224_v44 = vld [vmem:[%s5725_s4 + $0x10] sm:$0xff]  }
  0x10   :  { %3834 = vmatpush3.bf16.msra.mxu1 %v4223_v43  ;;  %v4225_v45 = vld [vmem:[%s5726_s28 + $0x8] sm:$0xff]   ;;  %v4227_v46 = vld [vmem:[%s5726_s28] sm:$0xff]  }
  0x11   :  { %3824 = vmatpush3.bf16.msra.mxu0 %v4220_v2  ;;  %v73_v10 = vadd.f32 %v72_v8, %v71_v5  ;;  %v80_v11 = vadd.f32 %v79_v9, %v78_v6  ;;  %3835 = vmatprep.subr.bf16.mxu1 %v4427_v0  ;;  %v4226_v47 = vld [vmem:[%s5725_s4 + $0x8] sm:$0xff]   ;;  %v4228_v62 = vld [vmem:[%s5725_s4] sm:$0xff]   ;;  %v340_v2 = vrot.slane %v312_v49, 2  ;;  %v344_v5 = vrot.slane %v312_v49, 1 }
  0x12   :  { %3825 = vmatprep.subr.bf16.mxu0 %v4427_v0  ;;  %v347_v6 = vrot.slane %v311_v48, 1  ;;  %v4231_v43 = vld [vmem:[%s5700_s10] sm:$0xff]  }
  0x13   :  { %v74_v13 = vrot.slane %v73_v10, 2  ;;  %v81_v14 = vrot.slane %v80_v11, 2  ;;  %v341_v8 = vsel %vm322_vm5, %v340_v2, %v339_v61  ;;  %v3505_v48 = vld [vmem:[%s5703_s9] ss:$0 sm:$0xff] }
  0x14   :  { %3836 = vmatpush3.bf16.msra.mxu1 %v4224_v44  ;;  %v4232_v44 = vld [vmem:[%s5700_s10 + $0x20] sm:$0xff]  }
  0x15   :  { %3826 = vmatpush3.bf16.msra.mxu0 %v4221_v7  ;;  %v75_v15 = vadd.f32 %v74_v13, %v73_v10  ;;  %v82_v16 = vadd.f32 %v81_v14, %v80_v11  ;;  %3837 = vmatprep.subr.bf16.mxu1 %v4427_v0  ;;  %v351_v7 = vsel %vm350_vm8, %v318_v58, %v323_v59 }
  0x16   :  { %3827 = vmatprep.subr.bf16.mxu0 %v4427_v0  ;;  %v353_v9 = vsel %vm352_vm9, %v351_v7, %v328_v63  ;;  %v345_v10 = vsel %vm327_vm6, %v344_v5, %v343_v3  ;;  %v348_v11 = vsel %vm332_vm7, %v312_v49, %v347_v6  ;;  %v356_v13 = vsel %vm350_vm8, %v337_v4, %v341_v8  ;;  %v4685_v3 = vld [vmem:[%s5701_s11 + $0x10] sm:$0xff]   ;;  %v4700_v6 = vld [vmem:[%s5701_s11 + $0x8] sm:$0xff]  }
  0x17   :  { %v76_v17 = vrot.slane %v75_v15, 1  ;;  %v83_v18 = vrot.slane %v82_v16, 1  ;;  %v357_v14 = vsel %vm352_vm9, %v356_v13, %v345_v10  ;;  %v431_v5 = vsel %vm386_vm11, 1.0, %v4427_v0 }
  0x18   :  { %3838 = vmatpush3.bf16.msra.mxu1 %v4226_v47 }
  0x19   :  { %3828 = vmatpush3.bf16.msra.mxu0 %v4222_v12  ;;  %v77_v19 = vadd.f32 %v76_v17, %v75_v15  ;;  %v84_v20 = vadd.f32 %v83_v18, %v82_v16  ;;  %3839 = vmatprep.subr.bf16.mxu1 %v4427_v0  ;;  %v355_v12 = vsel %vm354_vm10, %v353_v9, %v333_v1  ;;  %v4430_v1 = vmov 1.0   ;;  %v4713_v9 = vld [vmem:[%s5701_s11] sm:$0xff]  }
  0x1a   :  { %3845 = vmatprep.subr.bf16.mxu0 %v4427_v0  ;;  %v358_v15 = vsel %vm354_vm10, %v357_v14, %v348_v11  ;;  %v432_v2 = vsel %vm386_vm11, 0.0, %v4430_v1  ;;  %v3518_v11 = vld [vmem:[%s5704_s12] ss:$0 sm:$0xff] }
  0x1b   :  { %v4566_v21 = vmul.f32 0.33333334, %v77_v19  ;;  %v4568_v22 = vmul.f32 0.33333334, %v84_v20  ;;  %v369_v16 = vpack.c.bf16 %v358_v15, %v355_v12  ;;  %v434_v4 = vrot.slane %v432_v2, 6 }
  0x1c   :  { %3840 = vmatpush3.bf16.msra.mxu1 %v4228_v62  ;;  %v4676_v62 = vld [vmem:[%s5701_s11 + $0x18] sm:$0xff]   ;;  %v3523_v12 = vld [vmem:[%s5704_s12 + $0x1] ss:$0 sm:$0xff] }
  0x1d   :  { %v88_v23 = vmax.f32 %v4566_v21, 0.0  ;;  %v89_v24 = vmax.f32 %v4568_v22, 0.0  ;;  %3853 = vmatprep.subr.bf16.mxu1 %v4427_v0  ;;  %v4703_v7 = vsel %vm350_vm8, %v431_v5, %v434_v4 }
  0x1e   :  { %v599_v8 = vmul.f32 0.0, %v4703_v7 }
  0x1f   :  { %v90_v25 = vpack.c.bf16 %v88_v23, %v88_v23  ;;  %v91_v26 = vpack.c.bf16 %v89_v24, %v89_v24  ;;  %v3503_v23 = vld [vmem:[%s5698_s5] ss:$0 sm:$0xff] }
  0x20   :  { %v4718_v10 = vpack.c.bf16 %v599_v8, %v599_v8 }
  0x21   :  { %v109_v27 = vunpack.c.l.b16 %v90_v25  ;;  %v110_v28 = vunpack.c.l.b16 %v91_v26  ;;  %v3504_v26 = vld [vmem:[%s5699_s6] ss:$0 sm:$0xff] }
  0x23   :  { %v112_v29 = vsel %vm111_vm2, %v110_v28, %v109_v27 }
  0x24   :  { %v113_v30 = vpack.c.b16 %v112_v29, %v112_v29 }
  0x26   :  { %3830 = vmatmul.mubr.msk.bf16.vlgmr.msra.gmra.mxu0 %vm138_vm3, %v113_v30 }
  0x27   :  { %3849 = vmatprep.mubr.msk.bf16.mxu0 %vm4428_vm0, %v4427_v0  ;;  %3846 = vmatpush3.bf16.msra.mxu0 %v4225_v45  ;;  %v3527_v45 = vld [vmem:[%s5702_s13] ss:$0 sm:$0xff] }
  0x28   :  { %3847 = vmatprep.subr.bf16.mxu0 %v4427_v0 }
  0x2b   :  { %3848 = vmatpush3.bf16.msra.mxu0 %v4227_v46  ;;  %v3529_v46 = vld [vmem:[%s5702_s13 + $0x1] ss:$0 sm:$0xff] }
  0x2c   :  { %3861 = vmatprep.subr.bf16.mxu0 %v4427_v0  ;;  %v594_v47 = vsel %vm350_vm8, %v3527_v45, %v3529_v46 }
  0x2d   :  { %676 = vrot.lane.b32.xlu1 %v594_v47, %s4429_s0 }
  0x2e   :  { %3850 = vmatmul.mubr.msk.bf16.vlgmr.msra.gmra.mxu0 %vm386_vm11, %v369_v16 }
  0x2f   :  { %3865 = vmatprep.mubr.msk.bf16.mxu0 %vm4428_vm0, %v4427_v0 }
  0x9f   :  { %v4764_v45 = vpop.permute.xlu1 %676 }
  0xe6   :  { %v176_v32 = vpop.f32.mrf.mxu0 }
  0xe7   :  { %v177_v33 = vadd.f32 %v3497_v31, %v176_v32 }
  0xe8   :  { %v3831_v34 = vpop.f32.mrf.mxu0 }
  0xe9   :  { %v183_v35 = vsel %vm182_vm4, %v177_v33, 0.0 }
  0xea   :  { %184 = vadd.xlane.f32.xlu0 %v183_v35  ;;  %v179_v36 = vpop.f32.mrf.mxu0 }
  0xec   :  { %v3832_v37 = vpop.f32.mrf.mxu0 }
 0x173   :  { %v185_v38 = vpop.xlane.xlu0 %184 }
 0x174   :  { %v187_v39 = vmul.f32 0.015625, %v185_v38 }
 0x176   :  { %v4579_v40 = vsub.f32 %v177_v33, %v187_v39  ;;  %v424_v39 = vpop.f32.mrf.mxu0 }
 0x178   :  { %v189_v41 = vmul.f32 %v4579_v40, %v4579_v40 }
 0x17a   :  { %v190_v42 = vsel %vm182_vm4, %v189_v41, 0.0 }
 0x17b   :  { %191 = vadd.xlane.f32.xlu0 %v190_v42 }
 0x204   :  { %v192_v17 = vpop.xlane.xlu0 %191 }
 0x205   :  { %v193_v18 = vmul.f32 0.015625, %v192_v17 }
 0x207   :  { %v194_v19 = vadd.f32 1e-05, %v193_v18 }
 0x209   :  { %4257 = vrsqrt.f32 %v194_v19 }
 0x216   :  { %v4258_v20 = vpop.eup %4257 }
 0x217   :  { %v196_v24 = vmul.f32 %v4258_v20, %v4579_v40  ;;  %v3851_v40 = vpop.f32.mrf.mxu0 }
 0x219   :  { %v204_v25 = vmul.f32 %v3503_v23, %v196_v24  ;;  %v427_v41 = vpop.f32.mrf.mxu0 }
 0x21b   :  { %v206_v27 = vrot.slane %v204_v25, 1  ;;  %v209_v28 = vadd.f32 %v204_v25, %v4566_v21  ;;  %v4229_v21 = vld [vmem:[%s5700_s10 + $0x8] sm:$0xff]   ;;  %v3852_v42 = vpop.f32.mrf.mxu0 }
 0x21d   :  { %v210_v29 = vadd.f32 %v206_v27, %v4568_v22  ;;  %v218_v30 = vadd.f32 %v3504_v26, %v209_v28  ;;  %v4230_v22 = vld [vmem:[%s5700_s10 + $0x28] sm:$0xff]  }
 0x21e   :  { %3862 = vmatpush3.bf16.msra.mxu0 %v4230_v22 }
 0x21f   :  { %v219_v31 = vadd.f32 %v3504_v26, %v210_v29  ;;  %v220_v32 = vpack.c.bf16 %v218_v30, %v218_v30  ;;  %3863 = vmatprep.subr.bf16.mxu0 %v4427_v0 }
 0x221   :  { %v221_v33 = vpack.c.bf16 %v219_v31, %v219_v31  ;;  %v239_v35 = vunpack.c.l.b16 %v220_v32 }
 0x222   :  { %3864 = vmatpush3.bf16.msra.mxu0 %v4232_v44 }
 0x223   :  { %v240_v34 = vunpack.c.l.b16 %v221_v33  ;;  %3881 = vmatprep.subr.bf16.mxu0 %v4427_v0 }
 0x225   :  { %v241_v36 = vrot.slane %v240_v34, 7 }
 0x227   :  { %v242_v37 = vsel %vm111_vm2, %v241_v36, %v239_v35 }
 0x228   :  { %v243_v38 = vpack.c.b16 %v242_v37, %v242_v37 }
 0x22a   :  { %3842 = vmatmul.mubr.msk.bf16.vlgmr.msra.gmra.mxu1 %vm138_vm3, %v243_v38 }
 0x22b   :  { %3857 = vmatprep.mubr.msk.bf16.mxu1 %vm4428_vm0, %v4427_v0  ;;  %3854 = vmatpush3.bf16.msra.mxu1 %v4229_v21 }
 0x22c   :  { %3855 = vmatprep.subr.bf16.mxu1 %v4427_v0 }
 0x22f   :  { %3856 = vmatpush3.bf16.msra.mxu1 %v4231_v43 }
 0x230   :  { %3869 = vmatprep.subr.bf16.mxu1 %v4427_v0 }
 0x2ea   :  { %v305_v49 = vpop.f32.mrf.mxu1 }
 0x2eb   :  { %v306_v50 = vadd.f32 %v3505_v48, %v305_v49 }
 0x2ec   :  { %v3843_v51 = vpop.f32.mrf.mxu1 }
 0x2ed   :  { %v360_v52 = vrot.slane %v306_v50, 6  ;;  %v362_v53 = vrot.slane %v306_v50, 4  ;;  %v364_v55 = vrot.slane %v306_v50, 2 }
 0x2ee   :  { %v308_v54 = vpop.f32.mrf.mxu1 }
 0x2ef   :  { %v366_v56 = vsel %vm350_vm8, %v306_v50, %v360_v52 }
 0x2f0   :  { %v367_v57 = vsel %vm352_vm9, %v366_v56, %v362_v53  ;;  %v3844_v58 = vpop.f32.mrf.mxu1 }
 0x2f1   :  { %v368_v59 = vsel %vm354_vm10, %v367_v57, %v364_v55 }
 0x2f2   :  { %v425_v60 = vadd.f32 %v424_v39, %v368_v59  ;;  %v428_v61 = vadd.f32 %v427_v41, %v368_v59 }
 0x2f4   :  { %v446_v63 = vpack.c.bf16 %v428_v61, %v425_v60 }
 0x2f6   :  { %3858 = vmatmul.mubr.msk.bf16.vlgmr.msra.gmra.mxu1 %vm386_vm11, %v446_v63  ;;  %3866 = vmatmul.mubr.msk.bf16.vlgmr.msra.gmra.mxu0 %vm386_vm11, %v446_v63 }
 0x2f7   :  { %3870 = vmatpush3.bf16.msra.mxu1 %v4676_v62  ;;  %3877 = vmatprep.mubr.msk.bf16.mxu1 %vm4428_vm0, %v4427_v0 }
 0x2f8   :  { %3871 = vmatprep.subr.bf16.mxu1 %v4427_v0  ;;  %3882 = vmatpush3.bf16.msra.mxu0 %v4676_v62 }
 0x2f9   :  { %3883 = vmatprep.subr.bf16.mxu0 %v4427_v0  ;;  %3889 = vmatprep.mubr.msk.bf16.mxu0 %vm4428_vm0, %v4427_v0 }
 0x2fb   :  { %3872 = vmatpush3.bf16.msra.mxu1 %v4685_v3 }
 0x2fc   :  { %3873 = vmatprep.subr.bf16.mxu1 %v4427_v0  ;;  %3884 = vmatpush3.bf16.msra.mxu0 %v4685_v3 }
 0x2fd   :  { %3885 = vmatprep.subr.bf16.mxu0 %v4427_v0 }
 0x2ff   :  { %3874 = vmatpush3.bf16.msra.mxu1 %v4700_v6 }
 0x300   :  { %3875 = vmatprep.subr.bf16.mxu1 %v4427_v0  ;;  %3886 = vmatpush3.bf16.msra.mxu0 %v4700_v6 }
 0x301   :  { %3887 = vmatprep.subr.bf16.mxu0 %v4427_v0 }
 0x303   :  { %3876 = vmatpush3.bf16.msra.mxu1 %v4713_v9 }
 0x304   :  { %3888 = vmatpush3.bf16.msra.mxu0 %v4713_v9  ;;  %3893 = vmatprep.subr.bf16.mxu1 %v4427_v0 }
 0x305   :  { %3905 = vmatprep.subr.bf16.mxu0 %v4427_v0 }
 0x306   :  { %3878 = vmatmul.mubr.msk.bf16.vlgmr.msra.gmra.mxu1 %vm138_vm3, %v4718_v10 }
 0x307   :  { %3894 = vmatpush3.bf16.msra.mxu1 %v4676_v62  ;;  %3901 = vmatprep.mubr.msk.bf16.mxu1 %vm4428_vm0, %v4427_v0 }
 0x308   :  { %3895 = vmatprep.subr.bf16.mxu1 %v4427_v0 }
 0x30b   :  { %3896 = vmatpush3.bf16.msra.mxu1 %v4685_v3 }
 0x30c   :  { %3897 = vmatprep.subr.bf16.mxu1 %v4427_v0 }
 0x30f   :  { %3898 = vmatpush3.bf16.msra.mxu1 %v4700_v6 }
 0x310   :  { %3899 = vmatprep.subr.bf16.mxu1 %v4427_v0 }
 0x313   :  { %3900 = vmatpush3.bf16.msra.mxu1 %v4713_v9 }
 0x314   :  { %3917 = vmatprep.subr.bf16.mxu1 %v4427_v0 }
 0x3b6   :  { %v503_v13 = vpop.f32.mrf.mxu1  ;;  %v564_v14 = vpop.f32.mrf.mxu0 }
 0x3b7   :  { %v504_v15 = vadd.f32 %v3518_v11, %v503_v13  ;;  %v565_v16 = vadd.f32 %v3523_v12, %v564_v14 }
 0x3b8   :  { %v3859_v17 = vpop.f32.mrf.mxu1  ;;  %v3867_v18 = vpop.f32.mrf.mxu0 }
 0x3b9   :  { %v700_v25 = vrot.slane %v504_v15, 2  ;;  %v782_v26 = vrot.slane %v504_v15, 4  ;;  %v862_v29 = vrot.slane %v504_v15, 6  ;;  %v945_v30 = vrot.slane %v565_v16, 4 }
 0x3ba   :  { %v506_v19 = vpop.f32.mrf.mxu1  ;;  %v567_v20 = vpop.f32.mrf.mxu0  ;;  %v1028_v31 = vrot.slane %v565_v16, 2  ;;  %v1190_v32 = vrot.slane %v565_v16, 6 }
 0x3bb   :  { %v507_v23 = vadd.f32 %v3518_v11, %v506_v19  ;;  %v568_v24 = vadd.f32 %v3523_v12, %v567_v20 }
 0x3bc   :  { %v3860_v27 = vpop.f32.mrf.mxu1  ;;  %v3868_v28 = vpop.f32.mrf.mxu0 }
 0x3bd   :  { %v596_v33 = vrot.slane %v568_v24, 4  ;;  %v702_v34 = vrot.slane %v568_v24, 2  ;;  %v4743_v35 = vsel %vm350_vm8, %v782_v26, %v568_v24  ;;  %v864_v36 = vrot.slane %v568_v24, 6 }
 0x3be   :  { %v4746_v37 = vsel %vm350_vm8, %v507_v23, %v945_v30  ;;  %v1026_v38 = vrot.slane %v507_v23, 2  ;;  %v1108_v39 = vrot.slane %v507_v23, 4  ;;  %v1188_v40 = vrot.slane %v507_v23, 6 }
 0x3bf   :  { %v598_v21 = vsel %vm350_vm8, %v504_v15, %v596_v33  ;;  %v4750_v22 = vsel %vm350_vm8, %v700_v25, %v702_v34  ;;  %v4753_v41 = vsel %vm350_vm8, %v862_v29, %v864_v36 }
 0x3c0   :  { %v4756_v42 = vsel %vm350_vm8, %v1026_v38, %v1028_v31  ;;  %v4759_v43 = vsel %vm350_vm8, %v1108_v39, %v565_v16  ;;  %v4762_v44 = vsel %vm350_vm8, %v1188_v40, %v1190_v32 }
 0x3c6   :  { %v662_v46 = vpop.f32.mrf.mxu1 }
 0x3c7   :  { %v679_v47 = vadd.f32 %v4764_v45, %v662_v46  ;;  %v668_v51 = vadd.f32 %v662_v46, %v598_v21 }
 0x3c8   :  { %v3879_v48 = vpop.f32.mrf.mxu1 }
 0x3c9   :  { %681 = vrot.lane.b32.xlu1 %v679_v47, %s4429_s0  ;;  %v3535_v52 = vmul.f32 -1.442695, %v668_v51 }
 0x3ca   :  { %v665_v49 = vpop.f32.mrf.mxu1 }
 0x3cb   :  { %4259 = vpow2.f32 %v3535_v52 }
 0x3cc   :  { %v3880_v50 = vpop.f32.mrf.mxu1 }
 0x3d8   :  { %v4260_v53 = vpop.eup %4259 }
 0x3d9   :  { %v672_v54 = vadd.f32 1.0, %v4260_v53 }
 0x3db   :  { %4261 = vrcp.f32 %v672_v54 }
 0x3e8   :  { %v4262_v55 = vpop.eup %4261 }
 0x3e9   :  { %v691_v61 = vsub.f32 1.0, %v4262_v55  ;;  %v697_v1 = vmul.f32 0.0, %v4262_v55 }
 0x43b   :  { %v682_v56 = vpop.permute.xlu1 %681 }
 0x43c   :  { %v684_v57 = vmul.f32 %v4262_v55, %v682_v56 }
 0x43e   :  { %686 = vrot.lane.b32.xlu0 %v684_v57, %s4429_s0 }
 0x4b0   :  { %v687_v58 = vpop.permute.xlu0 %686 }
 0x4b1   :  { %v689_v59 = vadd.f32 %v687_v58, %v598_v21 }
 0x4b3   :  { %4263 = vtanh.f32 %v689_v59 }
 0x4c0   :  { %v4264_v60 = vpop.eup %4263 }
 0x4c1   :  { %693 = vrot.lane.b32.xlu1 %v4264_v60, %s4431_s21 }
 0x533   :  { %v694_v63 = vpop.permute.xlu1 %693 }
 0x534   :  { %v696_v2 = vmul.f32 %v694_v63, %v691_v61 }
 0x536   :  { %v4770_v4 = vadd.f32 %v697_v1, %v696_v2 }
 0x538   :  { %706 = vrot.lane.b32.xlu1 %v4770_v4, %s4431_s21 }
 0x5aa   :  { %v4774_v5 = vpop.permute.xlu1 %706 }
 0x5ab   :  { %v709_v8 = vsel %vm386_vm11, %v4774_v5, %v4770_v4 }
 0x5ac   :  { %v710_v11 = vmul.f32 %v709_v8, %v4703_v7 }
 0x5ae   :  { %v711_v12 = vpack.c.bf16 %v710_v11, %v710_v11 }
 0x5b0   :  { %3890 = vmatmul.mubr.msk.bf16.vlgmr.msra.gmra.mxu0 %vm138_vm3, %v711_v12 }
 0x5b1   :  { %3906 = vmatpush3.bf16.msra.mxu0 %v4676_v62  ;;  %3913 = vmatprep.mubr.msk.bf16.mxu0 %vm4428_vm0, %v4427_v0 }
 0x5b2   :  { %3907 = vmatprep.subr.bf16.mxu0 %v4427_v0 }
 0x5b5   :  { %3908 = vmatpush3.bf16.msra.mxu0 %v4685_v3 }
 0x5b6   :  { %3909 = vmatprep.subr.bf16.mxu0 %v4427_v0 }
 0x5b9   :  { %3910 = vmatpush3.bf16.msra.mxu0 %v4700_v6 }
 0x5ba   :  { %3911 = vmatprep.subr.bf16.mxu0 %v4427_v0 }
 0x5bd   :  { %3912 = vmatpush3.bf16.msra.mxu0 %v4713_v9 }
 0x5be   :  { %3929 = vmatprep.subr.bf16.mxu0 %v4427_v0 }
 0x670   :  { %v749_v13 = vpop.f32.mrf.mxu0 }
 0x671   :  { %v762_v14 = vadd.f32 %v749_v13, %v4764_v45  ;;  %v755_v18 = vadd.f32 %v749_v13, %v4750_v22 }
 0x672   :  { %v3891_v15 = vpop.f32.mrf.mxu0 }
 0x673   :  { %764 = vrot.lane.b32.xlu1 %v762_v14, %s4429_s0  ;;  %v3537_v19 = vmul.f32 -1.442695, %v755_v18 }
 0x674   :  { %v752_v16 = vpop.f32.mrf.mxu0 }
 0x675   :  { %4265 = vpow2.f32 %v3537_v19 }
 0x676   :  { %v3892_v17 = vpop.f32.mrf.mxu0 }
 0x682   :  { %v4266_v20 = vpop.eup %4265 }
 0x683   :  { %v759_v23 = vadd.f32 1.0, %v4266_v20 }
 0x685   :  { %4267 = vrcp.f32 %v759_v23 }
 0x692   :  { %v4268_v24 = vpop.eup %4267 }
 0x693   :  { %v774_v30 = vsub.f32 1.0, %v4268_v24  ;;  %v780_v32 = vmul.f32 %v4268_v24, %v4770_v4 }
 0x6e5   :  { %v765_v25 = vpop.permute.xlu1 %764 }
 0x6e6   :  { %v767_v26 = vmul.f32 %v4268_v24, %v765_v25 }
 0x6e8   :  { %769 = vrot.lane.b32.xlu1 %v767_v26, %s4429_s0 }
 0x75a   :  { %v770_v27 = vpop.permute.xlu1 %769 }
 0x75b   :  { %v772_v28 = vadd.f32 %v770_v27, %v4750_v22 }
 0x75d   :  { %4269 = vtanh.f32 %v772_v28 }
 0x76a   :  { %v4270_v29 = vpop.eup %4269 }
 0x76b   :  { %776 = vrot.lane.b32.xlu1 %v4270_v29, %s4431_s21 }
 0x7dd   :  { %v777_v31 = vpop.permute.xlu1 %776 }
 0x7de   :  { %v779_v33 = vmul.f32 %v777_v31, %v774_v30 }
 0x7e0   :  { %v4798_v34 = vadd.f32 %v780_v32, %v779_v33 }
 0x7e2   :  { %786 = vrot.lane.b32.xlu1 %v4798_v34, %s4431_s21 }
 0x854   :  { %v4802_v36 = vpop.permute.xlu1 %786 }
 0x855   :  { %v789_v38 = vsel %vm386_vm11, %v4802_v36, %v4798_v34 }
 0x856   :  { %v790_v39 = vmul.f32 %v789_v38, %v4703_v7 }
 0x858   :  { %v791_v40 = vpack.c.bf16 %v790_v39, %v790_v39 }
 0x85a   :  { %3902 = vmatmul.mubr.msk.bf16.vlgmr.msra.gmra.mxu1 %vm138_vm3, %v791_v40 }
 0x85b   :  { %3918 = vmatpush3.bf16.msra.mxu1 %v4676_v62  ;;  %3925 = vmatprep.mubr.msk.bf16.mxu1 %vm4428_vm0, %v4427_v0 }
 0x85c   :  { %3919 = vmatprep.subr.bf16.mxu1 %v4427_v0 }
 0x85f   :  { %3920 = vmatpush3.bf16.msra.mxu1 %v4685_v3 }
 0x860   :  { %3921 = vmatprep.subr.bf16.mxu1 %v4427_v0 }
 0x863   :  { %3922 = vmatpush3.bf16.msra.mxu1 %v4700_v6 }
 0x864   :  { %3923 = vmatprep.subr.bf16.mxu1 %v4427_v0 }
 0x867   :  { %3924 = vmatpush3.bf16.msra.mxu1 %v4713_v9 }
 0x868   :  { %3941 = vmatprep.subr.bf16.mxu1 %v4427_v0 }
 0x91a   :  { %v829_v21 = vpop.f32.mrf.mxu1 }
 0x91b   :  { %v842_v22 = vadd.f32 %v829_v21, %v4764_v45  ;;  %v835_v49 = vadd.f32 %v829_v21, %v4743_v35 }
 0x91c   :  { %v3903_v46 = vpop.f32.mrf.mxu1 }
 0x91d   :  { %844 = vrot.lane.b32.xlu0 %v842_v22, %s4429_s0  ;;  %v3539_v50 = vmul.f32 -1.442695, %v835_v49 }
 0x91e   :  { %v832_v47 = vpop.f32.mrf.mxu1 }
 0x91f   :  { %4271 = vpow2.f32 %v3539_v50 }
 0x920   :  { %v3904_v48 = vpop.f32.mrf.mxu1 }
 0x92c   :  { %v4272_v51 = vpop.eup %4271 }
 0x92d   :  { %v839_v52 = vadd.f32 1.0, %v4272_v51 }
 0x92f   :  { %4273 = vrcp.f32 %v839_v52 }
 0x93c   :  { %v4274_v53 = vpop.eup %4273 }
 0x93d   :  { %v854_v59 = vsub.f32 1.0, %v4274_v53  ;;  %v860_v61 = vmul.f32 %v4274_v53, %v4798_v34 }
 0x98f   :  { %v845_v54 = vpop.permute.xlu0 %844 }
 0x990   :  { %v847_v55 = vmul.f32 %v4274_v53, %v845_v54 }
 0x992   :  { %849 = vrot.lane.b32.xlu1 %v847_v55, %s4429_s0 }
 0xa04   :  { %v850_v56 = vpop.permute.xlu1 %849 }
 0xa05   :  { %v852_v57 = vadd.f32 %v850_v56, %v4743_v35 }
 0xa07   :  { %4275 = vtanh.f32 %v852_v57 }
 0xa14   :  { %v4276_v58 = vpop.eup %4275 }
 0xa15   :  { %856 = vrot.lane.b32.xlu0 %v4276_v58, %s4431_s21 }
 0xa87   :  { %v857_v60 = vpop.permute.xlu0 %856 }
 0xa88   :  { %v859_v63 = vmul.f32 %v857_v60, %v854_v59 }
 0xa8a   :  { %v4826_v1 = vadd.f32 %v860_v61, %v859_v63 }
 0xa8c   :  { %868 = vrot.lane.b32.xlu1 %v4826_v1, %s4431_s21 }
 0xafe   :  { %v4830_v2 = vpop.permute.xlu1 %868 }
 0xaff   :  { %v871_v35 = vsel %vm386_vm11, %v4830_v2, %v4826_v1 }
 0xb00   :  { %v872_v8 = vmul.f32 %v871_v35, %v4703_v7 }
 0xb02   :  { %v873_v11 = vpack.c.bf16 %v872_v8, %v872_v8 }
 0xb04   :  { %3914 = vmatmul.mubr.msk.bf16.vlgmr.msra.gmra.mxu0 %vm138_vm3, %v873_v11 }
 0xb05   :  { %3930 = vmatpush3.bf16.msra.mxu0 %v4676_v62  ;;  %3937 = vmatprep.mubr.msk.bf16.mxu0 %vm4428_vm0, %v4427_v0 }
 0xb06   :  { %3931 = vmatprep.subr.bf16.mxu0 %v4427_v0 }
 0xb09   :  { %3932 = vmatpush3.bf16.msra.mxu0 %v4685_v3 }
 0xb0a   :  { %3933 = vmatprep.subr.bf16.mxu0 %v4427_v0 }
 0xb0d   :  { %3934 = vmatpush3.bf16.msra.mxu0 %v4700_v6 }
 0xb0e   :  { %3935 = vmatprep.subr.bf16.mxu0 %v4427_v0 }
 0xb11   :  { %3936 = vmatpush3.bf16.msra.mxu0 %v4713_v9 }
 0xb12   :  { %3953 = vmatprep.subr.bf16.mxu0 %v4427_v0 }
 0xbc4   :  { %v911_v12 = vpop.f32.mrf.mxu0 }
 0xbc5   :  { %v924_v13 = vadd.f32 %v911_v12, %v4764_v45  ;;  %v917_v17 = vadd.f32 %v911_v12, %v4753_v41 }
 0xbc6   :  { %v3915_v14 = vpop.f32.mrf.mxu0 }
 0xbc7   :  { %926 = vrot.lane.b32.xlu0 %v924_v13, %s4429_s0  ;;  %v3541_v18 = vmul.f32 -1.442695, %v917_v17 }
 0xbc8   :  { %v914_v15 = vpop.f32.mrf.mxu0 }
 0xbc9   :  { %4277 = vpow2.f32 %v3541_v18 }
 0xbca   :  { %v3916_v16 = vpop.f32.mrf.mxu0 }
 0xbd6   :  { %v4278_v19 = vpop.eup %4277 }
 0xbd7   :  { %v921_v20 = vadd.f32 1.0, %v4278_v19 }
 0xbd9   :  { %4279 = vrcp.f32 %v921_v20 }
 0xbe6   :  { %v4280_v23 = vpop.eup %4279 }
 0xbe7   :  { %v936_v29 = vsub.f32 1.0, %v4280_v23  ;;  %v942_v31 = vmul.f32 %v4280_v23, %v4826_v1 }
 0xc39   :  { %v927_v24 = vpop.permute.xlu0 %926 }
 0xc3a   :  { %v929_v25 = vmul.f32 %v4280_v23, %v927_v24 }
 0xc3c   :  { %931 = vrot.lane.b32.xlu1 %v929_v25, %s4429_s0 }
 0xcae   :  { %v932_v26 = vpop.permute.xlu1 %931 }
 0xcaf   :  { %v934_v27 = vadd.f32 %v932_v26, %v4753_v41 }
 0xcb1   :  { %4281 = vtanh.f32 %v934_v27 }
 0xcbe   :  { %v4282_v28 = vpop.eup %4281 }
 0xcbf   :  { %938 = vrot.lane.b32.xlu0 %v4282_v28, %s4431_s21 }
 0xd31   :  { %v939_v30 = vpop.permute.xlu0 %938 }
 0xd32   :  { %v941_v32 = vmul.f32 %v939_v30, %v936_v29 }
 0xd34   :  { %v4854_v33 = vadd.f32 %v942_v31, %v941_v32 }
 0xd36   :  { %949 = vrot.lane.b32.xlu1 %v4854_v33, %s4431_s21 }
 0xda8   :  { %v4858_v38 = vpop.permute.xlu1 %949 }
 0xda9   :  { %v952_v41 = vsel %vm386_vm11, %v4858_v38, %v4854_v33 }
 0xdaa   :  { %v953_v39 = vmul.f32 %v952_v41, %v4703_v7 }
 0xdac   :  { %v954_v40 = vpack.c.bf16 %v953_v39, %v953_v39 }
 0xdae   :  { %3926 = vmatmul.mubr.msk.bf16.vlgmr.msra.gmra.mxu1 %vm138_vm3, %v954_v40 }
 0xdaf   :  { %3942 = vmatpush3.bf16.msra.mxu1 %v4676_v62  ;;  %3949 = vmatprep.mubr.msk.bf16.mxu1 %vm4428_vm0, %v4427_v0 }
 0xdb0   :  { %3943 = vmatprep.subr.bf16.mxu1 %v4427_v0 }
 0xdb3   :  { %3944 = vmatpush3.bf16.msra.mxu1 %v4685_v3 }
 0xdb4   :  { %3945 = vmatprep.subr.bf16.mxu1 %v4427_v0 }
 0xdb7   :  { %3946 = vmatpush3.bf16.msra.mxu1 %v4700_v6 }
 0xdb8   :  { %3947 = vmatprep.subr.bf16.mxu1 %v4427_v0 }
 0xdbb   :  { %3948 = vmatpush3.bf16.msra.mxu1 %v4713_v9 }
 0xdbc   :  { %3965 = vmatprep.subr.bf16.mxu1 %v4427_v0 }
 0xe6e   :  { %v992_v21 = vpop.f32.mrf.mxu1 }
 0xe6f   :  { %v1005_v22 = vadd.f32 %v992_v21, %v4764_v45  ;;  %v998_v49 = vadd.f32 %v992_v21, %v4746_v37 }
 0xe70   :  { %v3927_v46 = vpop.f32.mrf.mxu1 }
 0xe71   :  { %1007 = vrot.lane.b32.xlu0 %v1005_v22, %s4429_s0  ;;  %v3543_v50 = vmul.f32 -1.442695, %v998_v49 }
 0xe72   :  { %v995_v47 = vpop.f32.mrf.mxu1 }
 0xe73   :  { %4283 = vpow2.f32 %v3543_v50 }
 0xe74   :  { %v3928_v48 = vpop.f32.mrf.mxu1 }
 0xe80   :  { %v4284_v51 = vpop.eup %4283 }
 0xe81   :  { %v1002_v52 = vadd.f32 1.0, %v4284_v51 }
 0xe83   :  { %4285 = vrcp.f32 %v1002_v52 }
 0xe90   :  { %v4286_v53 = vpop.eup %4285 }
 0xe91   :  { %v1017_v59 = vsub.f32 1.0, %v4286_v53  ;;  %v1023_v61 = vmul.f32 %v4286_v53, %v4854_v33 }
 0xee3   :  { %v1008_v54 = vpop.permute.xlu0 %1007 }
 0xee4   :  { %v1010_v55 = vmul.f32 %v4286_v53, %v1008_v54 }
 0xee6   :  { %1012 = vrot.lane.b32.xlu1 %v1010_v55, %s4429_s0 }
 0xf58   :  { %v1013_v56 = vpop.permute.xlu1 %1012 }
 0xf59   :  { %v1015_v57 = vadd.f32 %v1013_v56, %v4746_v37 }
 0xf5b   :  { %4287 = vtanh.f32 %v1015_v57 }
 0xf68   :  { %v4288_v58 = vpop.eup %4287 }
 0xf69   :  { %1019 = vrot.lane.b32.xlu0 %v4288_v58, %s4431_s21 }
 0xfdb   :  { %v1020_v60 = vpop.permute.xlu0 %1019 }
 0xfdc   :  { %v1022_v63 = vmul.f32 %v1020_v60, %v1017_v59 }
 0xfde   :  { %v4882_v35 = vadd.f32 %v1023_v61, %v1022_v63 }
 0xfe0   :  { %1032 = vrot.lane.b32.xlu1 %v4882_v35, %s4431_s21 }
0x1052   :  { %v4886_v8 = vpop.permute.xlu1 %1032 }
0x1053   :  { %v1035_v37 = vsel %vm386_vm11, %v4886_v8, %v4882_v35 }
0x1054   :  { %v1036_v11 = vmul.f32 %v1035_v37, %v4703_v7 }
0x1056   :  { %v1037_v12 = vpack.c.bf16 %v1036_v11, %v1036_v11 }
0x1058   :  { %3938 = vmatmul.mubr.msk.bf16.vlgmr.msra.gmra.mxu0 %vm138_vm3, %v1037_v12 }
0x1059   :  { %3954 = vmatpush3.bf16.msra.mxu0 %v4676_v62  ;;  %3961 = vmatprep.mubr.msk.bf16.mxu0 %vm4428_vm0, %v4427_v0 }
0x105a   :  { %3955 = vmatprep.subr.bf16.mxu0 %v4427_v0 }
0x105d   :  { %3956 = vmatpush3.bf16.msra.mxu0 %v4685_v3 }
0x105e   :  { %3957 = vmatprep.subr.bf16.mxu0 %v4427_v0 }
0x1061   :  { %3958 = vmatpush3.bf16.msra.mxu0 %v4700_v6 }
0x1062   :  { %3959 = vmatprep.subr.bf16.mxu0 %v4427_v0 }
0x1065   :  { %3960 = vmatpush3.bf16.msra.mxu0 %v4713_v9 }
0x1066   :  { %3977 = vmatprep.subr.bf16.mxu0 %v4427_v0 }
0x1118   :  { %v1075_v13 = vpop.f32.mrf.mxu0 }
0x1119   :  { %v1088_v62 = vadd.f32 %v1075_v13, %v4764_v45  ;;  %v1081_v3 = vadd.f32 %v1075_v13, %v4756_v42 }
0x111a   :  { %v3939_v14 = vpop.f32.mrf.mxu0 }
0x111b   :  { %1090 = vrot.lane.b32.xlu0 %v1088_v62, %s4429_s0  ;;  %v3545_v17 = vmul.f32 -1.442695, %v1081_v3 }
0x111c   :  { %v1078_v15 = vpop.f32.mrf.mxu0 }
0x111d   :  { %4289 = vpow2.f32 %v3545_v17 }
0x111e   :  { %v3940_v16 = vpop.f32.mrf.mxu0 }
0x112a   :  { %v4290_v18 = vpop.eup %4289 }
0x112b   :  { %v1085_v6 = vadd.f32 1.0, %v4290_v18 }
0x112d   :  { %4291 = vrcp.f32 %v1085_v6 }
0x113a   :  { %v4292_v19 = vpop.eup %4291 }
0x113b   :  { %v1100_v26 = vsub.f32 1.0, %v4292_v19  ;;  %v1106_v28 = vmul.f32 %v4292_v19, %v4882_v35 }
0x118d   :  { %v1091_v20 = vpop.permute.xlu0 %1090 }
0x118e   :  { %v1093_v9 = vmul.f32 %v4292_v19, %v1091_v20 }
0x1190   :  { %1095 = vrot.lane.b32.xlu1 %v1093_v9, %s4429_s0 }
0x1202   :  { %v1096_v23 = vpop.permute.xlu1 %1095 }
0x1203   :  { %v1098_v24 = vadd.f32 %v1096_v23, %v4756_v42  ;;  %v4237_v23 = vld [vmem:[%s5700_s10 + $0x58] sm:$0xff]  }
0x1205   :  { %4293 = vtanh.f32 %v1098_v24  ;;  %v4238_v24 = vld [vmem:[%s5700_s10 + $0x78] sm:$0xff]  }
0x1212   :  { %v4294_v25 = vpop.eup %4293 }
0x1213   :  { %1102 = vrot.lane.b32.xlu0 %v4294_v25, %s4431_s21  ;;  %v4239_v25 = vld [vmem:[%s5700_s10 + $0x50] sm:$0xff]  }
0x1285   :  { %v1103_v27 = vpop.permute.xlu0 %1102 }
0x1286   :  { %v1105_v29 = vmul.f32 %v1103_v27, %v1100_v26  ;;  %v4240_v26 = vld [vmem:[%s5700_s10 + $0x70] sm:$0xff]   ;;  %v4241_v27 = vld [vmem:[%s5700_s10 + $0x48] sm:$0xff]  }
0x1288   :  { %v4910_v30 = vadd.f32 %v1106_v28, %v1105_v29  ;;  %v4242_v28 = vld [vmem:[%s5700_s10 + $0x68] sm:$0xff]   ;;  %v4243_v29 = vld [vmem:[%s5700_s10 + $0x40] sm:$0xff]  }
0x128a   :  { %1112 = vrot.lane.b32.xlu1 %v4910_v30, %s4431_s21 }
0x12fc   :  { %v4914_v31 = vpop.permute.xlu1 %1112 }
0x12fd   :  { %v1115_v42 = vsel %vm386_vm11, %v4914_v31, %v4910_v30 }
0x12fe   :  { %v1116_v32 = vmul.f32 %v1115_v42, %v4703_v7  ;;  %v4244_v42 = vld [vmem:[%s5700_s10 + $0x60] sm:$0xff]  }
0x1300   :  { %v1117_v41 = vpack.c.bf16 %v1116_v32, %v1116_v32 }
0x1302   :  { %3950 = vmatmul.mubr.msk.bf16.vlgmr.msra.gmra.mxu1 %vm138_vm3, %v1117_v41 }
0x1303   :  { %3973 = vmatprep.mubr.msk.bf16.mxu1 %vm4428_vm0, %v4427_v0  ;;  %3966 = vmatpush3.bf16.msra.mxu1 %v4237_v23 }
0x1304   :  { %3967 = vmatprep.subr.bf16.mxu1 %v4427_v0 }
0x1307   :  { %3968 = vmatpush3.bf16.msra.mxu1 %v4239_v25 }
0x1308   :  { %3969 = vmatprep.subr.bf16.mxu1 %v4427_v0 }
0x130b   :  { %3970 = vmatpush3.bf16.msra.mxu1 %v4241_v27 }
0x130c   :  { %3971 = vmatprep.subr.bf16.mxu1 %v4427_v0 }
0x130f   :  { %3972 = vmatpush3.bf16.msra.mxu1 %v4243_v29 }
0x1310   :  { %3989 = vmatprep.subr.bf16.mxu1 %v4427_v0 }
0x13c2   :  { %v1155_v39 = vpop.f32.mrf.mxu1 }
0x13c3   :  { %v1168_v40 = vadd.f32 %v1155_v39, %v4764_v45  ;;  %v1161_v47 = vadd.f32 %v1155_v39, %v4759_v43 }
0x13c4   :  { %v3951_v21 = vpop.f32.mrf.mxu1 }
0x13c5   :  { %1170 = vrot.lane.b32.xlu0 %v1168_v40, %s4429_s0  ;;  %v3547_v48 = vmul.f32 -1.442695, %v1161_v47  ;;  %v3589_v47 = vld [vmem:[%s5702_s13 + $0x2] ss:$0 sm:$0xff] }
0x13c6   :  { %v1158_v22 = vpop.f32.mrf.mxu1 }
0x13c7   :  { %4295 = vpow2.f32 %v3547_v48  ;;  %v3591_v48 = vld [vmem:[%s5702_s13 + $0x3] ss:$0 sm:$0xff] }
0x13c8   :  { %v3952_v46 = vpop.f32.mrf.mxu1 }
0x13d4   :  { %v4296_v49 = vpop.eup %4295 }
0x13d5   :  { %v1165_v50 = vadd.f32 1.0, %v4296_v49  ;;  %v1517_v49 = vsel %vm350_vm8, %v3589_v47, %v3591_v48 }
0x13d7   :  { %4297 = vrcp.f32 %v1165_v50 }
0x13e4   :  { %v4298_v51 = vpop.eup %4297 }
0x13e5   :  { %v1180_v57 = vsub.f32 1.0, %v4298_v51  ;;  %v1186_v59 = vmul.f32 %v4298_v51, %v4910_v30 }
0x1437   :  { %v1171_v52 = vpop.permute.xlu0 %1170 }
0x1438   :  { %v1173_v53 = vmul.f32 %v4298_v51, %v1171_v52  ;;  %v1279_v51 = vrot.slane %v4910_v30, 2  ;;  %v1288_v52 = vrot.slane %v4826_v1, 2 }
0x143a   :  { %1175 = vrot.lane.b32.xlu1 %v1173_v53, %s4429_s0 }
0x14ac   :  { %v1176_v54 = vpop.permute.xlu1 %1175 }
0x14ad   :  { %v1178_v55 = vadd.f32 %v1176_v54, %v4759_v43  ;;  %v1291_v54 = vrot.slane %v4798_v34, 2 }
0x14af   :  { %4299 = vtanh.f32 %v1178_v55  ;;  %v1282_v55 = vrot.slane %v4882_v35, 2  ;;  %v1285_v35 = vrot.slane %v4854_v33, 2 }
0x14bc   :  { %v4300_v56 = vpop.eup %4299 }
0x14bd   :  { %1182 = vrot.lane.b32.xlu0 %v4300_v56, %s4431_s21  ;;  %v1290_v56 = vsel %vm386_vm11, %v4914_v31, %v1288_v52  ;;  %v1284_v31 = vsel %vm386_vm11, %v4858_v38, %v1282_v55  ;;  %v5024_v38 = vld [vmem:[%s5701_s11 + $0x38] sm:$0xff]  }
0x14be   :  { %v1310_v30 = vrot.slane %v1290_v56, 6 }
0x152f   :  { %v1183_v58 = vpop.permute.xlu0 %1182 }
0x1530   :  { %v1185_v60 = vmul.f32 %v1183_v58, %v1180_v57  ;;  %v1281_v58 = vsel %vm386_vm11, %v4830_v2, %v1279_v51  ;;  %v1287_v2 = vsel %vm386_vm11, %v4886_v8, %v1285_v35 }
0x1532   :  { %v4930_v61 = vadd.f32 %v1186_v59, %v1185_v60 }
0x1534   :  { %1194 = vrot.lane.b32.xlu1 %v4930_v61, %s4431_s21  ;;  %v1276_v50 = vrot.slane %v4930_v61, 2 }
0x1536   :  { %v1278_v53 = vsel %vm386_vm11, %v4802_v36, %v1276_v50  ;;  %v1297_v36 = vrot.slane %v4770_v4, 2  ;;  %v1307_v4 = vrot.slane %v1284_v31, 2 }
0x1537   :  { %v1301_v59 = vrot.slane %v1278_v53, 6 }
0x15a6   :  { %v4934_v63 = vpop.permute.xlu1 %1194 }
0x15a7   :  { %v1197_v43 = vsel %vm386_vm11, %v4934_v63, %v4930_v61  ;;  %v1293_v1 = vsel %vm386_vm11, %v4934_v63, %v1291_v54 }
0x15a8   :  { %v1198_v37 = vmul.f32 %v1197_v43, %v4703_v7  ;;  %v1313_v60 = vrot.slane %v1293_v1, 4 }
0x15aa   :  { %v1199_v11 = vpack.c.bf16 %v1198_v37, %v1198_v37  ;;  %v1321_v37 = vsel %vm350_vm8, %v1287_v2, %v1310_v30 }
0x15ac   :  { %3962 = vmatmul.mubr.msk.bf16.vlgmr.msra.gmra.mxu0 %vm138_vm3, %v1199_v11 }
0x15ad   :  { %3985 = vmatprep.mubr.msk.bf16.mxu0 %vm4428_vm0, %v4427_v0  ;;  %3978 = vmatpush3.bf16.msra.mxu0 %v4238_v24 }
0x15ae   :  { %3979 = vmatprep.subr.bf16.mxu0 %v4427_v0 }
0x15b1   :  { %3980 = vmatpush3.bf16.msra.mxu0 %v4240_v26 }
0x15b2   :  { %3981 = vmatprep.subr.bf16.mxu0 %v4427_v0 }
0x15b5   :  { %3982 = vmatpush3.bf16.msra.mxu0 %v4242_v28 }
0x15b6   :  { %3983 = vmatprep.subr.bf16.mxu0 %v4427_v0 }
0x15b9   :  { %3984 = vmatpush3.bf16.msra.mxu0 %v4244_v42 }
0x15ba   :  { %4001 = vmatprep.subr.bf16.mxu0 %v4427_v0 }
0x166c   :  { %v1237_v12 = vpop.f32.mrf.mxu0 }
0x166d   :  { %v1250_v13 = vadd.f32 %v1237_v12, %v4764_v45  ;;  %v1243_v16 = vadd.f32 %v1237_v12, %v4762_v44  ;;  %v1322_v12 = vsel %vm352_vm9, %v1321_v37, %v1313_v60 }
0x166e   :  { %v3963_v62 = vpop.f32.mrf.mxu0 }
0x166f   :  { %1252 = vrot.lane.b32.xlu0 %v1250_v13, %s4429_s0  ;;  %v3549_v3 = vmul.f32 -1.442695, %v1243_v16  ;;  %v5032_v62 = vld [vmem:[%s5701_s11 + $0x30] sm:$0xff]   ;;  %v3574_v16 = vld [vmem:[%s5704_s12 + $0x3] ss:$0 sm:$0xff] }
0x1670   :  { %v1240_v14 = vpop.f32.mrf.mxu0 }
0x1671   :  { %4301 = vpow2.f32 %v3549_v3  ;;  %v5045_v14 = vld [vmem:[%s5701_s11 + $0x28] sm:$0xff]  }
0x1672   :  { %v3964_v15 = vpop.f32.mrf.mxu0 }
0x1673   :  { %v5054_v15 = vld [vmem:[%s5701_s11 + $0x20] sm:$0xff]  }
0x167e   :  { %v4302_v17 = vpop.eup %4301 }
0x167f   :  { %v1247_v18 = vadd.f32 1.0, %v4302_v17 }
0x1681   :  { %4303 = vrcp.f32 %v1247_v18 }
0x168e   :  { %v4304_v6 = vpop.eup %4303 }
0x168f   :  { %v1262_v32 = vsub.f32 1.0, %v4304_v6  ;;  %v1268_v39 = vmul.f32 %v4304_v6, %v4930_v61  ;;  %v1304_v61 = vrot.slane %v1281_v58, 4 }
0x16e1   :  { %v1253_v19 = vpop.permute.xlu0 %1252 }
0x16e2   :  { %v1255_v20 = vmul.f32 %v4304_v6, %v1253_v19 }
0x16e4   :  { %1257 = vrot.lane.b32.xlu1 %v1255_v20, %s4429_s0 }
0x1756   :  { %v1258_v9 = vpop.permute.xlu1 %1257 }
0x1757   :  { %v1260_v45 = vadd.f32 %v1258_v9, %v4762_v44 }
0x1759   :  { %4305 = vtanh.f32 %v1260_v45 }
0x1766   :  { %v4306_v44 = vpop.eup %4305 }
0x1767   :  { %1264 = vrot.lane.b32.xlu0 %v4306_v44, %s4431_s21 }
0x176b   :  { %1594 = vrot.lane.b32.xlu0 %v1517_v49, %s4429_s0 }
0x17d9   :  { %v1265_v41 = vpop.permute.xlu0 %1264 }
0x17da   :  { %v1267_v40 = vmul.f32 %v1265_v41, %v1262_v32 }
0x17dc   :  { %v1269_v21 = vadd.f32 %v1268_v39, %v1267_v40 }
0x17dd   :  { %v5103_v56 = vpop.permute.xlu0 %1594 }
0x17de   :  { %v1271_v22 = vrot.slane %v1269_v21, 2  ;;  %1294 = vrot.lane.b32.xlu1 %v1269_v21, %s4431_s21 }
0x17e0   :  { %v4983_v46 = vadd.f32 %v1271_v22, %v1269_v21  ;;  %v1275_v57 = vsel %vm386_vm11, %v4774_v5, %v1271_v22 }
0x17e1   :  { %v1318_v34 = vsel %vm350_vm8, %v1275_v57, %v1301_v59 }
0x17e2   :  { %v1319_v63 = vsel %vm352_vm9, %v1318_v34, %v1304_v61 }
0x17e3   :  { %v1320_v33 = vsel %vm354_vm10, %v1319_v63, %v1307_v4 }
0x1850   :  { %v1295_v5 = vpop.permute.xlu1 %1294 }
0x1851   :  { %v1299_v43 = vsel %vm386_vm11, %v1295_v5, %v1297_v36 }
0x1852   :  { %v1316_v11 = vrot.slane %v1299_v43, 2 }
0x1854   :  { %v1323_v13 = vsel %vm354_vm10, %v1322_v12, %v1316_v11 }
0x1855   :  { %v1342_v8 = vpack.c.bf16 %v1323_v13, %v1320_v33 }
0x1857   :  { %3974 = vmatmul.mubr.msk.bf16.vlgmr.msra.gmra.mxu1 %vm138_vm3, %v1342_v8  ;;  %3986 = vmatmul.mubr.msk.bf16.vlgmr.msra.gmra.mxu0 %vm138_vm3, %v1342_v8 }
0x1858   :  { %3990 = vmatpush3.bf16.msra.mxu1 %v5024_v38  ;;  %3997 = vmatprep.mubr.msk.bf16.mxu1 %vm4428_vm0, %v4427_v0 }
0x1859   :  { %3991 = vmatprep.subr.bf16.mxu1 %v4427_v0  ;;  %4002 = vmatpush3.bf16.msra.mxu0 %v5024_v38 }
0x185a   :  { %4003 = vmatprep.subr.bf16.mxu0 %v4427_v0  ;;  %4009 = vmatprep.mubr.msk.bf16.mxu0 %vm4428_vm0, %v4427_v0 }
0x185c   :  { %3992 = vmatpush3.bf16.msra.mxu1 %v5032_v62 }
0x185d   :  { %3993 = vmatprep.subr.bf16.mxu1 %v4427_v0  ;;  %4004 = vmatpush3.bf16.msra.mxu0 %v5032_v62 }
0x185e   :  { %4005 = vmatprep.subr.bf16.mxu0 %v4427_v0 }
0x1860   :  { %3994 = vmatpush3.bf16.msra.mxu1 %v5045_v14 }
0x1861   :  { %3995 = vmatprep.subr.bf16.mxu1 %v4427_v0  ;;  %4006 = vmatpush3.bf16.msra.mxu0 %v5045_v14 }
0x1862   :  { %4007 = vmatprep.subr.bf16.mxu0 %v4427_v0 }
0x1864   :  { %3996 = vmatpush3.bf16.msra.mxu1 %v5054_v15 }
0x1865   :  { %4008 = vmatpush3.bf16.msra.mxu0 %v5054_v15  ;;  %4013 = vmatprep.subr.bf16.mxu1 %v4427_v0 }
0x1866   :  { %4025 = vmatprep.subr.bf16.mxu0 %v4427_v0 }
0x1867   :  { %3998 = vmatmul.mubr.msk.bf16.vlgmr.msra.gmra.mxu1 %vm138_vm3, %v4718_v10  ;;  %v3567_v10 = vld [vmem:[%s5704_s12 + $0x2] ss:$0 sm:$0xff] }
0x1868   :  { %4014 = vmatpush3.bf16.msra.mxu1 %v5024_v38  ;;  %4021 = vmatprep.mubr.msk.bf16.mxu1 %vm4428_vm0, %v4427_v0 }
0x1869   :  { %4015 = vmatprep.subr.bf16.mxu1 %v4427_v0 }
0x186c   :  { %4016 = vmatpush3.bf16.msra.mxu1 %v5032_v62 }
0x186d   :  { %4017 = vmatprep.subr.bf16.mxu1 %v4427_v0 }
0x1870   :  { %4018 = vmatpush3.bf16.msra.mxu1 %v5045_v14 }
0x1871   :  { %4019 = vmatprep.subr.bf16.mxu1 %v4427_v0 }
0x1874   :  { %4020 = vmatpush3.bf16.msra.mxu1 %v5054_v15 }
0x1875   :  { %4037 = vmatprep.subr.bf16.mxu1 %v4427_v0 }
0x1917   :  { %v1412_v3 = vpop.f32.mrf.mxu1  ;;  %v1485_v17 = vpop.f32.mrf.mxu0 }
0x1918   :  { %v1413_v18 = vadd.f32 %v3567_v10, %v1412_v3  ;;  %v1486_v6 = vadd.f32 %v3574_v16, %v1485_v17 }
0x1919   :  { %v3975_v19 = vpop.f32.mrf.mxu1  ;;  %v3987_v20 = vpop.f32.mrf.mxu0 }
0x191a   :  { %v1618_v25 = vrot.slane %v1413_v18, 2  ;;  %v1700_v26 = vrot.slane %v1413_v18, 4  ;;  %v1780_v28 = vrot.slane %v1413_v18, 6  ;;  %v1863_v29 = vrot.slane %v1486_v6, 4 }
0x191b   :  { %v1415_v9 = vpop.f32.mrf.mxu1  ;;  %v1488_v45 = vpop.f32.mrf.mxu0  ;;  %v1946_v42 = vrot.slane %v1486_v6, 2  ;;  %v2108_v32 = vrot.slane %v1486_v6, 6 }
0x191c   :  { %v1416_v23 = vadd.f32 %v3567_v10, %v1415_v9  ;;  %v1489_v24 = vadd.f32 %v3574_v16, %v1488_v45 }
0x191d   :  { %v3976_v44 = vpop.f32.mrf.mxu1  ;;  %v3988_v27 = vpop.f32.mrf.mxu0 }
0x191e   :  { %v1519_v41 = vrot.slane %v1489_v24, 4  ;;  %v1620_v39 = vrot.slane %v1489_v24, 2  ;;  %v5082_v40 = vsel %vm350_vm8, %v1700_v26, %v1489_v24  ;;  %v1782_v21 = vrot.slane %v1489_v24, 6 }
0x191f   :  { %v5085_v22 = vsel %vm350_vm8, %v1416_v23, %v1863_v29  ;;  %v1944_v47 = vrot.slane %v1416_v23, 2  ;;  %v2026_v48 = vrot.slane %v1416_v23, 4  ;;  %v2106_v49 = vrot.slane %v1416_v23, 6 }
0x1920   :  { %v1521_v50 = vsel %vm350_vm8, %v1413_v18, %v1519_v41  ;;  %v5089_v51 = vsel %vm350_vm8, %v1618_v25, %v1620_v39  ;;  %v5092_v52 = vsel %vm350_vm8, %v1780_v28, %v1782_v21 }
0x1921   :  { %v5095_v53 = vsel %vm350_vm8, %v1944_v47, %v1946_v42  ;;  %v5098_v54 = vsel %vm350_vm8, %v2026_v48, %v1486_v6  ;;  %v5101_v55 = vsel %vm350_vm8, %v2106_v49, %v2108_v32 }
0x1927   :  { %v1580_v57 = vpop.f32.mrf.mxu1 }
0x1928   :  { %v1597_v58 = vadd.f32 %v5103_v56, %v1580_v57  ;;  %v1586_v36 = vadd.f32 %v1580_v57, %v1521_v50 }
0x1929   :  { %v3999_v59 = vpop.f32.mrf.mxu1 }
0x192a   :  { %1599 = vrot.lane.b32.xlu1 %v1597_v58, %s4429_s0  ;;  %v3597_v34 = vmul.f32 -1.442695, %v1586_v36 }
0x192b   :  { %v1583_v1 = vpop.f32.mrf.mxu1 }
0x192c   :  { %4307 = vpow2.f32 %v3597_v34 }
0x192d   :  { %v4000_v30 = vpop.f32.mrf.mxu1 }
0x1939   :  { %v4308_v35 = vpop.eup %4307 }
0x193a   :  { %v1590_v60 = vadd.f32 1.0, %v4308_v35 }
0x193c   :  { %4309 = vrcp.f32 %v1590_v60 }
0x1949   :  { %v4310_v31 = vpop.eup %4309 }
0x194a   :  { %v1609_v37 = vsub.f32 1.0, %v4310_v31  ;;  %v1615_v11 = vmul.f32 0.0, %v4310_v31 }
0x199c   :  { %v1600_v61 = vpop.permute.xlu1 %1599 }
0x199d   :  { %v1602_v5 = vmul.f32 %v4310_v31, %v1600_v61 }
0x199f   :  { %1604 = vrot.lane.b32.xlu0 %v1602_v5, %s4429_s0 }
0x1a11   :  { %v1605_v2 = vpop.permute.xlu0 %1604 }
0x1a12   :  { %v1607_v43 = vadd.f32 %v1605_v2, %v1521_v50 }
0x1a14   :  { %4311 = vtanh.f32 %v1607_v43 }
0x1a21   :  { %v4312_v63 = vpop.eup %4311 }
0x1a22   :  { %1611 = vrot.lane.b32.xlu1 %v4312_v63, %s4431_s21 }
0x1a94   :  { %v1612_v4 = vpop.permute.xlu1 %1611 }
0x1a95   :  { %v1614_v12 = vmul.f32 %v1612_v4, %v1609_v37 }
0x1a97   :  { %v1616_v33 = vadd.f32 %v1615_v11, %v1614_v12 }
0x1a99   :  { %1624 = vrot.lane.b32.xlu0 %v1616_v33, %s4431_s21 }
0x1b0b   :  { %v1625_v13 = vpop.permute.xlu0 %1624 }
0x1b0c   :  { %v1627_v8 = vsel %vm386_vm11, %v1625_v13, %v1616_v33 }
0x1b0d   :  { %v1628_v10 = vmul.f32 %v1627_v8, %v4703_v7 }
0x1b0f   :  { %v1629_v16 = vpack.c.bf16 %v1628_v10, %v1628_v10 }
0x1b11   :  { %4010 = vmatmul.mubr.msk.bf16.vlgmr.msra.gmra.mxu0 %vm138_vm3, %v1629_v16 }
0x1b12   :  { %4026 = vmatpush3.bf16.msra.mxu0 %v5024_v38  ;;  %4033 = vmatprep.mubr.msk.bf16.mxu0 %vm4428_vm0, %v4427_v0 }
0x1b13   :  { %4027 = vmatprep.subr.bf16.mxu0 %v4427_v0 }
0x1b16   :  { %4028 = vmatpush3.bf16.msra.mxu0 %v5032_v62 }
0x1b17   :  { %4029 = vmatprep.subr.bf16.mxu0 %v4427_v0 }
0x1b1a   :  { %4030 = vmatpush3.bf16.msra.mxu0 %v5045_v14 }
0x1b1b   :  { %4031 = vmatprep.subr.bf16.mxu0 %v4427_v0 }
0x1b1e   :  { %4032 = vmatpush3.bf16.msra.mxu0 %v5054_v15 }
0x1b1f   :  { %4049 = vmatprep.subr.bf16.mxu0 %v4427_v0 }
0x1bd1   :  { %v1667_v3 = vpop.f32.mrf.mxu0 }
0x1bd2   :  { %v1680_v17 = vadd.f32 %v1667_v3, %v5103_v56  ;;  %v1673_v20 = vadd.f32 %v1667_v3, %v5089_v51 }
0x1bd3   :  { %v4011_v18 = vpop.f32.mrf.mxu0 }
0x1bd4   :  { %1682 = vrot.lane.b32.xlu1 %v1680_v17, %s4429_s0  ;;  %v3599_v9 = vmul.f32 -1.442695, %v1673_v20 }
0x1bd5   :  { %v1670_v6 = vpop.f32.mrf.mxu0 }
0x1bd6   :  { %4313 = vpow2.f32 %v3599_v9 }
0x1bd7   :  { %v4012_v19 = vpop.f32.mrf.mxu0 }
0x1be3   :  { %v4314_v45 = vpop.eup %4313 }
0x1be4   :  { %v1677_v23 = vadd.f32 1.0, %v4314_v45 }
0x1be6   :  { %4315 = vrcp.f32 %v1677_v23 }
0x1bf3   :  { %v4316_v24 = vpop.eup %4315 }
0x1bf4   :  { %v1692_v29 = vsub.f32 1.0, %v4316_v24  ;;  %v1698_v32 = vmul.f32 %v4316_v24, %v1616_v33 }
0x1c46   :  { %v1683_v25 = vpop.permute.xlu1 %1682 }
0x1c47   :  { %v1685_v26 = vmul.f32 %v4316_v24, %v1683_v25 }
0x1c49   :  { %1687 = vrot.lane.b32.xlu0 %v1685_v26, %s4429_s0 }
0x1cbb   :  { %v1688_v44 = vpop.permute.xlu0 %1687 }
0x1cbc   :  { %v1690_v27 = vadd.f32 %v1688_v44, %v5089_v51 }
0x1cbe   :  { %4317 = vtanh.f32 %v1690_v27 }
0x1ccb   :  { %v4318_v28 = vpop.eup %4317 }
0x1ccc   :  { %1694 = vrot.lane.b32.xlu1 %v4318_v28, %s4431_s21 }
0x1d3e   :  { %v1695_v42 = vpop.permute.xlu1 %1694 }
0x1d3f   :  { %v1697_v41 = vmul.f32 %v1695_v42, %v1692_v29 }
0x1d41   :  { %v1699_v39 = vadd.f32 %v1698_v32, %v1697_v41 }
0x1d43   :  { %1704 = vrot.lane.b32.xlu0 %v1699_v39, %s4431_s21 }
0x1db5   :  { %v1705_v21 = vpop.permute.xlu0 %1704 }
0x1db6   :  { %v1707_v47 = vsel %vm386_vm11, %v1705_v21, %v1699_v39 }
0x1db7   :  { %v1708_v48 = vmul.f32 %v1707_v47, %v4703_v7 }
0x1db9   :  { %v1709_v49 = vpack.c.bf16 %v1708_v48, %v1708_v48 }
0x1dbb   :  { %4022 = vmatmul.mubr.msk.bf16.vlgmr.msra.gmra.mxu1 %vm138_vm3, %v1709_v49 }
0x1dbc   :  { %4038 = vmatpush3.bf16.msra.mxu1 %v5024_v38  ;;  %4045 = vmatprep.mubr.msk.bf16.mxu1 %vm4428_vm0, %v4427_v0 }
0x1dbd   :  { %4039 = vmatprep.subr.bf16.mxu1 %v4427_v0 }
0x1dc0   :  { %4040 = vmatpush3.bf16.msra.mxu1 %v5032_v62 }
0x1dc1   :  { %4041 = vmatprep.subr.bf16.mxu1 %v4427_v0 }
0x1dc4   :  { %4042 = vmatpush3.bf16.msra.mxu1 %v5045_v14 }
0x1dc5   :  { %4043 = vmatprep.subr.bf16.mxu1 %v4427_v0 }
0x1dc8   :  { %4044 = vmatpush3.bf16.msra.mxu1 %v5054_v15 }
0x1dc9   :  { %4061 = vmatprep.subr.bf16.mxu1 %v4427_v0 }
0x1e7b   :  { %v1747_v50 = vpop.f32.mrf.mxu1 }
0x1e7c   :  { %v1760_v51 = vadd.f32 %v1747_v50, %v5103_v56  ;;  %v1753_v1 = vadd.f32 %v1747_v50, %v5082_v40 }
0x1e7d   :  { %v4023_v57 = vpop.f32.mrf.mxu1 }
0x1e7e   :  { %1762 = vrot.lane.b32.xlu1 %v1760_v51, %s4429_s0  ;;  %v3601_v30 = vmul.f32 -1.442695, %v1753_v1 }
0x1e7f   :  { %v1750_v58 = vpop.f32.mrf.mxu1 }
0x1e80   :  { %4319 = vpow2.f32 %v3601_v30 }
0x1e81   :  { %v4024_v59 = vpop.f32.mrf.mxu1 }
0x1e8d   :  { %v4320_v36 = vpop.eup %4319 }
0x1e8e   :  { %v1757_v34 = vadd.f32 1.0, %v4320_v36 }
0x1e90   :  { %4321 = vrcp.f32 %v1757_v34 }
0x1e9d   :  { %v4322_v35 = vpop.eup %4321 }
0x1e9e   :  { %v1772_v43 = vsub.f32 1.0, %v4322_v35  ;;  %v1778_v37 = vmul.f32 %v4322_v35, %v1699_v39 }
0x1ef0   :  { %v1763_v60 = vpop.permute.xlu1 %1762 }
0x1ef1   :  { %v1765_v31 = vmul.f32 %v4322_v35, %v1763_v60 }
0x1ef3   :  { %1767 = vrot.lane.b32.xlu0 %v1765_v31, %s4429_s0 }
0x1f65   :  { %v1768_v61 = vpop.permute.xlu0 %1767 }
0x1f66   :  { %v1770_v5 = vadd.f32 %v1768_v61, %v5082_v40 }
0x1f68   :  { %4323 = vtanh.f32 %v1770_v5 }
0x1f75   :  { %v4324_v2 = vpop.eup %4323 }
0x1f76   :  { %1774 = vrot.lane.b32.xlu1 %v4324_v2, %s4431_s21 }
0x1fe8   :  { %v1775_v63 = vpop.permute.xlu1 %1774 }
0x1fe9   :  { %v1777_v4 = vmul.f32 %v1775_v63, %v1772_v43 }
0x1feb   :  { %v1779_v11 = vadd.f32 %v1778_v37, %v1777_v4 }
0x1fed   :  { %1786 = vrot.lane.b32.xlu0 %v1779_v11, %s4431_s21 }
0x205f   :  { %v1787_v12 = vpop.permute.xlu0 %1786 }
0x2060   :  { %v1789_v33 = vsel %vm386_vm11, %v1787_v12, %v1779_v11 }
0x2061   :  { %v1790_v13 = vmul.f32 %v1789_v33, %v4703_v7 }
0x2063   :  { %v1791_v8 = vpack.c.bf16 %v1790_v13, %v1790_v13 }
0x2065   :  { %4034 = vmatmul.mubr.msk.bf16.vlgmr.msra.gmra.mxu0 %vm138_vm3, %v1791_v8 }
0x2066   :  { %4050 = vmatpush3.bf16.msra.mxu0 %v5024_v38  ;;  %4057 = vmatprep.mubr.msk.bf16.mxu0 %vm4428_vm0, %v4427_v0 }
0x2067   :  { %4051 = vmatprep.subr.bf16.mxu0 %v4427_v0 }
0x206a   :  { %4052 = vmatpush3.bf16.msra.mxu0 %v5032_v62 }
0x206b   :  { %4053 = vmatprep.subr.bf16.mxu0 %v4427_v0 }
0x206e   :  { %4054 = vmatpush3.bf16.msra.mxu0 %v5045_v14 }
0x206f   :  { %4055 = vmatprep.subr.bf16.mxu0 %v4427_v0 }
0x2072   :  { %4056 = vmatpush3.bf16.msra.mxu0 %v5054_v15 }
0x2073   :  { %4073 = vmatprep.subr.bf16.mxu0 %v4427_v0 }
0x2125   :  { %v1829_v40 = vpop.f32.mrf.mxu0 }
0x2126   :  { %v1842_v10 = vadd.f32 %v1829_v40, %v5103_v56  ;;  %v1835_v18 = vadd.f32 %v1829_v40, %v5092_v52 }
0x2127   :  { %v4035_v16 = vpop.f32.mrf.mxu0 }
0x2128   :  { %1844 = vrot.lane.b32.xlu1 %v1842_v10, %s4429_s0  ;;  %v3603_v6 = vmul.f32 -1.442695, %v1835_v18 }
0x2129   :  { %v1832_v3 = vpop.f32.mrf.mxu0 }
0x212a   :  { %4325 = vpow2.f32 %v3603_v6 }
0x212b   :  { %v4036_v17 = vpop.f32.mrf.mxu0 }
0x2137   :  { %v4326_v19 = vpop.eup %4325 }
0x2138   :  { %v1839_v20 = vadd.f32 1.0, %v4326_v19 }
0x213a   :  { %4327 = vrcp.f32 %v1839_v20 }
0x2147   :  { %v4328_v9 = vpop.eup %4327 }
0x2148   :  { %v1854_v44 = vsub.f32 1.0, %v4328_v9  ;;  %v1860_v28 = vmul.f32 %v4328_v9, %v1779_v11 }
0x219a   :  { %v1845_v45 = vpop.permute.xlu1 %1844 }
0x219b   :  { %v1847_v23 = vmul.f32 %v4328_v9, %v1845_v45 }
0x219d   :  { %1849 = vrot.lane.b32.xlu0 %v1847_v23, %s4429_s0 }
0x220f   :  { %v1850_v24 = vpop.permute.xlu0 %1849 }
0x2210   :  { %v1852_v25 = vadd.f32 %v1850_v24, %v5092_v52 }
0x2212   :  { %4329 = vtanh.f32 %v1852_v25 }
0x221f   :  { %v4330_v26 = vpop.eup %4329 }
0x2220   :  { %1856 = vrot.lane.b32.xlu1 %v4330_v26, %s4431_s21 }
0x2292   :  { %v1857_v27 = vpop.permute.xlu1 %1856 }
0x2293   :  { %v1859_v29 = vmul.f32 %v1857_v27, %v1854_v44 }
0x2295   :  { %v1861_v42 = vadd.f32 %v1860_v28, %v1859_v29 }
0x2297   :  { %1867 = vrot.lane.b32.xlu0 %v1861_v42, %s4431_s21 }
0x2309   :  { %v1868_v32 = vpop.permute.xlu0 %1867 }
0x230a   :  { %v1870_v41 = vsel %vm386_vm11, %v1868_v32, %v1861_v42 }
0x230b   :  { %v1871_v39 = vmul.f32 %v1870_v41, %v4703_v7 }
0x230d   :  { %v1872_v21 = vpack.c.bf16 %v1871_v39, %v1871_v39 }
0x230f   :  { %4046 = vmatmul.mubr.msk.bf16.vlgmr.msra.gmra.mxu1 %vm138_vm3, %v1872_v21 }
0x2310   :  { %4062 = vmatpush3.bf16.msra.mxu1 %v5024_v38  ;;  %4069 = vmatprep.mubr.msk.bf16.mxu1 %vm4428_vm0, %v4427_v0 }
0x2311   :  { %4063 = vmatprep.subr.bf16.mxu1 %v4427_v0 }
0x2314   :  { %4064 = vmatpush3.bf16.msra.mxu1 %v5032_v62 }
0x2315   :  { %4065 = vmatprep.subr.bf16.mxu1 %v4427_v0 }
0x2318   :  { %4066 = vmatpush3.bf16.msra.mxu1 %v5045_v14 }
0x2319   :  { %4067 = vmatprep.subr.bf16.mxu1 %v4427_v0 }
0x231c   :  { %4068 = vmatpush3.bf16.msra.mxu1 %v5054_v15 }
0x231d   :  { %4085 = vmatprep.subr.bf16.mxu1 %v4427_v0 }
0x23cf   :  { %v1910_v52 = vpop.f32.mrf.mxu1 }
0x23d0   :  { %v1923_v47 = vadd.f32 %v1910_v52, %v5103_v56  ;;  %v1916_v51 = vadd.f32 %v1910_v52, %v5085_v22 }
0x23d1   :  { %v4047_v48 = vpop.f32.mrf.mxu1 }
0x23d2   :  { %1925 = vrot.lane.b32.xlu1 %v1923_v47, %s4429_s0  ;;  %v3605_v57 = vmul.f32 -1.442695, %v1916_v51 }
0x23d3   :  { %v1913_v49 = vpop.f32.mrf.mxu1 }
0x23d4   :  { %4331 = vpow2.f32 %v3605_v57  ;;  %v2407_v49 = vlaneseq  ;;  %v1274_v57 = vmul.f32 0.5, %v4983_v46  ;;  %v5239_v46 = vld [vmem:[%s5705_s1] sm:$0x3f] }
0x23d5   :  { %v4048_v50 = vpop.f32.mrf.mxu1 }
0x23d6   :  { %v5220_v51 = vshrl.u32 %v2407_v49, 7 }
0x23e1   :  { %v4332_v58 = vpop.eup %4331 }
0x23e2   :  { %v1920_v59 = vadd.f32 1.0, %v4332_v58  ;;  %v2409_v58 = vsub.s32 0, %v5220_v51 }
0x23e4   :  { %4333 = vrcp.f32 %v1920_v59  ;;  %v2413_v59 = vsub.s32 1, %v5220_v51  ;;  %v4255_v51 = vld [vmem:[%s5706_s14 + $0x10] sm:$0xff]  }
0x23f1   :  { %v4334_v1 = vpop.eup %4333 }
0x23f2   :  { %v1935_v31 = vsub.f32 1.0, %v4334_v1  ;;  %v1941_v5 = vmul.f32 %v4334_v1, %v1861_v42 }
0x2444   :  { %v1926_v30 = vpop.permute.xlu1 %1925 }
0x2445   :  { %v1928_v36 = vmul.f32 %v4334_v1, %v1926_v30  ;;  %v2410_v1 = vrot.slane %v1274_v57, %v2409_v58  ;;  %v2414_v30 = vrot.slane %v1274_v57, %v2413_v59 }
0x2447   :  { %1930 = vrot.lane.b32.xlu0 %v1928_v36, %s4429_s0 }
0x24b9   :  { %v1931_v34 = vpop.permute.xlu0 %1930 }
0x24ba   :  { %v1933_v35 = vadd.f32 %v1931_v34, %v5085_v22  ;;  %v5230_v34 = vsel %vm352_vm9, %v2410_v1, %v2414_v30 }
0x24bc   :  { %4335 = vtanh.f32 %v1933_v35  ;;  %v5244_v35 = vld [vmem:[%s5705_s1 + $0x8] sm:$0x3f] }
0x24c9   :  { %v4336_v60 = vpop.eup %4335 }
0x24ca   :  { %1937 = vrot.lane.b32.xlu1 %v4336_v60, %s4431_s21  ;;  %v5249_v60 = vld [vmem:[%s5705_s1 + $0x10] sm:$0x3f] }
0x253c   :  { %v1938_v61 = vpop.permute.xlu1 %1937 }
0x253d   :  { %v1940_v2 = vmul.f32 %v1938_v61, %v1935_v31  ;;  %v2217_v31 = vrot.slane %v5244_v35, 7  ;;  %v2235_v61 = vrot.slane %v5239_v46, 1 }
0x253f   :  { %v1942_v43 = vadd.f32 %v1941_v5, %v1940_v2  ;;  %v5256_v5 = vld [vmem:[%s5705_s1 + $0x18] sm:$0x3f]  ;;  %v2219_v2 = vrot.slane %v5249_v60, 6 }
0x2541   :  { %1950 = vrot.lane.b32.xlu0 %v1942_v43, %s4431_s21 }
0x25b3   :  { %v1951_v63 = vpop.permute.xlu0 %1950 }
0x25b4   :  { %v1953_v37 = vsel %vm386_vm11, %v1951_v63, %v1942_v43  ;;  %v4249_v63 = vld [vmem:[%s5706_s14 + $0x8] sm:$0xff]  }
0x25b5   :  { %v1954_v4 = vmul.f32 %v1953_v37, %v4703_v7  ;;  %v2218_v37 = vsel %vm111_vm2, %v2217_v31, %v5239_v46 }
0x25b7   :  { %v1955_v11 = vpack.c.bf16 %v1954_v4, %v1954_v4  ;;  %v5268_v4 = vld [vmem:[%s5705_s1 + $0x20] sm:$0x3f] }
0x25b9   :  { %4058 = vmatmul.mubr.msk.bf16.vlgmr.msra.gmra.mxu0 %vm138_vm3, %v1955_v11  ;;  %v2221_v11 = vsel %vm2220_vm12, %v2219_v2, %v2218_v37 }
0x25ba   :  { %4074 = vmatpush3.bf16.msra.mxu0 %v5024_v38  ;;  %4081 = vmatprep.mubr.msk.bf16.mxu0 %vm4428_vm0, %v4427_v0 }
0x25bb   :  { %4075 = vmatprep.subr.bf16.mxu0 %v4427_v0 }
0x25be   :  { %4076 = vmatpush3.bf16.msra.mxu0 %v5032_v62 }
0x25bf   :  { %4077 = vmatprep.subr.bf16.mxu0 %v4427_v0 }
0x25c2   :  { %4078 = vmatpush3.bf16.msra.mxu0 %v5045_v14 }
0x25c3   :  { %4079 = vmatprep.subr.bf16.mxu0 %v4427_v0 }
0x25c6   :  { %4080 = vmatpush3.bf16.msra.mxu0 %v5054_v15 }
0x25c7   :  { %4101 = vmatprep.subr.bf16.mxu0 %v4427_v0 }
0x2679   :  { %v1993_v22 = vpop.f32.mrf.mxu0 }
0x267a   :  { %v2006_v38 = vadd.f32 %v1993_v22, %v5103_v56  ;;  %v1999_v62 = vadd.f32 %v1993_v22, %v5095_v53  ;;  %v2236_v22 = vsel %vm111_vm2, %v5244_v35, %v2235_v61 }
0x267b   :  { %v4059_v12 = vpop.f32.mrf.mxu0 }
0x267c   :  { %2008 = vrot.lane.b32.xlu1 %v2006_v38, %s4429_s0  ;;  %v3607_v8 = vmul.f32 -1.442695, %v1999_v62  ;;  %v2222_v12 = vrot.slane %v5256_v5, 5  ;;  %v4251_v62 = vld [vmem:[%s5706_s14] sm:$0xff]  }
0x267d   :  { %v1996_v33 = vpop.f32.mrf.mxu0 }
0x267e   :  { %4337 = vpow2.f32 %v3607_v8  ;;  %v5278_v33 = vld [vmem:[%s5705_s1 + $0x28] sm:$0x3f]  ;;  %v5286_v8 = vld [vmem:[%s5705_s1 + $0x30] sm:$0x3f] }
0x267f   :  { %v4060_v13 = vpop.f32.mrf.mxu0 }
0x268b   :  { %v4338_v40 = vpop.eup %4337 }
0x268c   :  { %v2003_v14 = vadd.f32 1.0, %v4338_v40  ;;  %v5291_v40 = vld [vmem:[%s5705_s1 + $0x38] sm:$0x3f] }
0x268e   :  { %4339 = vrcp.f32 %v2003_v14  ;;  %v2223_v14 = vsel %vm322_vm5, %v2222_v12, %v2221_v11  ;;  %v5365_v12 = vld [vmem:[%s5709_s16] ss:$0 sm:$0xff] }
0x269b   :  { %v4340_v10 = vpop.eup %4339 }
0x269c   :  { %v2018_v6 = vsub.f32 1.0, %v4340_v10  ;;  %v2024_v20 = vmul.f32 %v4340_v10, %v1942_v43  ;;  %v2237_v43 = vrot.slane %v5249_v60, 7 }
0x26ee   :  { %v2009_v16 = vpop.permute.xlu1 %2008 }
0x26ef   :  { %v2011_v15 = vmul.f32 %v4340_v10, %v2009_v16  ;;  %v2224_v10 = vrot.slane %v5268_v4, 4  ;;  %v2238_v16 = vsel %vm2220_vm12, %v2237_v43, %v2236_v22 }
0x26f1   :  { %2013 = vrot.lane.b32.xlu0 %v2011_v15, %s4429_s0  ;;  %v2227_v15 = vrot.slane %v5278_v33, 3 }
0x2763   :  { %v2014_v3 = vpop.permute.xlu0 %2013 }
0x2764   :  { %v2016_v17 = vadd.f32 %v2014_v3, %v5095_v53  ;;  %v2229_v3 = vrot.slane %v5286_v8, 2 }
0x2766   :  { %4341 = vtanh.f32 %v2016_v17 }
0x2773   :  { %v4342_v18 = vpop.eup %4341 }
0x2774   :  { %2020 = vrot.lane.b32.xlu1 %v4342_v18, %s4431_s21  ;;  %v2226_v18 = vsel %vm2225_vm13, %v2224_v10, %v2223_v14 }
0x27e6   :  { %v2021_v19 = vpop.permute.xlu1 %2020 }
0x27e7   :  { %v2023_v9 = vmul.f32 %v2021_v19, %v2018_v6  ;;  %v2232_v6 = vrot.slane %v5291_v40, 1  ;;  %v2239_v19 = vrot.slane %v5256_v5, 6 }
0x27e9   :  { %v2025_v45 = vadd.f32 %v2024_v20, %v2023_v9  ;;  %v2241_v20 = vrot.slane %v5268_v4, 5 }
0x27eb   :  { %2030 = vrot.lane.b32.xlu0 %v2025_v45, %s4431_s21 }
0x285d   :  { %v2031_v23 = vpop.permute.xlu0 %2030 }
0x285e   :  { %v2033_v24 = vsel %vm386_vm11, %v2031_v23, %v2025_v45  ;;  %v2243_v23 = vrot.slane %v5278_v33, 4 }
0x285f   :  { %v2034_v25 = vmul.f32 %v2033_v24, %v4703_v7  ;;  %v2245_v24 = vrot.slane %v5286_v8, 3 }
0x2861   :  { %v2035_v26 = vpack.c.bf16 %v2034_v25, %v2034_v25 }
0x2863   :  { %4070 = vmatmul.mubr.msk.bf16.vlgmr.msra.gmra.mxu1 %vm138_vm3, %v2035_v26  ;;  %v2240_v26 = vsel %vm322_vm5, %v2239_v19, %v2238_v16 }
0x2864   :  { %4089 = vmatprep.mubr.msk.bf16.mxu1 %vm4428_vm0, %v4427_v0  ;;  %4086 = vmatpush3.bf16.msra.mxu1 %v4249_v63 }
0x2865   :  { %4087 = vmatprep.subr.bf16.mxu1 %v4427_v0 }
0x2868   :  { %4088 = vmatpush3.bf16.msra.mxu1 %v4251_v62 }
0x2869   :  { %4125 = vmatprep.subr.bf16.mxu1 %v4427_v0 }
0x2923   :  { %v2073_v53 = vpop.f32.mrf.mxu1 }
0x2924   :  { %v2086_v44 = vadd.f32 %v2073_v53, %v5103_v56  ;;  %v2079_v42 = vadd.f32 %v2073_v53, %v5098_v54  ;;  %v2247_v53 = vrot.slane %v5291_v40, 2 }
0x2925   :  { %v4071_v27 = vpop.f32.mrf.mxu1 }
0x2926   :  { %2088 = vrot.lane.b32.xlu1 %v2086_v44, %s4429_s0  ;;  %v3609_v32 = vmul.f32 -1.442695, %v2079_v42  ;;  %v2242_v27 = vsel %vm2225_vm13, %v2241_v20, %v2240_v26 }
0x2927   :  { %v2076_v28 = vpop.f32.mrf.mxu1 }
0x2928   :  { %4343 = vpow2.f32 %v3609_v32 }
0x2929   :  { %v4072_v29 = vpop.f32.mrf.mxu1 }
0x292a   :  { %v2244_v29 = vsel %vm327_vm6, %v2243_v23, %v2242_v27 }
0x292b   :  { %v2246_v42 = vsel %vm2230_vm14, %v2245_v24, %v2244_v29 }
0x292c   :  { %v2248_v32 = vsel %vm332_vm7, %v2247_v53, %v2246_v42 }
0x2935   :  { %v4344_v41 = vpop.eup %4343 }
0x2936   :  { %v2083_v39 = vadd.f32 1.0, %v4344_v41  ;;  %v3622_v41 = vld [vmem:[%s5708_s17] ss:$0 sm:$0xff] }
0x2938   :  { %4345 = vrcp.f32 %v2083_v39 }
0x2945   :  { %v4346_v21 = vpop.eup %4345 }
0x2946   :  { %v2098_v38 = vsub.f32 1.0, %v4346_v21  ;;  %v2104_v13 = vmul.f32 %v4346_v21, %v2025_v45  ;;  %v2228_v45 = vsel %vm327_vm6, %v2227_v15, %v2226_v18 }
0x2947   :  { %v2231_v25 = vsel %vm2230_vm14, %v2229_v3, %v2228_v45 }
0x2948   :  { %v2233_v28 = vsel %vm332_vm7, %v2232_v6, %v2231_v25 }
0x2949   :  { %v2310_v39 = vpack.c.bf16 %v2248_v32, %v2233_v28 }
0x294b   :  { %4090 = vmatmul.mubr.msk.bf16.vlgmr.msra.gmra.mxu1 %vm386_vm11, %v2310_v39 }
0x294c   :  { %4093 = vmatprep.mubr.msk.bf16.mxu1 %vm4428_vm0, %v4427_v0 }
0x2998   :  { %v2089_v52 = vpop.permute.xlu1 %2088 }
0x2999   :  { %v2091_v47 = vmul.f32 %v4346_v21, %v2089_v52  ;;  %v5324_v21 = vld [vmem:[%s5707_s15 + $0x8] sm:$0xff]   ;;  %v5335_v52 = vld [vmem:[%s5707_s15] sm:$0xff]  }
0x299a   :  { %4126 = vmatpush3.bf16.msra.mxu1 %v5324_v21 }
0x299b   :  { %2093 = vrot.lane.b32.xlu0 %v2091_v47, %s4429_s0  ;;  %4127 = vmatprep.subr.bf16.mxu1 %v4427_v0 }
0x299e   :  { %4128 = vmatpush3.bf16.msra.mxu1 %v5335_v52 }
0x299f   :  { %4141 = vmatprep.subr.bf16.mxu1 %v4427_v0 }
0x2a0d   :  { %v2094_v48 = vpop.permute.xlu0 %2093 }
0x2a0e   :  { %v2096_v50 = vadd.f32 %v2094_v48, %v5098_v54  ;;  %v2416_v54 = vpack.c.bf16 %v5230_v34, %v5230_v34 }
0x2a10   :  { %4347 = vtanh.f32 %v2096_v50 }
0x2a1d   :  { %v4348_v36 = vpop.eup %4347 }
0x2a1e   :  { %2100 = vrot.lane.b32.xlu1 %v4348_v36, %s4431_s21 }
0x2a22   :  { %2418 = vrot.lane.b32.xlu1 %v2416_v54, %s4431_s21 }
0x2a90   :  { %v2101_v17 = vpop.permute.xlu1 %2100 }
0x2a91   :  { %v2103_v9 = vmul.f32 %v2101_v17, %v2098_v38 }
0x2a93   :  { %v5309_v44 = vadd.f32 %v2104_v13, %v2103_v9 }
0x2a94   :  { %v2419_v57 = vpop.permute.xlu1 %2418 }
0x2a95   :  { %2112 = vrot.lane.b32.xlu0 %v5309_v44, %s4431_s21 }
0x2a99   :  { %2487 = vrot.lane.b32.xlu0 %v3622_v41, %s4429_s0 }
0x2b07   :  { %v2113_v47 = vpop.permute.xlu0 %2112 }
0x2b08   :  { %v2115_v48 = vsel %vm386_vm11, %v2113_v47, %v5309_v44 }
0x2b09   :  { %v2116_v49 = vmul.f32 %v2115_v48, %v4703_v7  ;;  %v2379_v7 = vpop.f32.mrf.mxu1 }
0x2b0a   :  { %v2380_v13 = vadd.f32 %v5365_v12, %v2379_v7 }
0x2b0b   :  { %v2117_v50 = vpack.c.bf16 %v2116_v49, %v2116_v49  ;;  %v4091_v1 = vpop.f32.mrf.mxu1  ;;  %v5358_v43 = vpop.permute.xlu0 %2487 }
0x2b0c   :  { %v2250_v1 = vrot.slane %v5239_v46, 2 }
0x2b0d   :  { %4082 = vmatmul.mubr.msk.bf16.vlgmr.msra.gmra.mxu0 %vm138_vm3, %v2117_v50  ;;  %v2382_v30 = vpop.f32.mrf.mxu1 }
0x2b0e   :  { %4102 = vmatpush3.bf16.msra.mxu0 %v5324_v21  ;;  %4105 = vmatprep.mubr.msk.bf16.mxu0 %vm4428_vm0, %v4427_v0  ;;  %v2383_v42 = vadd.f32 %v5365_v12, %v2382_v30  ;;  %v2254_v30 = vrot.slane %v5256_v5, 7 }
0x2b0f   :  { %4103 = vmatprep.subr.bf16.mxu0 %v4427_v0  ;;  %v4092_v36 = vpop.f32.mrf.mxu1 }
0x2b10   :  { %v2251_v36 = vrot.slane %v5244_v35, 1 }
0x2b12   :  { %4104 = vmatpush3.bf16.msra.mxu0 %v5335_v52 }
0x2b13   :  { %4109 = vmatprep.subr.bf16.mxu0 %v4427_v0 }
0x2b15   :  { %4106 = vmatmul.mubr.msk.bf16.vlgmr.msra.gmra.mxu0 %vm386_vm11, %v2419_v57 }
0x2b16   :  { %4110 = vmatpush3.bf16.msra.mxu0 %v5324_v21  ;;  %4113 = vmatprep.mubr.msk.bf16.mxu0 %vm4428_vm0, %v4427_v0 }
0x2b17   :  { %4111 = vmatprep.subr.bf16.mxu0 %v4427_v0 }
0x2b1a   :  { %4112 = vmatpush3.bf16.msra.mxu0 %v5335_v52 }
0x2b1b   :  { %4117 = vmatprep.subr.bf16.mxu0 %v4427_v0 }
0x2bcd   :  { %v5356_v54 = vpop.f32.mrf.mxu0 }
0x2bcf   :  { %v4083_v31 = vpop.f32.mrf.mxu0 }
0x2bd0   :  { %v2256_v31 = vrot.slane %v5268_v4, 6 }
0x2bd1   :  { %v2158_v61 = vpop.f32.mrf.mxu0 }
0x2bd2   :  { %v2265_v61 = vrot.slane %v5239_v46, 3 }
0x2bd3   :  { %v4084_v2 = vpop.f32.mrf.mxu0 }
0x2bd4   :  { %v2252_v2 = vsel %vm111_vm2, %v2251_v36, %v2250_v1 }
0x2bd5   :  { %v2469_v63 = vpop.f32.mrf.mxu0 }
0x2bd6   :  { %v2490_v37 = vadd.f32 %v5358_v43, %v2469_v63  ;;  %v2475_v62 = vadd.f32 %v2469_v63, %v2380_v13  ;;  %v2258_v63 = vrot.slane %v5278_v33, 5 }
0x2bd7   :  { %v4107_v11 = vpop.f32.mrf.mxu0 }
0x2bd8   :  { %2492 = vrot.lane.b32.xlu1 %v2490_v37, %s4429_s0  ;;  %v3621_v14 = vmul.f32 -1.442695, %v2475_v62  ;;  %v2266_v37 = vrot.slane %v5244_v35, 2  ;;  %v2268_v11 = vrot.slane %v5249_v60, 1 }
0x2bd9   :  { %v2472_v22 = vpop.f32.mrf.mxu0 }
0x2bda   :  { %4349 = vpow2.f32 %v3621_v14  ;;  %v2253_v22 = vsel %vm2220_vm12, %v5249_v60, %v2252_v2  ;;  %v2262_v14 = vrot.slane %v5291_v40, 3 }
0x2bdb   :  { %v4108_v38 = vpop.f32.mrf.mxu0  ;;  %v2255_v62 = vsel %vm322_vm5, %v2254_v30, %v2253_v22 }
0x2bdc   :  { %v2260_v38 = vrot.slane %v5286_v8, 4 }
0x2be7   :  { %v4350_v10 = vpop.eup %4349 }
0x2be8   :  { %v2479_v16 = vadd.f32 1.0, %v4350_v10  ;;  %v2267_v10 = vsel %vm111_vm2, %v2266_v37, %v2265_v61 }
0x2bea   :  { %4351 = vrcp.f32 %v2479_v16  ;;  %v2273_v16 = vrot.slane %v5278_v33, 6 }
0x2bf7   :  { %v4352_v15 = vpop.eup %4351 }
0x2bf8   :  { %v2502_v20 = vsub.f32 1.0, %v4352_v15  ;;  %v2508_v45 = vmul.f32 %v4352_v15, %v5230_v34 }
0x2c4a   :  { %v2493_v3 = vpop.permute.xlu1 %2492 }
0x2c4b   :  { %v2495_v17 = vmul.f32 %v4352_v15, %v2493_v3  ;;  %v2257_v15 = vsel %vm2225_vm13, %v2256_v31, %v2255_v62  ;;  %v2269_v3 = vsel %vm2220_vm12, %v2268_v11, %v2267_v10  ;;  %v2281_v10 = vrot.slane %v5244_v35, 3 }
0x2c4d   :  { %2497 = vrot.lane.b32.xlu0 %v2495_v17, %s4429_s0  ;;  %v2275_v17 = vrot.slane %v5286_v8, 5 }
0x2cbf   :  { %v2498_v18 = vpop.permute.xlu0 %2497 }
0x2cc0   :  { %v2500_v6 = vadd.f32 %v2498_v18, %v2380_v13  ;;  %v2271_v13 = vrot.slane %v5268_v4, 7 }
0x2cc2   :  { %4353 = vtanh.f32 %v2500_v6  ;;  %v2259_v6 = vsel %vm327_vm6, %v2258_v63, %v2257_v15  ;;  %v2285_v15 = vrot.slane %v5256_v5, 1 }
0x2ccf   :  { %v4354_v19 = vpop.eup %4353 }
0x2cd0   :  { %2504 = vrot.lane.b32.xlu1 %v4354_v19, %s4431_s21  ;;  %v2270_v19 = vsel %vm322_vm5, %v5256_v5, %v2269_v3  ;;  %v2288_v3 = vrot.slane %v5278_v33, 7 }
0x2d42   :  { %v2505_v9 = vpop.permute.xlu1 %2504 }
0x2d43   :  { %v2507_v23 = vmul.f32 %v2505_v9, %v2502_v20  ;;  %v2277_v20 = vrot.slane %v5291_v40, 4  ;;  %v2261_v9 = vsel %vm2230_vm14, %v2260_v38, %v2259_v6  ;;  %v2296_v6 = vrot.slane %v5244_v35, 4 }
0x2d45   :  { %v5371_v24 = vadd.f32 %v2508_v45, %v2507_v23  ;;  %v2272_v45 = vsel %vm2225_vm13, %v2271_v13, %v2270_v19  ;;  %v2263_v23 = vsel %vm332_vm7, %v2262_v14, %v2261_v9  ;;  %v2280_v14 = vrot.slane %v5239_v46, 4 }
0x2d46   :  { %v2298_v19 = vrot.slane %v5249_v60, 3 }
0x2d47   :  { %v2510_v25 = vpack.c.bf16 %v5371_v24, %v5371_v24 }
0x2d49   :  { %2512 = vrot.lane.b32.xlu0 %v2510_v25, %s4431_s21  ;;  %v2274_v25 = vsel %vm327_vm6, %v2273_v16, %v2272_v45  ;;  %v2283_v16 = vrot.slane %v5249_v60, 2  ;;  %v2290_v45 = vrot.slane %v5286_v8, 6  ;;  %v2305_v60 = vrot.slane %v5286_v8, 7 }
0x2dbb   :  { %v2513_v26 = vpop.permute.xlu0 %2512 }
0x2dbc   :  { %4114 = vmatmul.mubr.msk.bf16.vlgmr.msra.gmra.mxu0 %vm386_vm11, %v2513_v26  ;;  %v2276_v26 = vsel %vm2230_vm14, %v2275_v17, %v2274_v25  ;;  %v2295_v17 = vrot.slane %v5239_v46, 5 }
0x2dbd   :  { %4118 = vmatpush3.bf16.msra.mxu0 %v5324_v21  ;;  %4121 = vmatprep.mubr.msk.bf16.mxu0 %vm4428_vm0, %v4427_v0 }
0x2dbe   :  { %4119 = vmatprep.subr.bf16.mxu0 %v4427_v0  ;;  %v2297_v46 = vsel %vm111_vm2, %v2296_v6, %v2295_v17 }
0x2dbf   :  { %v2299_v35 = vsel %vm2220_vm12, %v2298_v19, %v2297_v46 }
0x2dc1   :  { %4120 = vmatpush3.bf16.msra.mxu0 %v5335_v52 }
0x2dc2   :  { %4133 = vmatprep.subr.bf16.mxu0 %v4427_v0 }
0x2e7c   :  { %v2551_v34 = vpop.f32.mrf.mxu0 }
0x2e7d   :  { %v2564_v53 = vadd.f32 %v2551_v34, %v5358_v43  ;;  %v2557_v32 = vadd.f32 %v2551_v34, %v2383_v42  ;;  %v2278_v34 = vsel %vm332_vm7, %v2277_v20, %v2276_v26  ;;  %v2300_v20 = vrot.slane %v5256_v5, 2 }
0x2e7e   :  { %v4115_v27 = vpop.f32.mrf.mxu0  ;;  %v2292_v26 = vrot.slane %v5291_v40, 5 }
0x2e7f   :  { %2566 = vrot.lane.b32.xlu1 %v2564_v53, %s4429_s0  ;;  %v3624_v41 = vmul.f32 -1.442695, %v2557_v32  ;;  %v2311_v53 = vpack.c.bf16 %v2278_v34, %v2263_v23  ;;  %v2302_v23 = vrot.slane %v5268_v4, 1 }
0x2e80   :  { %v2554_v28 = vpop.f32.mrf.mxu0 }
0x2e81   :  { %4355 = vpow2.f32 %v3624_v41  ;;  %4094 = vmatmul.mubr.msk.bf16.gmra.mxu1 %vm386_vm11, %v2311_v53 }
0x2e82   :  { %v4116_v29 = vpop.f32.mrf.mxu0  ;;  %4097 = vmatprep.mubr.msk.bf16.mxu1 %vm4428_vm0, %v4427_v0 }
0x2e8e   :  { %v4356_v39 = vpop.eup %4355 }
0x2e8f   :  { %v2561_v47 = vadd.f32 1.0, %v4356_v39 }
0x2e91   :  { %4357 = vrcp.f32 %v2561_v47 }
0x2e9e   :  { %v4358_v48 = vpop.eup %4357 }
0x2e9f   :  { %v2576_v27 = vsub.f32 1.0, %v4358_v48  ;;  %v2582_v29 = vmul.f32 %v4358_v48, %v5371_v24 }
0x2ef1   :  { %v2567_v49 = vpop.permute.xlu1 %2566 }
0x2ef2   :  { %v2569_v50 = vmul.f32 %v4358_v48, %v2567_v49 }
0x2ef4   :  { %2571 = vrot.lane.b32.xlu0 %v2569_v50, %s4429_s0 }
0x2f41   :  { %v2387_v39 = vpop.f32.mrf.mxu1 }
0x2f42   :  { %v2388_v31 = vadd.f32 %v5365_v12, %v2387_v39 }
0x2f43   :  { %v4095_v47 = vpop.f32.mrf.mxu1 }
0x2f45   :  { %v5434_v48 = vpop.f32.mrf.mxu1 }
0x2f47   :  { %v4096_v50 = vpop.f32.mrf.mxu1 }
0x2f66   :  { %v2572_v57 = vpop.permute.xlu0 %2571 }
0x2f67   :  { %v2574_v7 = vadd.f32 %v2572_v57, %v2383_v42 }
0x2f69   :  { %4359 = vtanh.f32 %v2574_v7 }
0x2f76   :  { %v4360_v18 = vpop.eup %4359 }
0x2f77   :  { %2578 = vrot.lane.b32.xlu1 %v4360_v18, %s4431_s21  ;;  %v2282_v18 = vsel %vm111_vm2, %v2281_v10, %v2280_v14 }
0x2f78   :  { %v2284_v9 = vsel %vm2220_vm12, %v2283_v16, %v2282_v18  ;;  %v2161_v18 = vadd.f32 %v5356_v54, %v5101_v55 }
0x2f79   :  { %v2286_v25 = vsel %vm322_vm5, %v2285_v15, %v2284_v9 }
0x2f7a   :  { %v2287_v34 = vsel %vm2225_vm13, %v5268_v4, %v2286_v25  ;;  %v3611_v6 = vmul.f32 -1.442695, %v2161_v18  ;;  %v5562_v18 = vld [vmem:[%s5707_s15 + $0x10] sm:$0xff]  }
0x2f7b   :  { %v2289_v53 = vsel %vm327_vm6, %v2288_v3, %v2287_v34 }
0x2fe9   :  { %v2579_v28 = vpop.permute.xlu1 %2578 }
0x2fea   :  { %v2581_v42 = vmul.f32 %v2579_v28, %v2576_v27  ;;  %v2301_v27 = vsel %vm322_vm5, %v2300_v20, %v2299_v35  ;;  %v2307_v28 = vrot.slane %v5291_v40, 6 }
0x2fec   :  { %v5422_v32 = vadd.f32 %v2582_v29, %v2581_v42  ;;  %v2291_v29 = vsel %vm2230_vm14, %v2290_v45, %v2289_v53  ;;  %v2303_v42 = vsel %vm2225_vm13, %v2302_v23, %v2301_v27 }
0x2fed   :  { %v2304_v4 = vsel %vm327_vm6, %v5278_v33, %v2303_v42 }
0x2fee   :  { %v2584_v41 = vpack.c.bf16 %v5422_v32, %v5422_v32  ;;  %v2306_v8 = vsel %vm2230_vm14, %v2305_v60, %v2304_v4 }
0x2fef   :  { %v2308_v39 = vsel %vm332_vm7, %v2307_v28, %v2306_v8 }
0x2ff0   :  { %2586 = vrot.lane.b32.xlu0 %v2584_v41, %s4431_s21  ;;  %v2293_v41 = vsel %vm332_vm7, %v2292_v26, %v2291_v29 }
0x2ff1   :  { %v2312_v47 = vpack.c.bf16 %v2308_v39, %v2293_v41 }
0x2ff3   :  { %4098 = vmatmul.mubr.msk.bf16.gmra.mxu1 %vm386_vm11, %v2312_v47 }
0x2ff4   :  { %4129 = vmatprep.mubr.msk.bf16.mxu1 %vm4428_vm0, %v4427_v0 }
0x3062   :  { %v2587_v49 = vpop.permute.xlu0 %2586 }
0x3063   :  { %4122 = vmatmul.mubr.msk.bf16.vlgmr.msra.gmra.mxu0 %vm386_vm11, %v2587_v49 }
0x3064   :  { %4134 = vmatpush3.bf16.msra.mxu0 %v5324_v21  ;;  %4137 = vmatprep.mubr.msk.bf16.mxu0 %vm4428_vm0, %v4427_v0 }
0x3065   :  { %4135 = vmatprep.subr.bf16.mxu0 %v4427_v0 }
0x3068   :  { %4136 = vmatpush3.bf16.msra.mxu0 %v5335_v52 }
0x3069   :  { %4149 = vmatprep.subr.bf16.mxu0 %v4427_v0 }
0x3123   :  { %v2625_v57 = vpop.f32.mrf.mxu0 }
0x3124   :  { %v2638_v7 = vadd.f32 %v2625_v57, %v5358_v43  ;;  %v2631_v61 = vadd.f32 %v2625_v57, %v2388_v31 }
0x3125   :  { %v4123_v1 = vpop.f32.mrf.mxu0 }
0x3126   :  { %2640 = vrot.lane.b32.xlu1 %v2638_v7, %s4429_s0  ;;  %v3626_v2 = vmul.f32 -1.442695, %v2631_v61  ;;  %v5480_v1 = vpop.f32.mrf.mxu1 }
0x3127   :  { %v2628_v36 = vpop.f32.mrf.mxu0 }
0x3128   :  { %4361 = vpow2.f32 %v3626_v2  ;;  %v4099_v36 = vpop.f32.mrf.mxu1 }
0x3129   :  { %v4124_v30 = vpop.f32.mrf.mxu0 }
0x312a   :  { %v5482_v30 = vpop.f32.mrf.mxu1 }
0x3135   :  { %v4362_v63 = vpop.eup %4361 }
0x3136   :  { %v2635_v37 = vadd.f32 1.0, %v4362_v63 }
0x3138   :  { %4363 = vrcp.f32 %v2635_v37 }
0x3145   :  { %v4364_v11 = vpop.eup %4363 }
0x3146   :  { %v2650_v40 = vsub.f32 1.0, %v4364_v11  ;;  %v2656_v50 = vmul.f32 %v4364_v11, %v5422_v32 }
0x3198   :  { %v2641_v22 = vpop.permute.xlu1 %2640 }
0x3199   :  { %v2643_v38 = vmul.f32 %v4364_v11, %v2641_v22 }
0x319b   :  { %2645 = vrot.lane.b32.xlu0 %v2643_v38, %s4429_s0 }
0x320d   :  { %v2646_v13 = vpop.permute.xlu0 %2645 }
0x320e   :  { %v2648_v62 = vadd.f32 %v2646_v13, %v2388_v31  ;;  %v4100_v31 = vpop.f32.mrf.mxu1 }
0x3210   :  { %4365 = vtanh.f32 %v2648_v62 }
0x321d   :  { %v4366_v5 = vpop.eup %4365 }
0x321e   :  { %2652 = vrot.lane.b32.xlu1 %v4366_v5, %s4431_s21 }
0x3290   :  { %v2653_v49 = vpop.permute.xlu1 %2652 }
0x3291   :  { %v2655_v57 = vmul.f32 %v2653_v49, %v2650_v40 }
0x3293   :  { %v5475_v7 = vadd.f32 %v2656_v50, %v2655_v57 }
0x3295   :  { %v2658_v33 = vpack.c.bf16 %v5475_v7, %v5475_v7 }
0x3297   :  { %2660 = vrot.lane.b32.xlu0 %v2658_v33, %s4431_s21 }
0x3309   :  { %v2661_v61 = vpop.permute.xlu0 %2660 }
0x330a   :  { %4130 = vmatmul.mubr.msk.bf16.vlgmr.msra.gmra.mxu1 %vm386_vm11, %v2661_v61 }
0x330b   :  { %4142 = vmatpush3.bf16.msra.mxu1 %v5324_v21  ;;  %4145 = vmatprep.mubr.msk.bf16.mxu1 %vm4428_vm0, %v4427_v0  ;;  %v2391_v21 = vadd.f32 %v5365_v12, %v5434_v48  ;;  %v2168_v48 = vadd.f32 %v5356_v54, %v5103_v56 }
0x330c   :  { %4143 = vmatprep.subr.bf16.mxu1 %v4427_v0 }
0x330f   :  { %4144 = vmatpush3.bf16.msra.mxu1 %v5335_v52 }
0x3310   :  { %4165 = vmatprep.subr.bf16.mxu1 %v4427_v0 }
0x33ca   :  { %v2699_v2 = vpop.f32.mrf.mxu1 }
0x33cb   :  { %v2712_v63 = vadd.f32 %v2699_v2, %v5358_v43  ;;  %v2705_v38 = vadd.f32 %v2699_v2, %v2391_v21 }
0x33cc   :  { %v4131_v37 = vpop.f32.mrf.mxu1 }
0x33cd   :  { %2714 = vrot.lane.b32.xlu1 %v2712_v63, %s4429_s0  ;;  %v3628_v13 = vmul.f32 -1.442695, %v2705_v38  ;;  %v4253_v38 = vld [vmem:[%s5706_s14 + $0x18] sm:$0xff]  }
0x33ce   :  { %v2702_v11 = vpop.f32.mrf.mxu1 }
0x33cf   :  { %4367 = vpow2.f32 %v3628_v13 }
0x33d0   :  { %v4132_v22 = vpop.f32.mrf.mxu1 }
0x33dc   :  { %v4368_v62 = vpop.eup %4367 }
0x33dd   :  { %v2709_v14 = vadd.f32 1.0, %v4368_v62 }
0x33df   :  { %4369 = vrcp.f32 %v2709_v14 }
0x33ec   :  { %v4370_v52 = vpop.eup %4369 }
0x33ed   :  { %v2724_v9 = vsub.f32 1.0, %v4370_v52  ;;  %v2730_v23 = vmul.f32 %v4370_v52, %v5475_v7 }
0x343f   :  { %v2715_v10 = vpop.permute.xlu1 %2714 }
0x3440   :  { %v2717_v16 = vmul.f32 %v4370_v52, %v2715_v10  ;;  %v3653_v10 = vld [vmem:[%s5708_s17 + $0x1] ss:$0 sm:$0xff] }
0x3442   :  { %2719 = vrot.lane.b32.xlu0 %v2717_v16, %s4429_s0 }
0x34b4   :  { %v2720_v15 = vpop.permute.xlu0 %2719 }
0x34b5   :  { %v2722_v3 = vadd.f32 %v2720_v15, %v2391_v21 }
0x34b7   :  { %4371 = vtanh.f32 %v2722_v3  ;;  %v2881_v3 = vpack.c.bf16 %v5422_v32, %v5371_v24 }
0x34b8   :  { %4373 = vpow2.f32 %v3611_v6 }
0x34c4   :  { %v4372_v17 = vpop.eup %4371 }
0x34c5   :  { %2726 = vrot.lane.b32.xlu1 %v4372_v17, %s4431_s21  ;;  %v4374_v19 = vpop.eup %4373  ;;  %v5555_v17 = vld [vmem:[%s5707_s15 + $0x18] sm:$0xff]  }
0x34c6   :  { %v2165_v20 = vadd.f32 1.0, %v4374_v19 }
0x34c8   :  { %4375 = vrcp.f32 %v2165_v20 }
0x34c9   :  { %2170 = vrot.lane.b32.xlu1 %v2168_v48, %s4429_s0 }
0x34d5   :  { %v4376_v46 = vpop.eup %4375 }
0x34d6   :  { %v2180_v33 = vsub.f32 1.0, %v4376_v46  ;;  %v2186_v31 = vmul.f32 %v4376_v46, %v5309_v44 }
0x3537   :  { %v2727_v45 = vpop.permute.xlu1 %2726 }
0x3538   :  { %v2729_v25 = vmul.f32 %v2727_v45, %v2724_v9 }
0x353a   :  { %v5503_v26 = vadd.f32 %v2730_v23, %v2729_v25 }
0x353b   :  { %v2171_v34 = vpop.permute.xlu1 %2170 }
0x353c   :  { %v2173_v56 = vmul.f32 %v4376_v46, %v2171_v34  ;;  %v2732_v35 = vpack.c.bf16 %v5503_v26, %v5503_v26 }
0x353e   :  { %2734 = vrot.lane.b32.xlu0 %v2732_v35, %s4431_s21  ;;  %2175 = vrot.lane.b32.xlu1 %v2173_v56, %s4429_s0 }
0x35b0   :  { %v2735_v54 = vpop.permute.xlu0 %2734  ;;  %v2176_v60 = vpop.permute.xlu1 %2175 }
0x35b1   :  { %v2178_v5 = vadd.f32 %v2176_v60, %v5101_v55  ;;  %4138 = vmatmul.mubr.msk.bf16.vlgmr.msra.gmra.mxu0 %vm386_vm11, %v2735_v54  ;;  %v2396_v55 = vadd.f32 %v5365_v12, %v5480_v1 }
0x35b2   :  { %4153 = vmatprep.mubr.msk.bf16.mxu0 %vm4428_vm0, %v4427_v0  ;;  %4150 = vmatpush3.bf16.msra.mxu0 %v4253_v38 }
0x35b3   :  { %4377 = vtanh.f32 %v2178_v5  ;;  %4151 = vmatprep.subr.bf16.mxu0 %v4427_v0 }
0x35b6   :  { %4152 = vmatpush3.bf16.msra.mxu0 %v4255_v51 }
0x35b7   :  { %4189 = vmatprep.subr.bf16.mxu0 %v4427_v0 }
0x35c0   :  { %v4378_v53 = vpop.eup %4377 }
0x35c1   :  { %2182 = vrot.lane.b32.xlu1 %v4378_v53, %s4431_s21  ;;  %v5592_v53 = vld [vmem:[%s5709_s16 + $0x1] ss:$0 sm:$0xff] }
0x3633   :  { %v2183_v57 = vpop.permute.xlu1 %2182 }
0x3634   :  { %v2185_v36 = vmul.f32 %v2183_v57, %v2180_v33 }
0x3636   :  { %v2187_v61 = vadd.f32 %v2186_v31, %v2185_v36 }
0x3638   :  { %v2189_v2 = vrot.slane %v2187_v61, 2 }
0x363a   :  { %v2191_v37 = vadd.f32 %v2189_v2, %v2187_v61 }
0x363c   :  { %v2192_v11 = vmul.f32 0.5, %v2191_v37 }
0x363e   :  { %v2994_v22 = vrot.slane %v2192_v11, %v2409_v58  ;;  %v2998_v21 = vrot.slane %v2192_v11, %v2413_v59 }
0x3640   :  { %v5528_v44 = vsel %vm352_vm9, %v2994_v22, %v2998_v21 }
0x3641   :  { %v3000_v62 = vpack.c.bf16 %v5528_v44, %v5528_v44 }
0x3671   :  { %v2773_v27 = vpop.f32.mrf.mxu0 }
0x3672   :  { %v2786_v28 = vadd.f32 %v2773_v27, %v5358_v43  ;;  %v2779_v4 = vadd.f32 %v2773_v27, %v2396_v55 }
0x3673   :  { %v4139_v29 = vpop.f32.mrf.mxu0 }
0x3674   :  { %2788 = vrot.lane.b32.xlu0 %v2786_v28, %s4429_s0  ;;  %v3630_v8 = vmul.f32 -1.442695, %v2779_v4 }
0x3675   :  { %v2776_v42 = vpop.f32.mrf.mxu0 }
0x3676   :  { %4379 = vpow2.f32 %v3630_v8 }
0x3677   :  { %v4140_v41 = vpop.f32.mrf.mxu0 }
0x3683   :  { %v4380_v39 = vpop.eup %4379 }
0x3684   :  { %v2783_v47 = vadd.f32 1.0, %v4380_v39 }
0x3686   :  { %4381 = vrcp.f32 %v2783_v47 }
0x3693   :  { %v4382_v40 = vpop.eup %4381 }
0x3694   :  { %v2798_v58 = vsub.f32 1.0, %v4382_v40  ;;  %v2804_v14 = vmul.f32 %v4382_v40, %v5503_v26 }
0x36e6   :  { %v2789_v49 = vpop.permute.xlu0 %2788 }
0x36e7   :  { %v2791_v50 = vmul.f32 %v4382_v40, %v2789_v49 }
0x36e9   :  { %2793 = vrot.lane.b32.xlu0 %v2791_v50, %s4429_s0 }
0x375b   :  { %v2794_v63 = vpop.permute.xlu0 %2793 }
0x375c   :  { %v2796_v1 = vadd.f32 %v2794_v63, %v2396_v55 }
0x375e   :  { %4383 = vtanh.f32 %v2796_v1 }
0x376b   :  { %v4384_v13 = vpop.eup %4383 }
0x376c   :  { %2800 = vrot.lane.b32.xlu0 %v4384_v13, %s4431_s21 }
0x3770   :  { %3002 = vrot.lane.b32.xlu0 %v3000_v62, %s4431_s21 }
0x3774   :  { %3071 = vrot.lane.b32.xlu0 %v3653_v10, %s4429_s0  ;;  %v2882_v10 = vpack.c.bf16 %v5503_v26, %v5475_v7  ;;  %v2399_v26 = vadd.f32 %v5365_v12, %v5482_v30 }
0x37de   :  { %v2801_v59 = vpop.permute.xlu0 %2800 }
0x37df   :  { %v2803_v52 = vmul.f32 %v2801_v59, %v2798_v58 }
0x37e1   :  { %v5543_v16 = vadd.f32 %v2804_v14, %v2803_v52 }
0x37e2   :  { %v3003_v32 = vpop.permute.xlu0 %3002 }
0x37e3   :  { %v2806_v15 = vpack.c.bf16 %v5543_v16, %v5543_v16 }
0x37e5   :  { %2808 = vrot.lane.b32.xlu1 %v2806_v15, %s4431_s21 }
0x37e6   :  { %v5585_v45 = vpop.permute.xlu0 %3071 }
0x37e9   :  { %2900 = vrot.lane.b32.xlu1 %v2881_v3, %s4431_s21 }
0x3857   :  { %v2809_v48 = vpop.permute.xlu1 %2808 }
0x3858   :  { %4146 = vmatmul.mubr.msk.bf16.vlgmr.msra.gmra.mxu1 %vm386_vm11, %v2809_v48 }
0x3859   :  { %4166 = vmatpush3.bf16.msra.mxu1 %v5555_v17  ;;  %4169 = vmatprep.mubr.msk.bf16.mxu1 %vm4428_vm0, %v4427_v0 }
0x385a   :  { %4167 = vmatprep.subr.bf16.mxu1 %v4427_v0 }
0x385b   :  { %v2901_v24 = vpop.permute.xlu1 %2900 }
0x385c   :  { %4154 = vmatmul.mubr.msk.bf16.vlgmr.msra.gmra.mxu0 %vm386_vm11, %v2901_v24 }
0x385d   :  { %4168 = vmatpush3.bf16.msra.mxu1 %v5562_v18  ;;  %4157 = vmatprep.mubr.msk.bf16.mxu0 %vm4428_vm0, %v4427_v0 }
0x385e   :  { %4173 = vmatprep.subr.bf16.mxu1 %v4427_v0  ;;  %4190 = vmatpush3.bf16.msra.mxu0 %v5555_v17 }
0x385f   :  { %4191 = vmatprep.subr.bf16.mxu0 %v4427_v0 }
0x3860   :  { %4170 = vmatmul.mubr.msk.bf16.vlgmr.msra.gmra.mxu1 %vm386_vm11, %v3003_v32 }
0x3861   :  { %4174 = vmatpush3.bf16.msra.mxu1 %v5555_v17  ;;  %4177 = vmatprep.mubr.msk.bf16.mxu1 %vm4428_vm0, %v4427_v0 }
0x3862   :  { %4175 = vmatprep.subr.bf16.mxu1 %v4427_v0  ;;  %4192 = vmatpush3.bf16.msra.mxu0 %v5562_v18 }
0x3863   :  { %4205 = vmatprep.subr.bf16.mxu0 %v4427_v0 }
0x3865   :  { %4176 = vmatpush3.bf16.msra.mxu1 %v5562_v18 }
0x3866   :  { %4181 = vmatprep.subr.bf16.mxu1 %v4427_v0 }
0x3918   :  { %v5583_v6 = vpop.f32.mrf.mxu1 }
0x3919   :  { %v2860_v7 = vadd.f32 %v5583_v6, %v5358_v43 }
0x391a   :  { %v4147_v19 = vpop.f32.mrf.mxu1 }
0x391c   :  { %v2850_v20 = vpop.f32.mrf.mxu1  ;;  %v2961_v9 = vpop.f32.mrf.mxu0 }
0x391d   :  { %v2962_v27 = vadd.f32 %v5592_v53, %v2961_v9  ;;  %v2853_v9 = vadd.f32 %v5583_v6, %v2399_v26 }
0x391e   :  { %v4148_v23 = vpop.f32.mrf.mxu1  ;;  %v4155_v25 = vpop.f32.mrf.mxu0 }
0x391f   :  { %v3632_v23 = vmul.f32 -1.442695, %v2853_v9 }
0x3920   :  { %v3053_v46 = vpop.f32.mrf.mxu1  ;;  %v2964_v34 = vpop.f32.mrf.mxu0 }
0x3921   :  { %v3074_v56 = vadd.f32 %v5585_v45, %v3053_v46  ;;  %v3059_v28 = vadd.f32 %v3053_v46, %v2962_v27  ;;  %v2965_v22 = vadd.f32 %v5592_v53, %v2964_v34 }
0x3922   :  { %v4156_v35 = vpop.f32.mrf.mxu0  ;;  %v4171_v54 = vpop.f32.mrf.mxu1 }
0x3923   :  { %3076 = vrot.lane.b32.xlu1 %v3074_v56, %s4429_s0  ;;  %v3652_v29 = vmul.f32 -1.442695, %v3059_v28 }
0x3924   :  { %v3056_v60 = vpop.f32.mrf.mxu1 }
0x3925   :  { %4385 = vpow2.f32 %v3652_v29 }
0x3926   :  { %v4172_v5 = vpop.f32.mrf.mxu1 }
0x3932   :  { %v4386_v42 = vpop.eup %4385 }
0x3933   :  { %v3063_v41 = vadd.f32 1.0, %v4386_v42 }
0x3935   :  { %4387 = vrcp.f32 %v3063_v41 }
0x3942   :  { %v4388_v55 = vpop.eup %4387 }
0x3943   :  { %v3086_v49 = vsub.f32 1.0, %v4388_v55  ;;  %v3092_v57 = vmul.f32 %v4388_v55, %v5528_v44 }
0x3995   :  { %v3077_v4 = vpop.permute.xlu1 %3076 }
0x3996   :  { %v3079_v8 = vmul.f32 %v4388_v55, %v3077_v4 }
0x3998   :  { %3081 = vrot.lane.b32.xlu0 %v3079_v8, %s4429_s0 }
0x3a0a   :  { %v3082_v39 = vpop.permute.xlu0 %3081 }
0x3a0b   :  { %v3084_v47 = vadd.f32 %v3082_v39, %v2962_v27 }
0x3a0d   :  { %4389 = vtanh.f32 %v3084_v47 }
0x3a1a   :  { %v4390_v40 = vpop.eup %4389 }
0x3a1b   :  { %3088 = vrot.lane.b32.xlu1 %v4390_v40, %s4431_s21 }
0x3a8d   :  { %v3089_v50 = vpop.permute.xlu1 %3088 }
0x3a8e   :  { %v3091_v33 = vmul.f32 %v3089_v50, %v3086_v49 }
0x3a90   :  { %v3093_v36 = vadd.f32 %v3092_v57, %v3091_v33 }
0x3a92   :  { %v3094_v31 = vpack.c.bf16 %v3093_v36, %v3093_v36 }
0x3a94   :  { %3096 = vrot.lane.b32.xlu0 %v3094_v31, %s4431_s21 }
0x3b06   :  { %v3097_v61 = vpop.permute.xlu0 %3096 }
0x3b07   :  { %4178 = vmatmul.mubr.msk.bf16.vlgmr.msra.gmra.mxu1 %vm386_vm11, %v3097_v61 }
0x3b08   :  { %4182 = vmatpush3.bf16.msra.mxu1 %v5555_v17  ;;  %4185 = vmatprep.mubr.msk.bf16.mxu1 %vm4428_vm0, %v4427_v0 }
0x3b09   :  { %4183 = vmatprep.subr.bf16.mxu1 %v4427_v0 }
0x3b0c   :  { %4184 = vmatpush3.bf16.msra.mxu1 %v5562_v18 }
0x3b0d   :  { %4197 = vmatprep.subr.bf16.mxu1 %v4427_v0 }
0x3bc7   :  { %v3135_v2 = vpop.f32.mrf.mxu1 }
0x3bc8   :  { %v3148_v63 = vadd.f32 %v3135_v2, %v5585_v45  ;;  %v3141_v21 = vadd.f32 %v3135_v2, %v2965_v22 }
0x3bc9   :  { %v4179_v1 = vpop.f32.mrf.mxu1 }
0x3bca   :  { %3150 = vrot.lane.b32.xlu1 %v3148_v63, %s4429_s0  ;;  %v3655_v38 = vmul.f32 -1.442695, %v3141_v21 }
0x3bcb   :  { %v3138_v37 = vpop.f32.mrf.mxu1 }
0x3bcc   :  { %4391 = vpow2.f32 %v3655_v38 }
0x3bcd   :  { %v4180_v11 = vpop.f32.mrf.mxu1 }
0x3bd9   :  { %v4392_v13 = vpop.eup %4391 }
0x3bda   :  { %v3145_v44 = vadd.f32 1.0, %v4392_v13 }
0x3bdc   :  { %4393 = vrcp.f32 %v3145_v44 }
0x3be9   :  { %v4394_v62 = vpop.eup %4393 }
0x3bea   :  { %v3160_v15 = vsub.f32 1.0, %v4394_v62  ;;  %v3166_v48 = vmul.f32 %v4394_v62, %v3093_v36 }
0x3c3c   :  { %v3151_v51 = vpop.permute.xlu1 %3150 }
0x3c3d   :  { %v3153_v58 = vmul.f32 %v4394_v62, %v3151_v51 }
0x3c3f   :  { %3155 = vrot.lane.b32.xlu0 %v3153_v58, %s4429_s0 }
0x3cb1   :  { %v3156_v59 = vpop.permute.xlu0 %3155 }
0x3cb2   :  { %v3158_v14 = vadd.f32 %v3156_v59, %v2965_v22 }
0x3cb4   :  { %4395 = vtanh.f32 %v3158_v14 }
0x3cb5   :  { %4397 = vpow2.f32 %v3632_v23 }
0x3cc1   :  { %v4396_v52 = vpop.eup %4395 }
0x3cc2   :  { %3162 = vrot.lane.b32.xlu1 %v4396_v52, %s4431_s21  ;;  %v4398_v25 = vpop.eup %4397 }
0x3cc3   :  { %v2857_v46 = vadd.f32 1.0, %v4398_v25 }
0x3cc5   :  { %4399 = vrcp.f32 %v2857_v46 }
0x3cc6   :  { %2902 = vrot.lane.b32.xlu1 %v2882_v10, %s4431_s21 }
0x3cd2   :  { %v4400_v43 = vpop.eup %4399 }
0x3cd3   :  { %v2872_v4 = vsub.f32 1.0, %v4400_v43  ;;  %v2878_v39 = vmul.f32 %v4400_v43, %v5543_v16 }
0x3d34   :  { %v3163_v3 = vpop.permute.xlu1 %3162 }
0x3d35   :  { %v3165_v24 = vmul.f32 %v3163_v3, %v3160_v15 }
0x3d37   :  { %v5614_v32 = vadd.f32 %v3166_v48, %v3165_v24 }
0x3d38   :  { %v2903_v19 = vpop.permute.xlu1 %2902 }
0x3d39   :  { %4158 = vmatmul.mubr.msk.bf16.gmra.mxu0 %vm386_vm11, %v2903_v19  ;;  %v3168_v20 = vpack.c.bf16 %v5614_v32, %v5614_v32 }
0x3d3a   :  { %4161 = vmatprep.mubr.msk.bf16.mxu0 %vm4428_vm0, %v4427_v0 }
0x3d3b   :  { %3170 = vrot.lane.b32.xlu0 %v3168_v20, %s4431_s21 }
0x3d3f   :  { %2862 = vrot.lane.b32.xlu0 %v2860_v7, %s4429_s0 }
0x3dad   :  { %v3171_v34 = vpop.permute.xlu0 %3170 }
0x3dae   :  { %4186 = vmatmul.mubr.msk.bf16.vlgmr.msra.gmra.mxu1 %vm386_vm11, %v3171_v34 }
0x3daf   :  { %4198 = vmatpush3.bf16.msra.mxu1 %v5555_v17  ;;  %4201 = vmatprep.mubr.msk.bf16.mxu1 %vm4428_vm0, %v4427_v0 }
0x3db0   :  { %4199 = vmatprep.subr.bf16.mxu1 %v4427_v0 }
0x3db1   :  { %v2863_v56 = vpop.permute.xlu0 %2862 }
0x3db2   :  { %v2865_v12 = vmul.f32 %v4400_v43, %v2863_v56 }
0x3db3   :  { %4200 = vmatpush3.bf16.msra.mxu1 %v5562_v18 }
0x3db4   :  { %2867 = vrot.lane.b32.xlu0 %v2865_v12, %s4429_s0 }
0x3df9   :  { %v2969_v30 = vpop.f32.mrf.mxu0 }
0x3dfa   :  { %v2970_v50 = vadd.f32 %v5592_v53, %v2969_v30 }
0x3dfb   :  { %v4159_v6 = vpop.f32.mrf.mxu0 }
0x3dfd   :  { %v2972_v35 = vpop.f32.mrf.mxu0 }
0x3dff   :  { %v4160_v54 = vpop.f32.mrf.mxu0 }
0x3e26   :  { %v2868_v60 = vpop.permute.xlu0 %2867 }
0x3e27   :  { %v2870_v5 = vadd.f32 %v2868_v60, %v2399_v26 }
0x3e29   :  { %4401 = vtanh.f32 %v2870_v5 }
0x3e36   :  { %v4402_v27 = vpop.eup %4401 }
0x3e37   :  { %2874 = vrot.lane.b32.xlu0 %v4402_v27, %s4431_s21 }
0x3e6e   :  { %v3209_v28 = vpop.f32.mrf.mxu1 }
0x3e6f   :  { %v3222_v29 = vadd.f32 %v3209_v28, %v5585_v45  ;;  %v3215_v57 = vadd.f32 %v3209_v28, %v2970_v50 }
0x3e70   :  { %v4187_v42 = vpop.f32.mrf.mxu1 }
0x3e71   :  { %3224 = vrot.lane.b32.xlu1 %v3222_v29, %s4429_s0  ;;  %v3657_v33 = vmul.f32 -1.442695, %v3215_v57 }
0x3e72   :  { %v3212_v41 = vpop.f32.mrf.mxu1 }
0x3e73   :  { %4403 = vpow2.f32 %v3657_v33 }
0x3e74   :  { %v4188_v55 = vpop.f32.mrf.mxu1 }
0x3e80   :  { %v4404_v36 = vpop.eup %4403 }
0x3e81   :  { %v3219_v31 = vadd.f32 1.0, %v4404_v36 }
0x3e83   :  { %4405 = vrcp.f32 %v3219_v31 }
0x3e90   :  { %v4406_v61 = vpop.eup %4405 }
0x3e91   :  { %v3234_v22 = vsub.f32 1.0, %v4406_v61  ;;  %v3240_v38 = vmul.f32 %v4406_v61, %v5614_v32  ;;  %v2973_v32 = vadd.f32 %v5592_v53, %v2972_v35 }
0x3ea9   :  { %v2875_v8 = vpop.permute.xlu0 %2874 }
0x3eaa   :  { %v2877_v47 = vmul.f32 %v2875_v8, %v2872_v4 }
0x3eac   :  { %v5639_v40 = vadd.f32 %v2878_v39, %v2877_v47 }
0x3eae   :  { %v2883_v49 = vpack.c.bf16 %v5639_v40, %v5543_v16 }
0x3eb0   :  { %2904 = vrot.lane.b32.xlu0 %v2883_v49, %s4431_s21 }
0x3ee3   :  { %v3225_v2 = vpop.permute.xlu1 %3224 }
0x3ee4   :  { %v3227_v63 = vmul.f32 %v4406_v61, %v3225_v2 }
0x3ee6   :  { %3229 = vrot.lane.b32.xlu1 %v3227_v63, %s4429_s0 }
0x3f22   :  { %v2905_v1 = vpop.permute.xlu0 %2904 }
0x3f23   :  { %4162 = vmatmul.mubr.msk.bf16.gmra.mxu0 %vm386_vm11, %v2905_v1 }
0x3f24   :  { %4193 = vmatprep.mubr.msk.bf16.mxu0 %vm4428_vm0, %v4427_v0 }
0x3f58   :  { %v3230_v16 = vpop.permute.xlu1 %3229 }
0x3f59   :  { %v3232_v37 = vadd.f32 %v3230_v16, %v2970_v50 }
0x3f5b   :  { %4407 = vtanh.f32 %v3232_v37 }
0x3f68   :  { %v4408_v11 = vpop.eup %4407 }
0x3f69   :  { %3236 = vrot.lane.b32.xlu1 %v4408_v11, %s4431_s21 }
0x3fdb   :  { %v3237_v21 = vpop.permute.xlu1 %3236 }
0x3fdc   :  { %v3239_v13 = vmul.f32 %v3237_v21, %v3234_v22 }
0x3fde   :  { %v3241_v44 = vadd.f32 %v3240_v38, %v3239_v13 }
0x3fe0   :  { %v3242_v62 = vpack.c.bf16 %v3241_v44, %v3241_v44 }
0x3fe2   :  { %3244 = vrot.lane.b32.xlu1 %v3242_v62, %s4431_s21 }
0x3fe3   :  { %v2977_v51 = vpop.f32.mrf.mxu0 }
0x3fe4   :  { %v2978_v28 = vadd.f32 %v5592_v53, %v2977_v51 }
0x3fe5   :  { %v4163_v58 = vpop.f32.mrf.mxu0 }
0x3fe7   :  { %v5652_v59 = vpop.f32.mrf.mxu0 }
0x3fe8   :  { %v2981_v21 = vadd.f32 %v5592_v53, %v5652_v59 }
0x3fe9   :  { %v4164_v14 = vpop.f32.mrf.mxu0 }
0x4054   :  { %v3245_v52 = vpop.permute.xlu1 %3244 }
0x4055   :  { %4194 = vmatmul.mubr.msk.bf16.vlgmr.msra.gmra.mxu0 %vm386_vm11, %v3245_v52 }
0x4056   :  { %4206 = vmatpush3.bf16.msra.mxu0 %v5555_v17  ;;  %4209 = vmatprep.mubr.msk.bf16.mxu0 %vm4428_vm0, %v4427_v0 }
0x4057   :  { %4207 = vmatprep.subr.bf16.mxu0 %v4427_v0 }
0x405a   :  { %4208 = vmatpush3.bf16.msra.mxu0 %v5562_v18 }
0x4115   :  { %v3283_v10 = vpop.f32.mrf.mxu0 }
0x4116   :  { %v3296_v15 = vadd.f32 %v3283_v10, %v5585_v45  ;;  %v3289_v19 = vadd.f32 %v3283_v10, %v2973_v32 }
0x4117   :  { %v4195_v3 = vpop.f32.mrf.mxu0 }
0x4118   :  { %3298 = vrot.lane.b32.xlu0 %v3296_v15, %s4429_s0  ;;  %v3659_v20 = vmul.f32 -1.442695, %v3289_v19  ;;  %v25_v3 = vstv %s5711_s19 }
0x4119   :  { %v3286_v48 = vpop.f32.mrf.mxu0  ;;  %26 = vst [vmem:[#allocation2] sm:$0x1] %v25_v3 }
0x411a   :  { %4409 = vpow2.f32 %v3659_v20 }
0x411b   :  { %v4196_v24 = vpop.f32.mrf.mxu0 }
0x4127   :  { %v4410_v17 = vpop.eup %4409 }
0x4128   :  { %v3293_v7 = vadd.f32 1.0, %v4410_v17 }
0x412a   :  { %4411 = vrcp.f32 %v3293_v7 }
0x4137   :  { %v4412_v26 = vpop.eup %4411 }
0x4138   :  { %v3308_v46 = vsub.f32 1.0, %v4412_v26  ;;  %v3314_v43 = vmul.f32 %v4412_v26, %v3241_v44 }
0x418a   :  { %v3299_v0 = vpop.permute.xlu0 %3298 }
0x418b   :  { %v3301_v9 = vmul.f32 %v4412_v26, %v3299_v0 }
0x418d   :  { %3303 = vrot.lane.b32.xlu1 %v3301_v9, %s4429_s0  ;;  %v3665_v9 = vld [vmem:[#allocation2] ss:$0 sm:$0xff] }
0x41ff   :  { %v3304_v18 = vpop.permute.xlu1 %3303 }
0x4200   :  { %v3306_v23 = vadd.f32 %v3304_v18, %v2973_v32 }
0x4202   :  { %4413 = vtanh.f32 %v3306_v23 }
0x420f   :  { %v4414_v25 = vpop.eup %4413 }
0x4210   :  { %3310 = vrot.lane.b32.xlu0 %v4414_v25, %s4431_s21 }
0x4282   :  { %v3311_v34 = vpop.permute.xlu0 %3310 }
0x4283   :  { %v3313_v56 = vmul.f32 %v3311_v34, %v3308_v46 }
0x4285   :  { %v3315_v12 = vadd.f32 %v3314_v43, %v3313_v56 }
0x4287   :  { %v3316_v30 = vpack.c.bf16 %v3315_v12, %v3315_v12 }
0x4289   :  { %3318 = vrot.lane.b32.xlu1 %v3316_v30, %s4431_s21 }
0x42fb   :  { %v3319_v6 = vpop.permute.xlu1 %3318 }
0x42fc   :  { %4202 = vmatmul.mubr.msk.bf16.vlgmr.msra.gmra.mxu1 %vm386_vm11, %v3319_v6 }
0x43bc   :  { %v3357_v35 = vpop.f32.mrf.mxu1 }
0x43bd   :  { %v3370_v54 = vadd.f32 %v3357_v35, %v5585_v45  ;;  %v3363_v29 = vadd.f32 %v3357_v35, %v2978_v28 }
0x43be   :  { %v4203_v60 = vpop.f32.mrf.mxu1 }
0x43bf   :  { %3372 = vrot.lane.b32.xlu0 %v3370_v54, %s4429_s0  ;;  %v3661_v42 = vmul.f32 -1.442695, %v3363_v29 }
0x43c0   :  { %v3360_v5 = vpop.f32.mrf.mxu1 }
0x43c1   :  { %4415 = vpow2.f32 %v3661_v42 }
0x43c2   :  { %v4204_v27 = vpop.f32.mrf.mxu1 }
0x43ce   :  { %v4416_v41 = vpop.eup %4415 }
0x43cf   :  { %v3367_v55 = vadd.f32 1.0, %v4416_v41 }
0x43d1   :  { %4417 = vrcp.f32 %v3367_v55 }
0x43de   :  { %v4418_v4 = vpop.eup %4417 }
0x43df   :  { %v3382_v57 = vsub.f32 1.0, %v4418_v4  ;;  %v3388_v36 = vmul.f32 %v4418_v4, %v3315_v12 }
0x4431   :  { %v3373_v8 = vpop.permute.xlu0 %3372 }
0x4432   :  { %v3375_v39 = vmul.f32 %v4418_v4, %v3373_v8 }
0x4434   :  { %3377 = vrot.lane.b32.xlu1 %v3375_v39, %s4429_s0 }
0x44a6   :  { %v3378_v47 = vpop.permute.xlu1 %3377 }
0x44a7   :  { %v3380_v49 = vadd.f32 %v3378_v47, %v2978_v28 }
0x44a9   :  { %4419 = vtanh.f32 %v3380_v49 }
0x44b6   :  { %v4420_v50 = vpop.eup %4419 }
0x44b7   :  { %3384 = vrot.lane.b32.xlu0 %v4420_v50, %s4431_s21 }
0x4529   :  { %v3385_v33 = vpop.permute.xlu0 %3384 }
0x452a   :  { %v3387_v31 = vmul.f32 %v3385_v33, %v3382_v57 }
0x452c   :  { %v3389_v61 = vadd.f32 %v3388_v36, %v3387_v31 }
0x452e   :  { %v3390_v2 = vpack.c.bf16 %v3389_v61, %v3389_v61 }
0x4530   :  { %3392 = vrot.lane.b32.xlu1 %v3390_v2, %s4431_s21 }
0x45a2   :  { %v3393_v63 = vpop.permute.xlu1 %3392 }
0x45a3   :  { %4210 = vmatmul.mubr.msk.bf16.vlgmr.msra.gmra.mxu0 %vm386_vm11, %v3393_v63 }
0x4663   :  { %v3431_v1 = vpop.f32.mrf.mxu0 }
0x4664   :  { %v3444_v16 = vadd.f32 %v3431_v1, %v5585_v45  ;;  %v3437_v38 = vadd.f32 %v3431_v1, %v2981_v21  ;;  %v3664_v45 = vld [vmem:[%s5710_s18] ss:$0 sm:$0xff] }
0x4665   :  { %v4211_v37 = vpop.f32.mrf.mxu0 }
0x4666   :  { %3446 = vrot.lane.b32.xlu0 %v3444_v16, %s4429_s0  ;;  %v3663_v13 = vmul.f32 -1.442695, %v3437_v38 }
0x4667   :  { %v3434_v11 = vpop.f32.mrf.mxu0 }
0x4668   :  { %4421 = vpow2.f32 %v3663_v13 }
0x4669   :  { %v4212_v22 = vpop.f32.mrf.mxu0 }
0x4675   :  { %v4422_v44 = vpop.eup %4421 }
0x4676   :  { %v3441_v62 = vadd.f32 1.0, %v4422_v44 }
0x4678   :  { %4423 = vrcp.f32 %v3441_v62 }
0x4685   :  { %v4424_v51 = vpop.eup %4423 }
0x4686   :  { %v3456_v59 = vsub.f32 1.0, %v4424_v51  ;;  %v3462_v48 = vmul.f32 %v4424_v51, %v3389_v61 }
0x46d8   :  { %v3447_v58 = vpop.permute.xlu0 %3446 }
0x46d9   :  { %v3449_v14 = vmul.f32 %v4424_v51, %v3447_v58 }
0x46db   :  { %3451 = vrot.lane.b32.xlu1 %v3449_v14, %s4429_s0 }
0x46df   :  { %3472 = vrot.lane.b32.xlu1 %v3664_v45, %s4432_s26 }
0x474d   :  { %v3452_v52 = vpop.permute.xlu1 %3451 }
0x474e   :  { %v3454_v10 = vadd.f32 %v3452_v52, %v2981_v21 }
0x4750   :  { %4425 = vtanh.f32 %v3454_v10 }
0x4751   :  { %v3473_v20 = vpop.permute.xlu1 %3472 }
0x475d   :  { %v4426_v53 = vpop.eup %4425 }
0x475e   :  { %3458 = vrot.lane.b32.xlu0 %v4426_v53, %s4431_s21 }
0x47d0   :  { %v3459_v15 = vpop.permute.xlu0 %3458 }
0x47d1   :  { %v3461_v24 = vmul.f32 %v3459_v15, %v3456_v59 }
0x47d3   :  { %v3463_v32 = vadd.f32 %v3462_v48, %v3461_v24 }
0x47d5   :  { %v3464_v19 = vadd.f32 %v3463_v32, %v5639_v40 }
0x47d7   :  { %v3465_v17 = vmul.f32 0.5, %v3464_v19 }
0x47d9   :  { %v3475_v7 = vmul.f32 %v3473_v20, %v3465_v17 }
0x47db   :  { %3477 = vrot.lane.b32.xlu0 %v3475_v7, %s4431_s21 }
0x484d   :  { %v3478_v26 = vpop.permute.xlu0 %3477 }
0x484e   :  { %v3480_v0 = vsel %vm386_vm11, %v3478_v26, 0.0 }
0x484f   :  { %3481 = vadd.xlane.f32.xlu1 %v3480_v0 }
0x48d8   :  { %v3482_v18 = vpop.xlane.xlu1 %3481 }
0x48d9   :  { %v3490_v23 = vadd.f32 %v3665_v9, %v3482_v18 }
0x48db   :  { %3492 = vst.msk [vmem:[%s5712_s20] sm:$0xff] %vm3491_vm15, %v3490_v23 }

</bundles_post_ra>
